<compile_context>
chip_gen: v6e
topology: v6e:2x2x1
jax: 0.10.0
libtpu: 0.0.40
codegen_flags: <defaults>
</compile_context>

<pallas_src>
import functools

import jax
import jax.numpy as jnp
from jax.experimental import pallas as pl
from jax.experimental.pallas import tpu as pltpu


def _act(x):
    # TODO(synk): `activation` is a constructor argument of the PyTorch module;
    # tanh-approximate GELU is the synthetic choice used here and in the reference.
    return jax.nn.gelu(x, approximate=True)


def _residual_kernel(n_hidden, x_ref, y_ref, w_in_ref, vec_ref, mavg_ref,
                     w1_ref, b1_ref, *rest):
    if n_hidden:
        wh_ref, bh_ref, w2_ref, o_ref = rest
    else:
        w2_ref, o_ref = rest

    f32, bf16 = jnp.float32, jnp.bfloat16

    x = x_ref[...].astype(f32)
    vecs = vec_ref[...]                              # (4, dp) f32
    b_in, gamma, beta, b2 = vecs[0:1], vecs[1:2], vecs[2:3], vecs[3:4]

    # x = x + feat_dropout(in_proj(y))   (dropout == identity; y arrives as bf16)
    x = x + jnp.dot(y_ref[...], w_in_ref[...], preferred_element_type=f32) + b_in

    # LayerNorm per packed feature group (eps = 1e-5, elementwise affine).
    # Group statistics via bf16 MXU matmuls with mavg = kron(I_pack, 11^T / d)
    # (1/d is a power of two -> exact in bf16); var = E[x^2] - mean^2 keeps the
    # two stat matmuls independent (no serial mean -> centered -> var MXU chain).
    mavg = mavg_ref[...]
    mean = jnp.dot(x.astype(bf16), mavg, preferred_element_type=f32)
    msq = jnp.dot((x * x).astype(bf16), mavg, preferred_element_type=f32)
    var = jnp.maximum(msq - mean * mean, 0.0)
    ln = (x - mean) * jax.lax.rsqrt(var + 1e-5) * gamma + beta

    # FFN (MLP): in_proj -> act -> (n_hidden hidden layers, act each) -> out_proj
    z = _act(jnp.dot(ln.astype(bf16), w1_ref[...], preferred_element_type=f32)
             + b1_ref[...])
    if n_hidden:
        gw = wh_ref.shape[-1]                        # hidden width per packed group
        ngroups = z.shape[-1] // gw                  # == pack (un-kron'd) or 1 (fallback)
        groups = [z[:, gi * gw:(gi + 1) * gw] for gi in range(ngroups)]
        for l in range(n_hidden):                    # static unroll over stacked layers
            bh = bh_ref[l:l + 1, :]
            groups = [_act(jnp.dot(gz.astype(bf16), wh_ref[l],
                                   preferred_element_type=f32) + bh)
                      for gz in groups]
        z = groups[0] if ngroups == 1 else jnp.concatenate(groups, axis=-1)

    ffn = jnp.dot(z.astype(bf16), w2_ref[...], preferred_element_type=f32) + b2

    # x = x + feat_dropout(ffn)          (dropout == identity)
    o_ref[...] = (x + ffn).astype(o_ref.dtype)


def _vmem_budget_bytes():
    """~75% of the chip's physical VMEM (128 MiB on v5e/v6e, 64 MiB on v7x)."""
    cap = 64 * 1024 * 1024
    try:
        info = pltpu.get_tpu_info()
        cap = int(getattr(info, "vmem_capacity_bytes", cap)) or cap
    except Exception:
        pass
    return (cap * 3) // 4


def _pick_block_rows(n_p, cap, fits):
    """Largest packed-row block that divides n_p, obeys the (8, .) sublane rule,
    fits the VMEM budget, and keeps >= 4 grid steps when possible (>= 2 per
    TensorCore under ("parallel",) on v7x's 2-TC megacore)."""
    cap = max(1, min(cap, n_p))
    if n_p >= 32:
        cap = min(cap, n_p // 4)
    elif n_p >= 16:
        cap = min(cap, n_p // 2)
    cands = [c for c in range(cap, 0, -1)
             if n_p % c == 0 and (c % 8 == 0 or c == n_p)]
    if not cands:
        cands = [n_p]
    for c in cands:
        if fits(c):
            return c
    return cands[-1]


def prepare_residual(params, n_rows):
    """One-time host-side packing of the Residual parameters.

    Rows are packed `pack = 128 // d` per lane-row (lane-dense 128-wide data
    path); weights that must mix a whole packed lane-row are replicated
    block-diagonally (kron(I_pack, W)) in bf16.  The hidden-layer weights stay
    un-expanded (n_hidden, H, H) and are applied per group in the kernel when
    H is a multiple of 128.  Call once and reuse across forward calls.
    """
    (w_in, b_in, gamma, beta, w1, b1, wh, bh, w2, b2) = params
    d = int(w_in.shape[0])
    H = int(w1.shape[1])
    n_hidden = int(wh.shape[0])

    pack = 1
    if d < 128 and 128 % d == 0 and n_rows % (128 // d) == 0:
        pack = 128 // d

    eye = jnp.eye(pack, dtype=jnp.float32)

    def tile_row(v):
        return jnp.tile(jnp.asarray(v, jnp.float32).reshape(1, -1), (1, pack))

    ops = {
        "w_in": jnp.kron(eye, w_in).astype(jnp.bfloat16),
        # b_in / gamma / beta / b2 fused into one (4, dp) operand: single DMA,
        # no per-vector sublane padding.
        "vecs": jnp.concatenate(
            [tile_row(b_in), tile_row(gamma), tile_row(beta), tile_row(b2)], axis=0),
        # Group-mean matmul operand; 1/d is a power of two (exact in bf16).
        "mavg": jnp.kron(eye, jnp.full((d, d), 1.0 / d, jnp.float32)).astype(jnp.bfloat16),
        "w1": jnp.kron(eye, w1).astype(jnp.bfloat16),
        "b1": tile_row(b1),
        "w2": jnp.kron(eye, w2).astype(jnp.bfloat16),
    }
    if n_hidden:
        if pack == 1 or H % 128 == 0:
            # Un-expanded: kernel does per-group lane-aligned dots.
            ops["wh"] = wh.astype(jnp.bfloat16)                     # (n_hidden, H, H)
            ops["bh"] = bh.astype(jnp.float32)                      # (n_hidden, H)
        else:
            # Fallback for lane-misaligned groups: block-diagonal expansion.
            ops["wh"] = jnp.stack(
                [jnp.kron(eye, wh[l]) for l in range(n_hidden)]).astype(jnp.bfloat16)
            ops["bh"] = jnp.tile(bh, (1, pack)).astype(jnp.float32)

    meta = {"d": d, "H": H, "pack": pack, "n_hidden": n_hidden}
    return ops, meta


def residual_forward(x, y, prepared, *, max_block_rows=2048):
    """Fused Residual forward. x, y: (N, d) with d_in == d_out == d."""
    ops, meta = prepared
    d, H, pack, n_hidden = meta["d"], meta["H"], meta["pack"], meta["n_hidden"]
    N = x.shape[0]
    # The PyTorch module only works when d_in == d_out (residual add + LayerNorm(d_in) on x).
    assert x.shape == (N, d) and y.shape == (N, d), \
        "Residual requires d_in == d_out and matching row counts"
    assert N % pack == 0
    dp, Hp = d * pack, H * pack
    n_p = N // pack

    xp = x.reshape(n_p, dp)
    # y only ever feeds the bf16 MXU path -> ship it as bf16 (bit-identical,
    # half the DMA / double-buffered VMEM).
    yp = y.astype(jnp.bfloat16).reshape(n_p, dp)

    resident = [ops["w_in"], ops["vecs"], ops["mavg"], ops["w1"], ops["b1"]]
    if n_hidden:
        resident += [ops["wh"], ops["bh"]]
    resident.append(ops["w2"])
    resident_bytes = sum(int(a.size) * a.dtype.itemsize for a in resident)

    budget = _vmem_budget_bytes()

    def footprint(bp):
        # resident weights (single-buffered) + double-buffered x(f32)/y(bf16)/out(f32)
        # row tiles + f32 intermediates (z / per-group activations / ln / ...).
        return resident_bytes + 2 * (4 + 2 + 4) * bp * dp + 6 * bp * Hp * 4

    bp = _pick_block_rows(n_p, max(1, max_block_rows // pack),
                          lambda c: footprint(c) <= budget)
    assert footprint(bp) <= budget, "Residual kernel does not fit in VMEM"
    grid = (n_p // bp,)

    gw = ops["wh"].shape[-1] if n_hidden else 0
    cost = pl.CostEstimate(
        flops=int(2 * n_p * (3 * dp * dp + dp * Hp + n_hidden * Hp * gw + Hp * dp)),
        transcendentals=int(N * H * (n_hidden + 1)),        # one tanh per GELU
        bytes_accessed=int(N * d * (4 + 2 + 4) + resident_bytes),
    )

    row_spec = pl.BlockSpec((bp, dp), lambda i: (i, 0))
    out_shape = jax.ShapeDtypeStruct((n_p, dp), x.dtype)
    kernel = functools.partial(_residual_kernel, n_hidden)

    def build(single_buffer):
        def resident_spec(shape):
            nd = len(shape)
            idx = lambda i, _nd=nd: (0,) * _nd
            if single_buffer:
                # Grid-invariant blocks: a single VMEM buffer is enough.
                return pl.BlockSpec(shape, idx, pipeline_mode=pl.Buffered(1))
            return pl.BlockSpec(shape, idx)

        in_specs = [row_spec, row_spec] + [resident_spec(a.shape) for a in resident]
        return pl.pallas_call(
            kernel,
            out_shape=out_shape,
            grid_spec=pltpu.PrefetchScalarGridSpec(
                num_scalar_prefetch=0,
                grid=grid,
                in_specs=in_specs,
                out_specs=row_spec,
            ),
            compiler_params=pltpu.CompilerParams(
                dimension_semantics=("parallel",),
                vmem_limit_bytes=int(budget),
            ),
            cost_estimate=cost,
        )

    operands = [xp, yp] + resident
    try:
        out_p = build(True)(*operands)
    except Exception:
        # TODO(synk): pl.Buffered(1) single-buffering of the resident weights is
        # the intended config; fall back to default double-buffering if this
        # JAX build does not support pipeline_mode.
        out_p = build(False)(*operands)
    return out_p.reshape(N, d)


def init_params(key, d, n_ffn_dense_layers):
    """Deterministic synthetic params. Linear weights stored pre-transposed as
    (fan_in, fan_out) so the kernel does `x @ W`; biases are 1-D."""
    d_hidden = 4 * d
    n_hidden = max(n_ffn_dense_layers - 2, 0)
    ks = jax.random.split(key, 4)

    def lin(k, fi, fo):
        kw, kb = jax.random.split(k)
        w = jax.random.normal(kw, (fi, fo), jnp.float32) / jnp.sqrt(fi)
        b = jax.random.normal(kb, (fo,), jnp.float32) * 0.01
        return w, b

    w_in, b_in = lin(ks[0], d, d)                    # Residual.in_proj
    gamma = jnp.ones((d,), jnp.float32)              # Residual.norm (LayerNorm default init)
    beta = jnp.zeros((d,), jnp.float32)
    w1, b1 = lin(ks[1], d, d_hidden)                 # MLP.in_proj
    if n_hidden:
        pairs = [lin(jax.random.fold_in(ks[2], l), d_hidden, d_hidden)
                 for l in range(n_hidden)]
        wh = jnp.stack([p[0] for p in pairs])        # (n_hidden, H, H)
        bh = jnp.stack([p[1] for p in pairs])        # (n_hidden, H)
    else:
        wh = jnp.zeros((0, d_hidden, d_hidden), jnp.float32)
        bh = jnp.zeros((0, d_hidden), jnp.float32)
    w2, b2 = lin(ks[3], d_hidden, d)                 # MLP.out_proj
    return (w_in, b_in, gamma, beta, w1, b1, wh, bh, w2, b2)


def residual_reference(x, y, params, *, kernel_precision=False):
    """Pure-JAX reference (mirrors the PyTorch forward, dropout = identity).
    kernel_precision=True mirrors the kernel's bf16 MXU operands and bf16
    LayerNorm statistics; False is the full-f32 PyTorch-equivalent path."""
    (w_in, b_in, gamma, beta, w1, b1, wh, bh, w2, b2) = params
    f32, bf16 = jnp.float32, jnp.bfloat16

    if kernel_precision:
        def mm(a, w):
            return jnp.dot(a.astype(bf16), w.astype(bf16), preferred_element_type=f32)
    else:
        def mm(a, w):
            return jnp.dot(a, w, precision=jax.lax.Precision.HIGHEST)

    x = x + (mm(y, w_in) + b_in)
    if kernel_precision:
        mean = jnp.mean(x.astype(bf16).astype(f32), -1, keepdims=True)
        msq = jnp.mean((x * x).astype(bf16).astype(f32), -1, keepdims=True)
        var = jnp.maximum(msq - mean * mean, 0.0)
    else:
        mean = jnp.mean(x, -1, keepdims=True)
        var = jnp.mean((x - mean) ** 2, -1, keepdims=True)
    h = (x - mean) * jax.lax.rsqrt(var + 1e-5) * gamma + beta
    z = _act(mm(h, w1) + b1)
    for l in range(wh.shape[0]):
        z = _act(mm(z, wh[l]) + bh[l])
    return x + (mm(z, w2) + b2)


if __name__ == "__main__":
    # Small shapes consistent with the module: batch=2, seq=128 -> 256 rows,
    # d_in = d_out = 32 (the module requires d_in == d_out), n_ffn_dense_layers=3
    # => one 4*d hidden layer inside the MLP.  Rows pack 4-per-lane-row to
    # (64, 128); 16-row blocks give 4 parallel grid steps (2 per TC on v7x).
    batch, seq = 2, 128
    d = 32
    n_ffn_dense_layers = 3

    key = jax.random.PRNGKey(0)
    kx, ky, kp = jax.random.split(key, 3)
    x = jax.random.normal(kx, (batch * seq, d), jnp.float32)
    y = jax.random.normal(ky, (batch * seq, d), jnp.float32)
    params = init_params(kp, d, n_ffn_dense_layers)

    prepared = prepare_residual(params, batch * seq)   # one-time host-side packing
    out = residual_forward(x, y, prepared)
    out = jax.block_until_ready(out)
    assert out.shape == (batch * seq, d)

    # Tight check vs. a reference that mirrors the kernel's bf16 operand / LN-stat
    # precision, plus a looser check vs. the full-f32 PyTorch-equivalent reference.
    ref_kp = residual_reference(x, y, params, kernel_precision=True)
    ref_f32 = residual_reference(x, y, params, kernel_precision=False)
    assert jnp.allclose(out, ref_kp, atol=2e-2, rtol=2e-2), "mismatch vs kernel-precision reference"
    assert jnp.allclose(out, ref_f32, atol=1e-1, rtol=1e-1), "mismatch vs f32 reference"

    print("KERNEL_OK")
</pallas_src>

<mosaic_0001>
module attributes {stable_mosaic.version = 11 : i64} {
  func.func @_residual_kernel(%arg0: i32, %arg1: memref<16x128xf32, #tpu.memory_space<vmem>>, %arg2: memref<16x128xbf16, #tpu.memory_space<vmem>>, %arg3: memref<128x128xbf16, #tpu.memory_space<vmem>>, %arg4: memref<4x128xf32, #tpu.memory_space<vmem>>, %arg5: memref<128x128xbf16, #tpu.memory_space<vmem>>, %arg6: memref<128x512xbf16, #tpu.memory_space<vmem>>, %arg7: memref<1x512xf32, #tpu.memory_space<vmem>>, %arg8: memref<1x128x128xbf16, #tpu.memory_space<vmem>>, %arg9: memref<1x128xf32, #tpu.memory_space<vmem>>, %arg10: memref<512x128xbf16, #tpu.memory_space<vmem>>, %arg11: memref<16x128xf32, #tpu.memory_space<vmem>>) attributes {dimension_semantics = [#tpu.dimension_semantics<parallel>], iteration_bounds = array<i64: 4>, scalar_prefetch = 0 : i64, scratch_operands = 0 : i64, tpu.core_type = #tpu.core_type<tc>, window_params = [{transform_indices = @transform_0, window_bounds = array<i64: 16, 128>}, {transform_indices = @transform_1, window_bounds = array<i64: 16, 128>}, {pipeline_mode = #tpu.pipeline_mode<synchronous>, transform_indices = @transform_2, window_bounds = array<i64: 128, 128>}, {pipeline_mode = #tpu.pipeline_mode<synchronous>, transform_indices = @transform_3, window_bounds = array<i64: 4, 128>}, {pipeline_mode = #tpu.pipeline_mode<synchronous>, transform_indices = @transform_4, window_bounds = array<i64: 128, 128>}, {pipeline_mode = #tpu.pipeline_mode<synchronous>, transform_indices = @transform_5, window_bounds = array<i64: 128, 512>}, {pipeline_mode = #tpu.pipeline_mode<synchronous>, transform_indices = @transform_6, window_bounds = array<i64: 1, 512>}, {pipeline_mode = #tpu.pipeline_mode<synchronous>, transform_indices = @transform_7, window_bounds = array<i64: 1, 128, 128>}, {pipeline_mode = #tpu.pipeline_mode<synchronous>, transform_indices = @transform_8, window_bounds = array<i64: 1, 128>}, {pipeline_mode = #tpu.pipeline_mode<synchronous>, transform_indices = @transform_9, window_bounds = array<i64: 512, 128>}, {transform_indices = @transform_10, window_bounds = array<i64: 16, 128>}]} {
    %c0 = arith.constant 0 : index
    %c0_0 = arith.constant 0 : index
    %0 = vector.load %arg1[%c0, %c0_0] : memref<16x128xf32, #tpu.memory_space<vmem>>, vector<16x128xf32>
    %c0_1 = arith.constant 0 : index
    %c0_2 = arith.constant 0 : index
    %1 = vector.load %arg4[%c0_1, %c0_2] : memref<4x128xf32, #tpu.memory_space<vmem>>, vector<4x128xf32>
    %2 = vector.extract_strided_slice %1 {offsets = [0, 0], sizes = [1, 128], strides = [1, 1]} : vector<4x128xf32> to vector<1x128xf32>
    %3 = vector.extract_strided_slice %1 {offsets = [1, 0], sizes = [1, 128], strides = [1, 1]} : vector<4x128xf32> to vector<1x128xf32>
    %4 = vector.extract_strided_slice %1 {offsets = [2, 0], sizes = [1, 128], strides = [1, 1]} : vector<4x128xf32> to vector<1x128xf32>
    %5 = vector.extract_strided_slice %1 {offsets = [3, 0], sizes = [1, 128], strides = [1, 1]} : vector<4x128xf32> to vector<1x128xf32>
    %c0_3 = arith.constant 0 : index
    %c0_4 = arith.constant 0 : index
    %6 = vector.load %arg2[%c0_3, %c0_4] : memref<16x128xbf16, #tpu.memory_space<vmem>>, vector<16x128xbf16>
    %c0_5 = arith.constant 0 : index
    %c0_6 = arith.constant 0 : index
    %7 = vector.load %arg3[%c0_5, %c0_6] : memref<128x128xbf16, #tpu.memory_space<vmem>>, vector<128x128xbf16>
    %cst = arith.constant dense<0.000000e+00> : vector<16x128xf32>
    %8 = tpu.matmul %6, %7, %cst {dimension_numbers = #tpu.dot_dimension_numbers<[1], [0], [0], [1], [0, 0, 1, 1], [], []>} : vector<16x128xbf16>, vector<128x128xbf16>, vector<16x128xf32> -> vector<16x128xf32>
    %9 = arith.addf %0, %8 : vector<16x128xf32>
    %10 = vector.broadcast %2 : vector<1x128xf32> to vector<16x128xf32>
    %11 = arith.addf %9, %10 : vector<16x128xf32>
    %c0_7 = arith.constant 0 : index
    %c0_8 = arith.constant 0 : index
    %12 = vector.load %arg5[%c0_7, %c0_8] : memref<128x128xbf16, #tpu.memory_space<vmem>>, vector<128x128xbf16>
    %13 = arith.truncf %11 : vector<16x128xf32> to vector<16x128xbf16>
    %cst_9 = arith.constant dense<0.000000e+00> : vector<16x128xf32>
    %14 = tpu.matmul %13, %12, %cst_9 {dimension_numbers = #tpu.dot_dimension_numbers<[1], [0], [0], [1], [0, 0, 1, 1], [], []>} : vector<16x128xbf16>, vector<128x128xbf16>, vector<16x128xf32> -> vector<16x128xf32>
    %15 = arith.mulf %11, %11 : vector<16x128xf32>
    %16 = arith.truncf %15 : vector<16x128xf32> to vector<16x128xbf16>
    %cst_10 = arith.constant dense<0.000000e+00> : vector<16x128xf32>
    %17 = tpu.matmul %16, %12, %cst_10 {dimension_numbers = #tpu.dot_dimension_numbers<[1], [0], [0], [1], [0, 0, 1, 1], [], []>} : vector<16x128xbf16>, vector<128x128xbf16>, vector<16x128xf32> -> vector<16x128xf32>
    %18 = arith.mulf %14, %14 : vector<16x128xf32>
    %19 = arith.subf %17, %18 : vector<16x128xf32>
    %cst_11 = arith.constant 0.000000e+00 : f32
    %20 = vector.broadcast %cst_11 : f32 to vector<16x128xf32>
    %21 = arith.maximumf %19, %20 : vector<16x128xf32>
    %22 = arith.subf %11, %14 : vector<16x128xf32>
    %cst_12 = arith.constant 9.99999974E-6 : f32
    %23 = vector.broadcast %cst_12 : f32 to vector<16x128xf32>
    %24 = arith.addf %21, %23 : vector<16x128xf32>
    %25 = math.rsqrt %24 : vector<16x128xf32>
    %26 = arith.mulf %22, %25 : vector<16x128xf32>
    %27 = vector.broadcast %3 : vector<1x128xf32> to vector<16x128xf32>
    %28 = arith.mulf %26, %27 : vector<16x128xf32>
    %29 = vector.broadcast %4 : vector<1x128xf32> to vector<16x128xf32>
    %30 = arith.addf %28, %29 : vector<16x128xf32>
    %31 = arith.truncf %30 : vector<16x128xf32> to vector<16x128xbf16>
    %c0_13 = arith.constant 0 : index
    %c0_14 = arith.constant 0 : index
    %32 = vector.load %arg6[%c0_13, %c0_14] : memref<128x512xbf16, #tpu.memory_space<vmem>>, vector<128x512xbf16>
    %cst_15 = arith.constant dense<0.000000e+00> : vector<16x512xf32>
    %33 = tpu.matmul %31, %32, %cst_15 {dimension_numbers = #tpu.dot_dimension_numbers<[1], [0], [0], [1], [0, 0, 1, 1], [], []>} : vector<16x128xbf16>, vector<128x512xbf16>, vector<16x512xf32> -> vector<16x512xf32>
    %c0_16 = arith.constant 0 : index
    %c0_17 = arith.constant 0 : index
    %34 = vector.load %arg7[%c0_16, %c0_17] : memref<1x512xf32, #tpu.memory_space<vmem>>, vector<1x512xf32>
    %35 = vector.broadcast %34 : vector<1x512xf32> to vector<16x512xf32>
    %36 = arith.addf %33, %35 : vector<16x512xf32>
    %37 = arith.mulf %36, %36 : vector<16x512xf32>
    %38 = arith.mulf %36, %37 : vector<16x512xf32>
    %cst_18 = arith.constant 4.471500e-02 : f32
    %39 = vector.broadcast %cst_18 : f32 to vector<16x512xf32>
    %40 = arith.mulf %39, %38 : vector<16x512xf32>
    %41 = arith.addf %36, %40 : vector<16x512xf32>
    %cst_19 = arith.constant 0.797884583 : f32
    %42 = vector.broadcast %cst_19 : f32 to vector<16x512xf32>
    %43 = arith.mulf %42, %41 : vector<16x512xf32>
    %44 = math.tanh %43 : vector<16x512xf32>
    %cst_20 = arith.constant 1.000000e+00 : f32
    %45 = vector.broadcast %cst_20 : f32 to vector<16x512xf32>
    %46 = arith.addf %45, %44 : vector<16x512xf32>
    %cst_21 = arith.constant 5.000000e-01 : f32
    %47 = vector.broadcast %cst_21 : f32 to vector<16x512xf32>
    %48 = arith.mulf %47, %46 : vector<16x512xf32>
    %49 = arith.mulf %36, %48 : vector<16x512xf32>
    %50 = vector.extract_strided_slice %49 {offsets = [0, 0], sizes = [16, 128], strides = [1, 1]} : vector<16x512xf32> to vector<16x128xf32>
    %51 = vector.extract_strided_slice %49 {offsets = [0, 128], sizes = [16, 128], strides = [1, 1]} : vector<16x512xf32> to vector<16x128xf32>
    %52 = vector.extract_strided_slice %49 {offsets = [0, 256], sizes = [16, 128], strides = [1, 1]} : vector<16x512xf32> to vector<16x128xf32>
    %53 = vector.extract_strided_slice %49 {offsets = [0, 384], sizes = [16, 128], strides = [1, 1]} : vector<16x512xf32> to vector<16x128xf32>
    %c0_22 = arith.constant 0 : index
    %c0_23 = arith.constant 0 : index
    %54 = vector.load %arg9[%c0_22, %c0_23] : memref<1x128xf32, #tpu.memory_space<vmem>>, vector<1x128xf32>
    %55 = arith.truncf %50 : vector<16x128xf32> to vector<16x128xbf16>
    %c0_24 = arith.constant 0 : index
    %c0_25 = arith.constant 0 : index
    %c0_26 = arith.constant 0 : index
    %56 = vector.load %arg8[%c0_24, %c0_25, %c0_26] : memref<1x128x128xbf16, #tpu.memory_space<vmem>>, vector<1x128x128xbf16>
    %57 = vector.shape_cast %56 : vector<1x128x128xbf16> to vector<128x128xbf16>
    %cst_27 = arith.constant dense<0.000000e+00> : vector<16x128xf32>
    %58 = tpu.matmul %55, %57, %cst_27 {dimension_numbers = #tpu.dot_dimension_numbers<[1], [0], [0], [1], [0, 0, 1, 1], [], []>} : vector<16x128xbf16>, vector<128x128xbf16>, vector<16x128xf32> -> vector<16x128xf32>
    %59 = vector.broadcast %54 : vector<1x128xf32> to vector<16x128xf32>
    %60 = arith.addf %58, %59 : vector<16x128xf32>
    %61 = arith.mulf %60, %60 : vector<16x128xf32>
    %62 = arith.mulf %60, %61 : vector<16x128xf32>
    %cst_28 = arith.constant 4.471500e-02 : f32
    %63 = vector.broadcast %cst_28 : f32 to vector<16x128xf32>
    %64 = arith.mulf %63, %62 : vector<16x128xf32>
    %65 = arith.addf %60, %64 : vector<16x128xf32>
    %cst_29 = arith.constant 0.797884583 : f32
    %66 = vector.broadcast %cst_29 : f32 to vector<16x128xf32>
    %67 = arith.mulf %66, %65 : vector<16x128xf32>
    %68 = math.tanh %67 : vector<16x128xf32>
    %cst_30 = arith.constant 1.000000e+00 : f32
    %69 = vector.broadcast %cst_30 : f32 to vector<16x128xf32>
    %70 = arith.addf %69, %68 : vector<16x128xf32>
    %cst_31 = arith.constant 5.000000e-01 : f32
    %71 = vector.broadcast %cst_31 : f32 to vector<16x128xf32>
    %72 = arith.mulf %71, %70 : vector<16x128xf32>
    %73 = arith.mulf %60, %72 : vector<16x128xf32>
    %74 = arith.truncf %51 : vector<16x128xf32> to vector<16x128xbf16>
    %c0_32 = arith.constant 0 : index
    %c0_33 = arith.constant 0 : index
    %c0_34 = arith.constant 0 : index
    %75 = vector.load %arg8[%c0_32, %c0_33, %c0_34] : memref<1x128x128xbf16, #tpu.memory_space<vmem>>, vector<1x128x128xbf16>
    %76 = vector.shape_cast %75 : vector<1x128x128xbf16> to vector<128x128xbf16>
    %cst_35 = arith.constant dense<0.000000e+00> : vector<16x128xf32>
    %77 = tpu.matmul %74, %76, %cst_35 {dimension_numbers = #tpu.dot_dimension_numbers<[1], [0], [0], [1], [0, 0, 1, 1], [], []>} : vector<16x128xbf16>, vector<128x128xbf16>, vector<16x128xf32> -> vector<16x128xf32>
    %78 = vector.broadcast %54 : vector<1x128xf32> to vector<16x128xf32>
    %79 = arith.addf %77, %78 : vector<16x128xf32>
    %80 = arith.mulf %79, %79 : vector<16x128xf32>
    %81 = arith.mulf %79, %80 : vector<16x128xf32>
    %cst_36 = arith.constant 4.471500e-02 : f32
    %82 = vector.broadcast %cst_36 : f32 to vector<16x128xf32>
    %83 = arith.mulf %82, %81 : vector<16x128xf32>
    %84 = arith.addf %79, %83 : vector<16x128xf32>
    %cst_37 = arith.constant 0.797884583 : f32
    %85 = vector.broadcast %cst_37 : f32 to vector<16x128xf32>
    %86 = arith.mulf %85, %84 : vector<16x128xf32>
    %87 = math.tanh %86 : vector<16x128xf32>
    %cst_38 = arith.constant 1.000000e+00 : f32
    %88 = vector.broadcast %cst_38 : f32 to vector<16x128xf32>
    %89 = arith.addf %88, %87 : vector<16x128xf32>
    %cst_39 = arith.constant 5.000000e-01 : f32
    %90 = vector.broadcast %cst_39 : f32 to vector<16x128xf32>
    %91 = arith.mulf %90, %89 : vector<16x128xf32>
    %92 = arith.mulf %79, %91 : vector<16x128xf32>
    %93 = arith.truncf %52 : vector<16x128xf32> to vector<16x128xbf16>
    %c0_40 = arith.constant 0 : index
    %c0_41 = arith.constant 0 : index
    %c0_42 = arith.constant 0 : index
    %94 = vector.load %arg8[%c0_40, %c0_41, %c0_42] : memref<1x128x128xbf16, #tpu.memory_space<vmem>>, vector<1x128x128xbf16>
    %95 = vector.shape_cast %94 : vector<1x128x128xbf16> to vector<128x128xbf16>
    %cst_43 = arith.constant dense<0.000000e+00> : vector<16x128xf32>
    %96 = tpu.matmul %93, %95, %cst_43 {dimension_numbers = #tpu.dot_dimension_numbers<[1], [0], [0], [1], [0, 0, 1, 1], [], []>} : vector<16x128xbf16>, vector<128x128xbf16>, vector<16x128xf32> -> vector<16x128xf32>
    %97 = vector.broadcast %54 : vector<1x128xf32> to vector<16x128xf32>
    %98 = arith.addf %96, %97 : vector<16x128xf32>
    %99 = arith.mulf %98, %98 : vector<16x128xf32>
    %100 = arith.mulf %98, %99 : vector<16x128xf32>
    %cst_44 = arith.constant 4.471500e-02 : f32
    %101 = vector.broadcast %cst_44 : f32 to vector<16x128xf32>
    %102 = arith.mulf %101, %100 : vector<16x128xf32>
    %103 = arith.addf %98, %102 : vector<16x128xf32>
    %cst_45 = arith.constant 0.797884583 : f32
    %104 = vector.broadcast %cst_45 : f32 to vector<16x128xf32>
    %105 = arith.mulf %104, %103 : vector<16x128xf32>
    %106 = math.tanh %105 : vector<16x128xf32>
    %cst_46 = arith.constant 1.000000e+00 : f32
    %107 = vector.broadcast %cst_46 : f32 to vector<16x128xf32>
    %108 = arith.addf %107, %106 : vector<16x128xf32>
    %cst_47 = arith.constant 5.000000e-01 : f32
    %109 = vector.broadcast %cst_47 : f32 to vector<16x128xf32>
    %110 = arith.mulf %109, %108 : vector<16x128xf32>
    %111 = arith.mulf %98, %110 : vector<16x128xf32>
    %112 = arith.truncf %53 : vector<16x128xf32> to vector<16x128xbf16>
    %c0_48 = arith.constant 0 : index
    %c0_49 = arith.constant 0 : index
    %c0_50 = arith.constant 0 : index
    %113 = vector.load %arg8[%c0_48, %c0_49, %c0_50] : memref<1x128x128xbf16, #tpu.memory_space<vmem>>, vector<1x128x128xbf16>
    %114 = vector.shape_cast %113 : vector<1x128x128xbf16> to vector<128x128xbf16>
    %cst_51 = arith.constant dense<0.000000e+00> : vector<16x128xf32>
    %115 = tpu.matmul %112, %114, %cst_51 {dimension_numbers = #tpu.dot_dimension_numbers<[1], [0], [0], [1], [0, 0, 1, 1], [], []>} : vector<16x128xbf16>, vector<128x128xbf16>, vector<16x128xf32> -> vector<16x128xf32>
    %116 = vector.broadcast %54 : vector<1x128xf32> to vector<16x128xf32>
    %117 = arith.addf %115, %116 : vector<16x128xf32>
    %118 = arith.mulf %117, %117 : vector<16x128xf32>
    %119 = arith.mulf %117, %118 : vector<16x128xf32>
    %cst_52 = arith.constant 4.471500e-02 : f32
    %120 = vector.broadcast %cst_52 : f32 to vector<16x128xf32>
    %121 = arith.mulf %120, %119 : vector<16x128xf32>
    %122 = arith.addf %117, %121 : vector<16x128xf32>
    %cst_53 = arith.constant 0.797884583 : f32
    %123 = vector.broadcast %cst_53 : f32 to vector<16x128xf32>
    %124 = arith.mulf %123, %122 : vector<16x128xf32>
    %125 = math.tanh %124 : vector<16x128xf32>
    %cst_54 = arith.constant 1.000000e+00 : f32
    %126 = vector.broadcast %cst_54 : f32 to vector<16x128xf32>
    %127 = arith.addf %126, %125 : vector<16x128xf32>
    %cst_55 = arith.constant 5.000000e-01 : f32
    %128 = vector.broadcast %cst_55 : f32 to vector<16x128xf32>
    %129 = arith.mulf %128, %127 : vector<16x128xf32>
    %130 = arith.mulf %117, %129 : vector<16x128xf32>
    %131 = tpu.concatenate %73, %92, %111, %130 in 1 : vector<16x128xf32>, vector<16x128xf32>, vector<16x128xf32>, vector<16x128xf32> -> vector<16x512xf32>
    %132 = arith.truncf %131 : vector<16x512xf32> to vector<16x512xbf16>
    %c0_56 = arith.constant 0 : index
    %c0_57 = arith.constant 0 : index
    %133 = vector.load %arg10[%c0_56, %c0_57] : memref<512x128xbf16, #tpu.memory_space<vmem>>, vector<512x128xbf16>
    %cst_58 = arith.constant dense<0.000000e+00> : vector<16x128xf32>
    %134 = tpu.matmul %132, %133, %cst_58 {dimension_numbers = #tpu.dot_dimension_numbers<[1], [0], [0], [1], [0, 0, 1, 1], [], []>} : vector<16x512xbf16>, vector<512x128xbf16>, vector<16x128xf32> -> vector<16x128xf32>
    %135 = vector.broadcast %5 : vector<1x128xf32> to vector<16x128xf32>
    %136 = arith.addf %134, %135 : vector<16x128xf32>
    %137 = arith.addf %11, %136 : vector<16x128xf32>
    %c0_59 = arith.constant 0 : index
    %c0_60 = arith.constant 0 : index
    %138 = vector.load %arg11[%c0_59, %c0_60] : memref<16x128xf32, #tpu.memory_space<vmem>>, vector<16x128xf32>
    tpu.vector_store %arg11[%c0_59, %c0_60], %137 {strides = array<i32>} : memref<16x128xf32, #tpu.memory_space<vmem>>, vector<16x128xf32>,
    return
  }
  func.func @transform_0(%arg0: i32) -> (i32, i32) {
    %c0_i32 = arith.constant 0 : i32
    %c0_i32_0 = arith.constant 0 : i32
    return %arg0, %c0_i32 : i32, i32
  }
  func.func @transform_1(%arg0: i32) -> (i32, i32) {
    %c0_i32 = arith.constant 0 : i32
    %c0_i32_0 = arith.constant 0 : i32
    return %arg0, %c0_i32 : i32, i32
  }
  func.func @transform_2(%arg0: i32) -> (i32, i32) {
    %c0_i32 = arith.constant 0 : i32
    %c0_i32_0 = arith.constant 0 : i32
    %c0_i32_1 = arith.constant 0 : i32
    return %c0_i32, %c0_i32_0 : i32, i32
  }
  func.func @transform_3(%arg0: i32) -> (i32, i32) {
    %c0_i32 = arith.constant 0 : i32
    %c0_i32_0 = arith.constant 0 : i32
    %c0_i32_1 = arith.constant 0 : i32
    return %c0_i32, %c0_i32_0 : i32, i32
  }
  func.func @transform_4(%arg0: i32) -> (i32, i32) {
    %c0_i32 = arith.constant 0 : i32
    %c0_i32_0 = arith.constant 0 : i32
    %c0_i32_1 = arith.constant 0 : i32
    return %c0_i32, %c0_i32_0 : i32, i32
  }
  func.func @transform_5(%arg0: i32) -> (i32, i32) {
    %c0_i32 = arith.constant 0 : i32
    %c0_i32_0 = arith.constant 0 : i32
    %c0_i32_1 = arith.constant 0 : i32
    return %c0_i32, %c0_i32_0 : i32, i32
  }
  func.func @transform_6(%arg0: i32) -> (i32, i32) {
    %c0_i32 = arith.constant 0 : i32
    %c0_i32_0 = arith.constant 0 : i32
    %c0_i32_1 = arith.constant 0 : i32
    return %c0_i32, %c0_i32_0 : i32, i32
  }
  func.func @transform_7(%arg0: i32) -> (i32, i32, i32) {
    %c0_i32 = arith.constant 0 : i32
    %c0_i32_0 = arith.constant 0 : i32
    %c0_i32_1 = arith.constant 0 : i32
    %c0_i32_2 = arith.constant 0 : i32
    return %c0_i32, %c0_i32_0, %c0_i32_1 : i32, i32, i32
  }
  func.func @transform_8(%arg0: i32) -> (i32, i32) {
    %c0_i32 = arith.constant 0 : i32
    %c0_i32_0 = arith.constant 0 : i32
    %c0_i32_1 = arith.constant 0 : i32
    return %c0_i32, %c0_i32_0 : i32, i32
  }
  func.func @transform_9(%arg0: i32) -> (i32, i32) {
    %c0_i32 = arith.constant 0 : i32
    %c0_i32_0 = arith.constant 0 : i32
    %c0_i32_1 = arith.constant 0 : i32
    return %c0_i32, %c0_i32_0 : i32, i32
  }
  func.func @transform_10(%arg0: i32) -> (i32, i32) {
    %c0_i32 = arith.constant 0 : i32
    %c0_i32_0 = arith.constant 0 : i32
    return %arg0, %c0_i32 : i32, i32
  }
}

module attributes {stable_mosaic.version = 11 : i64} {
  func.func @_residual_kernel(%arg0: i32, %arg1: memref<16x128xf32, #tpu.memory_space<vmem>>, %arg2: memref<16x128xbf16, #tpu.memory_space<vmem>>, %arg3: memref<128x128xbf16, #tpu.memory_space<vmem>>, %arg4: memref<4x128xf32, #tpu.memory_space<vmem>>, %arg5: memref<128x128xbf16, #tpu.memory_space<vmem>>, %arg6: memref<128x512xbf16, #tpu.memory_space<vmem>>, %arg7: memref<1x512xf32, #tpu.memory_space<vmem>>, %arg8: memref<1x128x128xbf16, #tpu.memory_space<vmem>>, %arg9: memref<1x128xf32, #tpu.memory_space<vmem>>, %arg10: memref<512x128xbf16, #tpu.memory_space<vmem>>, %arg11: memref<16x128xf32, #tpu.memory_space<vmem>>) attributes {dimension_semantics = [#tpu.dimension_semantics<parallel>], iteration_bounds = array<i64: 4>, scalar_prefetch = 0 : i64, scratch_operands = 0 : i64, tpu.core_type = #tpu.core_type<tc>, window_params = [{transform_indices = @transform_0, window_bounds = array<i64: 16, 128>}, {transform_indices = @transform_1, window_bounds = array<i64: 16, 128>}, {pipeline_mode = #tpu.pipeline_mode<synchronous>, transform_indices = @transform_2, window_bounds = array<i64: 128, 128>}, {pipeline_mode = #tpu.pipeline_mode<synchronous>, transform_indices = @transform_3, window_bounds = array<i64: 4, 128>}, {pipeline_mode = #tpu.pipeline_mode<synchronous>, transform_indices = @transform_4, window_bounds = array<i64: 128, 128>}, {pipeline_mode = #tpu.pipeline_mode<synchronous>, transform_indices = @transform_5, window_bounds = array<i64: 128, 512>}, {pipeline_mode = #tpu.pipeline_mode<synchronous>, transform_indices = @transform_6, window_bounds = array<i64: 1, 512>}, {pipeline_mode = #tpu.pipeline_mode<synchronous>, transform_indices = @transform_7, window_bounds = array<i64: 1, 128, 128>}, {pipeline_mode = #tpu.pipeline_mode<synchronous>, transform_indices = @transform_8, window_bounds = array<i64: 1, 128>}, {pipeline_mode = #tpu.pipeline_mode<synchronous>, transform_indices = @transform_9, window_bounds = array<i64: 512, 128>}, {transform_indices = @transform_10, window_bounds = array<i64: 16, 128>}]} {
    %c0 = arith.constant 0 : index
    %c0_0 = arith.constant 0 : index
    %0 = vector.load %arg1[%c0, %c0_0] : memref<16x128xf32, #tpu.memory_space<vmem>>, vector<16x128xf32>
    %c0_1 = arith.constant 0 : index
    %c0_2 = arith.constant 0 : index
    %1 = vector.load %arg4[%c0_1, %c0_2] : memref<4x128xf32, #tpu.memory_space<vmem>>, vector<4x128xf32>
    %2 = vector.extract_strided_slice %1 {offsets = [0, 0], sizes = [1, 128], strides = [1, 1]} : vector<4x128xf32> to vector<1x128xf32>
    %3 = vector.extract_strided_slice %1 {offsets = [1, 0], sizes = [1, 128], strides = [1, 1]} : vector<4x128xf32> to vector<1x128xf32>
    %4 = vector.extract_strided_slice %1 {offsets = [2, 0], sizes = [1, 128], strides = [1, 1]} : vector<4x128xf32> to vector<1x128xf32>
    %5 = vector.extract_strided_slice %1 {offsets = [3, 0], sizes = [1, 128], strides = [1, 1]} : vector<4x128xf32> to vector<1x128xf32>
    %c0_3 = arith.constant 0 : index
    %c0_4 = arith.constant 0 : index
    %6 = vector.load %arg2[%c0_3, %c0_4] : memref<16x128xbf16, #tpu.memory_space<vmem>>, vector<16x128xbf16>
    %c0_5 = arith.constant 0 : index
    %c0_6 = arith.constant 0 : index
    %7 = vector.load %arg3[%c0_5, %c0_6] : memref<128x128xbf16, #tpu.memory_space<vmem>>, vector<128x128xbf16>
    %cst = arith.constant dense<0.000000e+00> : vector<16x128xf32>
    %8 = tpu.matmul %6, %7, %cst {dimension_numbers = #tpu.dot_dimension_numbers<[1], [0], [0], [1], [0, 0, 1, 1], [], []>} : vector<16x128xbf16>, vector<128x128xbf16>, vector<16x128xf32> -> vector<16x128xf32>
    %9 = arith.addf %0, %8 : vector<16x128xf32>
    %10 = vector.broadcast %2 : vector<1x128xf32> to vector<16x128xf32>
    %11 = arith.addf %9, %10 : vector<16x128xf32>
    %c0_7 = arith.constant 0 : index
    %c0_8 = arith.constant 0 : index
    %12 = vector.load %arg5[%c0_7, %c0_8] : memref<128x128xbf16, #tpu.memory_space<vmem>>, vector<128x128xbf16>
    %13 = arith.truncf %11 : vector<16x128xf32> to vector<16x128xbf16>
    %cst_9 = arith.constant dense<0.000000e+00> : vector<16x128xf32>
    %14 = tpu.matmul %13, %12, %cst_9 {dimension_numbers = #tpu.dot_dimension_numbers<[1], [0], [0], [1], [0, 0, 1, 1], [], []>} : vector<16x128xbf16>, vector<128x128xbf16>, vector<16x128xf32> -> vector<16x128xf32>
    %15 = arith.mulf %11, %11 : vector<16x128xf32>
    %16 = arith.truncf %15 : vector<16x128xf32> to vector<16x128xbf16>
    %cst_10 = arith.constant dense<0.000000e+00> : vector<16x128xf32>
    %17 = tpu.matmul %16, %12, %cst_10 {dimension_numbers = #tpu.dot_dimension_numbers<[1], [0], [0], [1], [0, 0, 1, 1], [], []>} : vector<16x128xbf16>, vector<128x128xbf16>, vector<16x128xf32> -> vector<16x128xf32>
    %18 = arith.mulf %14, %14 : vector<16x128xf32>
    %19 = arith.subf %17, %18 : vector<16x128xf32>
    %cst_11 = arith.constant 0.000000e+00 : f32
    %20 = vector.broadcast %cst_11 : f32 to vector<16x128xf32>
    %21 = arith.maximumf %19, %20 : vector<16x128xf32>
    %22 = arith.subf %11, %14 : vector<16x128xf32>
    %cst_12 = arith.constant 9.99999974E-6 : f32
    %23 = vector.broadcast %cst_12 : f32 to vector<16x128xf32>
    %24 = arith.addf %21, %23 : vector<16x128xf32>
    %25 = math.rsqrt %24 : vector<16x128xf32>
    %26 = arith.mulf %22, %25 : vector<16x128xf32>
    %27 = vector.broadcast %3 : vector<1x128xf32> to vector<16x128xf32>
    %28 = arith.mulf %26, %27 : vector<16x128xf32>
    %29 = vector.broadcast %4 : vector<1x128xf32> to vector<16x128xf32>
    %30 = arith.addf %28, %29 : vector<16x128xf32>
    %31 = arith.truncf %30 : vector<16x128xf32> to vector<16x128xbf16>
    %c0_13 = arith.constant 0 : index
    %c0_14 = arith.constant 0 : index
    %32 = vector.load %arg6[%c0_13, %c0_14] : memref<128x512xbf16, #tpu.memory_space<vmem>>, vector<128x512xbf16>
    %cst_15 = arith.constant dense<0.000000e+00> : vector<16x512xf32>
    %33 = tpu.matmul %31, %32, %cst_15 {dimension_numbers = #tpu.dot_dimension_numbers<[1], [0], [0], [1], [0, 0, 1, 1], [], []>} : vector<16x128xbf16>, vector<128x512xbf16>, vector<16x512xf32> -> vector<16x512xf32>
    %c0_16 = arith.constant 0 : index
    %c0_17 = arith.constant 0 : index
    %34 = vector.load %arg7[%c0_16, %c0_17] : memref<1x512xf32, #tpu.memory_space<vmem>>, vector<1x512xf32>
    %35 = vector.broadcast %34 : vector<1x512xf32> to vector<16x512xf32>
    %36 = arith.addf %33, %35 : vector<16x512xf32>
    %37 = arith.mulf %36, %36 : vector<16x512xf32>
    %38 = arith.mulf %36, %37 : vector<16x512xf32>
    %cst_18 = arith.constant 4.471500e-02 : f32
    %39 = vector.broadcast %cst_18 : f32 to vector<16x512xf32>
    %40 = arith.mulf %39, %38 : vector<16x512xf32>
    %41 = arith.addf %36, %40 : vector<16x512xf32>
    %cst_19 = arith.constant 0.797884583 : f32
    %42 = vector.broadcast %cst_19 : f32 to vector<16x512xf32>
    %43 = arith.mulf %42, %41 : vector<16x512xf32>
    %44 = math.tanh %43 : vector<16x512xf32>
    %cst_20 = arith.constant 1.000000e+00 : f32
    %45 = vector.broadcast %cst_20 : f32 to vector<16x512xf32>
    %46 = arith.addf %45, %44 : vector<16x512xf32>
    %cst_21 = arith.constant 5.000000e-01 : f32
    %47 = vector.broadcast %cst_21 : f32 to vector<16x512xf32>
    %48 = arith.mulf %47, %46 : vector<16x512xf32>
    %49 = arith.mulf %36, %48 : vector<16x512xf32>
    %50 = vector.extract_strided_slice %49 {offsets = [0, 0], sizes = [16, 128], strides = [1, 1]} : vector<16x512xf32> to vector<16x128xf32>
    %51 = vector.extract_strided_slice %49 {offsets = [0, 128], sizes = [16, 128], strides = [1, 1]} : vector<16x512xf32> to vector<16x128xf32>
    %52 = vector.extract_strided_slice %49 {offsets = [0, 256], sizes = [16, 128], strides = [1, 1]} : vector<16x512xf32> to vector<16x128xf32>
    %53 = vector.extract_strided_slice %49 {offsets = [0, 384], sizes = [16, 128], strides = [1, 1]} : vector<16x512xf32> to vector<16x128xf32>
    %c0_22 = arith.constant 0 : index
    %c0_23 = arith.constant 0 : index
    %54 = vector.load %arg9[%c0_22, %c0_23] : memref<1x128xf32, #tpu.memory_space<vmem>>, vector<1x128xf32>
    %55 = arith.truncf %50 : vector<16x128xf32> to vector<16x128xbf16>
    %c0_24 = arith.constant 0 : index
    %c0_25 = arith.constant 0 : index
    %c0_26 = arith.constant 0 : index
    %56 = vector.load %arg8[%c0_24, %c0_25, %c0_26] : memref<1x128x128xbf16, #tpu.memory_space<vmem>>, vector<1x128x128xbf16>
    %57 = vector.shape_cast %56 : vector<1x128x128xbf16> to vector<128x128xbf16>
    %cst_27 = arith.constant dense<0.000000e+00> : vector<16x128xf32>
    %58 = tpu.matmul %55, %57, %cst_27 {dimension_numbers = #tpu.dot_dimension_numbers<[1], [0], [0], [1], [0, 0, 1, 1], [], []>} : vector<16x128xbf16>, vector<128x128xbf16>, vector<16x128xf32> -> vector<16x128xf32>
    %59 = vector.broadcast %54 : vector<1x128xf32> to vector<16x128xf32>
    %60 = arith.addf %58, %59 : vector<16x128xf32>
    %61 = arith.mulf %60, %60 : vector<16x128xf32>
    %62 = arith.mulf %60, %61 : vector<16x128xf32>
    %cst_28 = arith.constant 4.471500e-02 : f32
    %63 = vector.broadcast %cst_28 : f32 to vector<16x128xf32>
    %64 = arith.mulf %63, %62 : vector<16x128xf32>
    %65 = arith.addf %60, %64 : vector<16x128xf32>
    %cst_29 = arith.constant 0.797884583 : f32
    %66 = vector.broadcast %cst_29 : f32 to vector<16x128xf32>
    %67 = arith.mulf %66, %65 : vector<16x128xf32>
    %68 = math.tanh %67 : vector<16x128xf32>
    %cst_30 = arith.constant 1.000000e+00 : f32
    %69 = vector.broadcast %cst_30 : f32 to vector<16x128xf32>
    %70 = arith.addf %69, %68 : vector<16x128xf32>
    %cst_31 = arith.constant 5.000000e-01 : f32
    %71 = vector.broadcast %cst_31 : f32 to vector<16x128xf32>
    %72 = arith.mulf %71, %70 : vector<16x128xf32>
    %73 = arith.mulf %60, %72 : vector<16x128xf32>
    %74 = arith.truncf %51 : vector<16x128xf32> to vector<16x128xbf16>
    %c0_32 = arith.constant 0 : index
    %c0_33 = arith.constant 0 : index
    %c0_34 = arith.constant 0 : index
    %75 = vector.load %arg8[%c0_32, %c0_33, %c0_34] : memref<1x128x128xbf16, #tpu.memory_space<vmem>>, vector<1x128x128xbf16>
    %76 = vector.shape_cast %75 : vector<1x128x128xbf16> to vector<128x128xbf16>
    %cst_35 = arith.constant dense<0.000000e+00> : vector<16x128xf32>
    %77 = tpu.matmul %74, %76, %cst_35 {dimension_numbers = #tpu.dot_dimension_numbers<[1], [0], [0], [1], [0, 0, 1, 1], [], []>} : vector<16x128xbf16>, vector<128x128xbf16>, vector<16x128xf32> -> vector<16x128xf32>
    %78 = vector.broadcast %54 : vector<1x128xf32> to vector<16x128xf32>
    %79 = arith.addf %77, %78 : vector<16x128xf32>
    %80 = arith.mulf %79, %79 : vector<16x128xf32>
    %81 = arith.mulf %79, %80 : vector<16x128xf32>
    %cst_36 = arith.constant 4.471500e-02 : f32
    %82 = vector.broadcast %cst_36 : f32 to vector<16x128xf32>
    %83 = arith.mulf %82, %81 : vector<16x128xf32>
    %84 = arith.addf %79, %83 : vector<16x128xf32>
    %cst_37 = arith.constant 0.797884583 : f32
    %85 = vector.broadcast %cst_37 : f32 to vector<16x128xf32>
    %86 = arith.mulf %85, %84 : vector<16x128xf32>
    %87 = math.tanh %86 : vector<16x128xf32>
    %cst_38 = arith.constant 1.000000e+00 : f32
    %88 = vector.broadcast %cst_38 : f32 to vector<16x128xf32>
    %89 = arith.addf %88, %87 : vector<16x128xf32>
    %cst_39 = arith.constant 5.000000e-01 : f32
    %90 = vector.broadcast %cst_39 : f32 to vector<16x128xf32>
    %91 = arith.mulf %90, %89 : vector<16x128xf32>
    %92 = arith.mulf %79, %91 : vector<16x128xf32>
    %93 = arith.truncf %52 : vector<16x128xf32> to vector<16x128xbf16>
    %c0_40 = arith.constant 0 : index
    %c0_41 = arith.constant 0 : index
    %c0_42 = arith.constant 0 : index
    %94 = vector.load %arg8[%c0_40, %c0_41, %c0_42] : memref<1x128x128xbf16, #tpu.memory_space<vmem>>, vector<1x128x128xbf16>
    %95 = vector.shape_cast %94 : vector<1x128x128xbf16> to vector<128x128xbf16>
    %cst_43 = arith.constant dense<0.000000e+00> : vector<16x128xf32>
    %96 = tpu.matmul %93, %95, %cst_43 {dimension_numbers = #tpu.dot_dimension_numbers<[1], [0], [0], [1], [0, 0, 1, 1], [], []>} : vector<16x128xbf16>, vector<128x128xbf16>, vector<16x128xf32> -> vector<16x128xf32>
    %97 = vector.broadcast %54 : vector<1x128xf32> to vector<16x128xf32>
    %98 = arith.addf %96, %97 : vector<16x128xf32>
    %99 = arith.mulf %98, %98 : vector<16x128xf32>
    %100 = arith.mulf %98, %99 : vector<16x128xf32>
    %cst_44 = arith.constant 4.471500e-02 : f32
    %101 = vector.broadcast %cst_44 : f32 to vector<16x128xf32>
    %102 = arith.mulf %101, %100 : vector<16x128xf32>
    %103 = arith.addf %98, %102 : vector<16x128xf32>
    %cst_45 = arith.constant 0.797884583 : f32
    %104 = vector.broadcast %cst_45 : f32 to vector<16x128xf32>
    %105 = arith.mulf %104, %103 : vector<16x128xf32>
    %106 = math.tanh %105 : vector<16x128xf32>
    %cst_46 = arith.constant 1.000000e+00 : f32
    %107 = vector.broadcast %cst_46 : f32 to vector<16x128xf32>
    %108 = arith.addf %107, %106 : vector<16x128xf32>
    %cst_47 = arith.constant 5.000000e-01 : f32
    %109 = vector.broadcast %cst_47 : f32 to vector<16x128xf32>
    %110 = arith.mulf %109, %108 : vector<16x128xf32>
    %111 = arith.mulf %98, %110 : vector<16x128xf32>
    %112 = arith.truncf %53 : vector<16x128xf32> to vector<16x128xbf16>
    %c0_48 = arith.constant 0 : index
    %c0_49 = arith.constant 0 : index
    %c0_50 = arith.constant 0 : index
    %113 = vector.load %arg8[%c0_48, %c0_49, %c0_50] : memref<1x128x128xbf16, #tpu.memory_space<vmem>>, vector<1x128x128xbf16>
    %114 = vector.shape_cast %113 : vector<1x128x128xbf16> to vector<128x128xbf16>
    %cst_51 = arith.constant dense<0.000000e+00> : vector<16x128xf32>
    %115 = tpu.matmul %112, %114, %cst_51 {dimension_numbers = #tpu.dot_dimension_numbers<[1], [0], [0], [1], [0, 0, 1, 1], [], []>} : vector<16x128xbf16>, vector<128x128xbf16>, vector<16x128xf32> -> vector<16x128xf32>
    %116 = vector.broadcast %54 : vector<1x128xf32> to vector<16x128xf32>
    %117 = arith.addf %115, %116 : vector<16x128xf32>
    %118 = arith.mulf %117, %117 : vector<16x128xf32>
    %119 = arith.mulf %117, %118 : vector<16x128xf32>
    %cst_52 = arith.constant 4.471500e-02 : f32
    %120 = vector.broadcast %cst_52 : f32 to vector<16x128xf32>
    %121 = arith.mulf %120, %119 : vector<16x128xf32>
    %122 = arith.addf %117, %121 : vector<16x128xf32>
    %cst_53 = arith.constant 0.797884583 : f32
    %123 = vector.broadcast %cst_53 : f32 to vector<16x128xf32>
    %124 = arith.mulf %123, %122 : vector<16x128xf32>
    %125 = math.tanh %124 : vector<16x128xf32>
    %cst_54 = arith.constant 1.000000e+00 : f32
    %126 = vector.broadcast %cst_54 : f32 to vector<16x128xf32>
    %127 = arith.addf %126, %125 : vector<16x128xf32>
    %cst_55 = arith.constant 5.000000e-01 : f32
    %128 = vector.broadcast %cst_55 : f32 to vector<16x128xf32>
    %129 = arith.mulf %128, %127 : vector<16x128xf32>
    %130 = arith.mulf %117, %129 : vector<16x128xf32>
    %131 = tpu.concatenate %73, %92, %111, %130 in 1 : vector<16x128xf32>, vector<16x128xf32>, vector<16x128xf32>, vector<16x128xf32> -> vector<16x512xf32>
    %132 = arith.truncf %131 : vector<16x512xf32> to vector<16x512xbf16>
    %c0_56 = arith.constant 0 : index
    %c0_57 = arith.constant 0 : index
    %133 = vector.load %arg10[%c0_56, %c0_57] : memref<512x128xbf16, #tpu.memory_space<vmem>>, vector<512x128xbf16>
    %cst_58 = arith.constant dense<0.000000e+00> : vector<16x128xf32>
    %134 = tpu.matmul %132, %133, %cst_58 {dimension_numbers = #tpu.dot_dimension_numbers<[1], [0], [0], [1], [0, 0, 1, 1], [], []>} : vector<16x512xbf16>, vector<512x128xbf16>, vector<16x128xf32> -> vector<16x128xf32>
    %135 = vector.broadcast %5 : vector<1x128xf32> to vector<16x128xf32>
    %136 = arith.addf %134, %135 : vector<16x128xf32>
    %137 = arith.addf %11, %136 : vector<16x128xf32>
    %c0_59 = arith.constant 0 : index
    %c0_60 = arith.constant 0 : index
    %138 = vector.load %arg11[%c0_59, %c0_60] : memref<16x128xf32, #tpu.memory_space<vmem>>, vector<16x128xf32>
    tpu.vector_store %arg11[%c0_59, %c0_60], %137 {strides = array<i32>} : memref<16x128xf32, #tpu.memory_space<vmem>>, vector<16x128xf32>,
    return
  }
  func.func @transform_0(%arg0: i32) -> (i32, i32) {
    %c0_i32 = arith.constant 0 : i32
    %c0_i32_0 = arith.constant 0 : i32
    return %arg0, %c0_i32 : i32, i32
  }
  func.func @transform_1(%arg0: i32) -> (i32, i32) {
    %c0_i32 = arith.constant 0 : i32
    %c0_i32_0 = arith.constant 0 : i32
    return %arg0, %c0_i32 : i32, i32
  }
  func.func @transform_2(%arg0: i32) -> (i32, i32) {
    %c0_i32 = arith.constant 0 : i32
    %c0_i32_0 = arith.constant 0 : i32
    %c0_i32_1 = arith.constant 0 : i32
    return %c0_i32, %c0_i32_0 : i32, i32
  }
  func.func @transform_3(%arg0: i32) -> (i32, i32) {
    %c0_i32 = arith.constant 0 : i32
    %c0_i32_0 = arith.constant 0 : i32
    %c0_i32_1 = arith.constant 0 : i32
    return %c0_i32, %c0_i32_0 : i32, i32
  }
  func.func @transform_4(%arg0: i32) -> (i32, i32) {
    %c0_i32 = arith.constant 0 : i32
    %c0_i32_0 = arith.constant 0 : i32
    %c0_i32_1 = arith.constant 0 : i32
    return %c0_i32, %c0_i32_0 : i32, i32
  }
  func.func @transform_5(%arg0: i32) -> (i32, i32) {
    %c0_i32 = arith.constant 0 : i32
    %c0_i32_0 = arith.constant 0 : i32
    %c0_i32_1 = arith.constant 0 : i32
    return %c0_i32, %c0_i32_0 : i32, i32
  }
  func.func @transform_6(%arg0: i32) -> (i32, i32) {
    %c0_i32 = arith.constant 0 : i32
    %c0_i32_0 = arith.constant 0 : i32
    %c0_i32_1 = arith.constant 0 : i32
    return %c0_i32, %c0_i32_0 : i32, i32
  }
  func.func @transform_7(%arg0: i32) -> (i32, i32, i32) {
    %c0_i32 = arith.constant 0 : i32
    %c0_i32_0 = arith.constant 0 : i32
    %c0_i32_1 = arith.constant 0 : i32
    %c0_i32_2 = arith.constant 0 : i32
    return %c0_i32, %c0_i32_0, %c0_i32_1 : i32, i32, i32
  }
  func.func @transform_8(%arg0: i32) -> (i32, i32) {
    %c0_i32 = arith.constant 0 : i32
    %c0_i32_0 = arith.constant 0 : i32
    %c0_i32_1 = arith.constant 0 : i32
    return %c0_i32, %c0_i32_0 : i32, i32
  }
  func.func @transform_9(%arg0: i32) -> (i32, i32) {
    %c0_i32 = arith.constant 0 : i32
    %c0_i32_0 = arith.constant 0 : i32
    %c0_i32_1 = arith.constant 0 : i32
    return %c0_i32, %c0_i32_0 : i32, i32
  }
  func.func @transform_10(%arg0: i32) -> (i32, i32) {
    %c0_i32 = arith.constant 0 : i32
    %c0_i32_0 = arith.constant 0 : i32
    return %arg0, %c0_i32 : i32, i32
  }
}

</mosaic_0001>

<bundles_post_ra>
// kernel: tpu_custom_call.1
= control target key start
LH: loop header
LB: loop body
LE: loop exit
PB: predicated region body
PF: predicated region fallthrough
CT: control target
= control target key end

     0   :  { %s3468_s0 = inlined_call_operand.hbm [shape: f32[64,128], index: 0, kind: input, shape index: {}]   ;;  %s3469_s1 = inlined_call_operand.hbm [shape: bf16[64,128], index: 1, kind: input, shape index: {}]   ;;  %s3470_s2 = inlined_call_operand.hbm [shape: bf16[128,128], index: 2, kind: input, shape index: {}]   ;;  %s3471_s3 = inlined_call_operand.vmem [shape: f32[4,128], index: 3, kind: input, shape index: {}]   ;;  %s3472_s4 = inlined_call_operand.hbm [shape: bf16[128,128], index: 4, kind: input, shape index: {}]   ;;  %s3473_s5 = inlined_call_operand.hbm [shape: bf16[128,512], index: 5, kind: input, shape index: {}]   ;;  %s3474_s6 = inlined_call_operand.vmem [shape: f32[1,512], index: 6, kind: input, shape index: {}]   ;;  %s3475_s7 = inlined_call_operand.hbm [shape: bf16[1,128,128], index: 7, kind: input, shape index: {}]   ;;  %s3476_s8 = inlined_call_operand.vmem [shape: f32[1,128], index: 8, kind: input, shape index: {}]   ;;  %s3477_s9 = inlined_call_operand.hbm [shape: bf16[512,128], index: 9, kind: input, shape index: {}]   ;;  %s3478_s10 = inlined_call_operand.hbm [shape: f32[64,128], index: 10, kind: output, shape index: {}]  }
   0x1   :  { %3485 = sst [smem:[#allocation23_spill]] %s3468_s0 }
   0x2   :  { %3486 = sst [smem:[#allocation24_spill]] %s3470_s2 }
   0x3   :  { %3487 = sst [smem:[#allocation25_spill]] %s3472_s4 }
   0x4   :  { %3488 = sst [smem:[#allocation26_spill]] %s3473_s5 }
   0x5   :  { %3489 = sst [smem:[#allocation27_spill]] %s3475_s7 }
   0x6   :  { %3490 = sst [smem:[#allocation28_spill]] %s3477_s9 }
   0x7   :  { %15 = vsyncpa [#allocation3], 0 }
   0x8   :  { %17 = vsyncpa [#allocation3 + $0x1], 0 }
   0x9   :  { %18 = vsyncpa [#allocation6], 0 }
   0xa   :  { %20 = vsyncpa [#allocation6 + $0x1], 0 }
   0xb   :  { %21 = vsyncpa [#allocation9], 0 }
   0xc   :  { %22 = vsyncpa [#allocation12], 0 }
   0xd   :  { %23 = vsyncpa [#allocation4], 0 }
   0xe   :  { %25 = vsyncpa [#allocation4 + $0x1], 0  ;;  %s2949_s13 = smov 0   ;;  %s2951_s14 = smov 0  }
   0xf   :  { %s2953_s15 = smov 0   ;;  %s2955_s16 = smov 0  }
  0x10 LB: > { %3491 = sst [smem:[#allocation21_spill]] %s2869_s15  ;;  %s2875_s17 = smov [#allocation7]   ;;  %s2873_s16 = sphi %s2955_s16, %s3523_s16   ;;  %s2869_s15 = sphi %s2953_s15, %s3522_s15   ;;  %s2865_s14 = sphi %s2951_s14, %s3521_s14   ;;  %s2861_s13 = sphi %s2949_s13, %s3520_s13  }
  0x11   : > { %s294_s18 = sshll.u32 %s2875_s17, 4  ;;  %s2970_s19 = sadd.s32 4294967295, %s2873_s16   ;;  %s295_s18 = int_to_ptr.vmem [resolvable:$true] %s294_s18 }
  0x12   : > { %p1986_p0 = scmp.ge.s32.totalorder %s2873_s16, 1  ;;  %p3481_p1 = scmp.eq.s32.totalorder %s2970_s19, 0 }
  0x13   : > { %p282_p2 = scmp.lt.s32.totalorder %s2873_s16, 5  ;;  %s2876_s21 = smov [#allocation8]  }
  0x14   : > { %s310_s22 = sshll.u32 %s2876_s21, 4  ;;  %s2877_s24 = smov [#allocation11]   ;;  %s2987_s22 = int_to_ptr.vmem [resolvable:$true] %s310_s22 }
  0x15   : > { %p2975_p3 = pnand %p1986_p0, %p282_p2  ;;  %s339_s25 = sshll.u32 %s2877_s24, 4  ;;  %s2989_s25 = int_to_ptr.vmem [resolvable:$true] %s339_s25 }
  0x16   : > { %s2618_s27 = scalar_lea.vmem %s295_s18, 1024  ;;  %p2626_p10 = scmp.lt.s32.totalorder %s295_s18, %s295_s18 }
  0x17   : > { %p2379_p4 = pneg %p2975_p3  ;;  %p2619_p7 = scmp.ne.s32.totalorder %s295_s18, %s2618_s27 }
  0x18   : > { %p2627_p11 = scmp.lt.s32.totalorder %s2618_s27, %s2618_s27 }
  0x19   : > { %p2983_p5 = pnand %p2379_p4, %p3481_p1 }
  0x1a   : > { %p2628_p12 = por %p2627_p11, %p2626_p10 }
  0x1b   : > { %p2993_p6 = pneg %p2983_p5 }
  0x1d   : > { %p2621_p8 = pnand %p2619_p7, %p2993_p6 }
  0x1f   : > { %p2622_p9 = pneg %p2621_p8 }
  0x21   : > { %p2629_p13 = pnand %p2628_p12, %p2622_p9 }
  0x23   : > { %2632 = shalt.err (!%p2629_p13)
}
  0x24   : > { %s3479_s28 = smov 64   ;;  %s3480_s29 = smov 4  }
  0x25   : > { %s3495_s2 = sld [smem:[#allocation24_spill]]  ;;  %s2644_s12 = scalar_lea.vmem %s2987_s22, 1024 }
  0x26   : > { %p2645_p0 = scmp.ne.s32.totalorder %s2987_s22, %s2644_s12  ;;  %p2652_p7 = scmp.lt.s32.totalorder %s2987_s22, %s2987_s22 }
  0x27   : > { %p2653_p8 = scmp.lt.s32.totalorder %s2644_s12, %s2644_s12 }
  0x28   : > { %p2647_p2 = pnand %p2645_p0, %p2993_p6 }
  0x29   : > { %p2654_p9 = por %p2653_p8, %p2652_p7 }
  0x2a   : > { %p2648_p4 = pneg %p2647_p2 }
  0x2b   : > { %2382 = dma.hbm_to_vmem [thread:$0]  (!%p2983_p5), %s3495_s2, 1024, %s295_s18, [#allocation6], %s3479_s28, %s3479_s28, %s3480_s29  }
  0x2c   : > { %p2655_p10 = pnand %p2654_p9, %p2648_p4 }
  0x2e   : > { %2658 = shalt.err (!%p2655_p10)
}
  0x2f   : > { %s3496_s4 = sld [smem:[#allocation25_spill]]  ;;  %s2670_s18 = scalar_lea.vmem %s2989_s25, 1024 }
  0x30   : > { %p2671_p11 = scmp.ne.s32.totalorder %s2989_s25, %s2670_s18  ;;  %p2678_p0 = scmp.lt.s32.totalorder %s2989_s25, %s2989_s25 }
  0x31   : > { %p2679_p2 = scmp.lt.s32.totalorder %s2670_s18, %s2670_s18 }
  0x32   : > { %p2673_p12 = pnand %p2671_p11, %p2993_p6 }
  0x33   : > { %p2680_p4 = por %p2679_p2, %p2678_p0 }
  0x34   : > { %p2674_p13 = pneg %p2673_p12 }
  0x35   : > { %2385 = dma.hbm_to_vmem [thread:$0]  (!%p2983_p5), %s3496_s4, 1024, %s2987_s22, [#allocation9], %s3479_s28, %s3479_s28, %s3480_s29  }
  0x36   : > { %p2681_p7 = pnand %p2680_p4, %p2674_p13 }
  0x38   : > { %2684 = shalt.err (!%p2681_p7)
}
  0x39   : > { %s3497_s7 = sld [smem:[#allocation27_spill]]  ;;  %s2880_s22 = smov [#allocation10]  }
  0x3a   : > { %s323_s30 = sshll.u32 %s2880_s22, 4  ;;  %s324_s30 = int_to_ptr.vmem [resolvable:$true] %s323_s30 }
  0x3b   : > { %s2696_s11 = scalar_lea.vmem %s324_s30, 4096  ;;  %p2704_p11 = scmp.lt.s32.totalorder %s324_s30, %s324_s30 }
  0x3c   : > { %p2697_p8 = scmp.ne.s32.totalorder %s324_s30, %s2696_s11  ;;  %p2705_p12 = scmp.lt.s32.totalorder %s2696_s11, %s2696_s11 }
  0x3e   : > { %p2699_p9 = pnand %p2697_p8, %p2993_p6  ;;  %p2706_p13 = por %p2705_p12, %p2704_p11 }
  0x3f   : > { %2391 = dma.hbm_to_vmem [thread:$0]  (!%p2983_p5), %s3497_s7, 1024, %s2989_s25, [#allocation12], %s3479_s28, %s3479_s28, %s3480_s29  }
  0x40   : > { %p2700_p10 = pneg %p2699_p9 }
  0x42   : > { %p2707_p0 = pnand %p2706_p13, %p2700_p10 }
  0x44   : > { %2710 = shalt.err (!%p2707_p0)
}
  0x45   : > { %s2881_s12 = smov 256   ;;  %s2882_s17 = smov 16  }
  0x46   : > { %s3498_s5 = sld [smem:[#allocation26_spill]]  ;;  %s2883_s18 = smov [#allocation13]  }
  0x47   : > { %s355_s24 = sshll.u32 %s2883_s18, 4  ;;  %s356_s24 = int_to_ptr.vmem [resolvable:$true] %s355_s24 }
  0x48   : > { %s2722_s27 = scalar_lea.vmem %s356_s24, 4096  ;;  %p2730_p8 = scmp.lt.s32.totalorder %s356_s24, %s356_s24 }
  0x49   : > { %p2723_p2 = scmp.ne.s32.totalorder %s356_s24, %s2722_s27  ;;  %p2731_p9 = scmp.lt.s32.totalorder %s2722_s27, %s2722_s27 }
  0x4b   : > { %p2725_p4 = pnand %p2723_p2, %p2993_p6  ;;  %p2732_p10 = por %p2731_p9, %p2730_p8 }
  0x4c   : > { %2388 = dma.hbm_to_vmem [thread:$0]  (!%p2983_p5), %s3498_s5, 4096, %s324_s30, [#allocation9], %s2881_s12, %s2881_s12, %s2882_s17  }
  0x4d   : > { %p2726_p7 = pneg %p2725_p4 }
  0x4f   : > { %p2733_p11 = pnand %p2732_p10, %p2726_p7 }
  0x51   : > { %2736 = shalt.err (!%p2733_p11)
}
  0x52   : > { %s3499_s9 = sld [smem:[#allocation28_spill]]  ;;  %s1985_s23 = sadd.s32 4294967294, %s2873_s16  }
  0x53   : > { %s3056_s26 = sadd.s32 1, %s2873_s16   ;;  %s38_s11 = sadd.s32 1, %s2869_s15 }
  0x54   : > { %s35_s12 = ssub.s32 %s2873_s16, %s3056_s26  ;;  %p45_p6 = scmp.ne.s32.totalorder %s2869_s15, %s2865_s14 }
  0x55   : > { %p36_p12 = scmp.eq.s32.totalorder %s35_s12, 0  ;;  %p46_p13 = scmp.eq.s32.totalorder %s2873_s16, 0 }
  0x56   : > { %p51_p0 = scmp.ne.s32.totalorder %s2865_s14, %s2861_s13  ;;  %p269_p2 = scmp.eq.s32.totalorder %s2970_s19, 3 }
  0x57   : > { %s3068_s17 = scalar_select %p36_p12, %s2869_s15, %s38_s11  }
  0x58   : > { %2394 = dma.hbm_to_vmem [thread:$0]  (!%p2983_p5), %s3499_s9, 4096, %s356_s24, [#allocation12], %s3479_s28, %s3479_s28, %s3480_s29  }
  0x59   : > { %3500 = sst [smem:[#allocation22_spill]] %s3068_s17  ;;  %p47_p4 = por %p46_p13, %p45_p6 }
  0x5a   : > { %p3072_p7 = por %p3481_p1, %p51_p0  ;;  %p3076_p5 = por %p269_p2, %p45_p6 }
  0x5b   : > { %p275_p8 = scmp.eq.s32.totalorder %s1985_s23, 3  ;;  %p2411_p9 = scmp.lt.s32.totalorder %s2873_s16, 4 }
  0x5c   : > { %s3501_s21 = scalar_select %p3072_p7, 1, 0 }
  0x5d   : > { %s3502_s25 = scalar_select %p3076_p5, 1, 0 }
  0x5e   : > { %s3082_s18 = sand.u32 1, %s2869_s15   ;;  %p3084_p10 = por %p275_p8, %p51_p0 }
  0x5f   : > { %s1993_s27 = sshll.u32 %s3082_s18, 4  ;;  %s2103_s22 = sshll.u32 %s2873_s16, 8 }
  0x60   : > { %s3503_s24 = scalar_select %p3084_p10, 1, 0 }
  0x61   : > { %s3504_s0 = sld [smem:[#allocation23_spill]]  ;;  %s373_s23 = scalar_lea.vmem [#allocation2], %s1993_s27 }
  0x62   : > { %s380_s28 = sshll.u32 %s373_s23, 4  ;;  %p3095_p11 = pnand %p2411_p9, %p47_p4  ;;  %s3099_s28 = int_to_ptr.vmem [resolvable:$true] %s380_s28 }
  0x64   : > { %p2739_p12 = pneg %p3095_p11 }
  0x67   : > { %s3093_s12 = scalar_lea.hbm %s3504_s0, %s2103_s22  ;;  %s2742_s30 = scalar_lea.hbm %s3504_s0, 1024 }
  0x68   : > { %s2737_s4 = scalar_lea.hbm %s3093_s12, 256  ;;  %p2743_p2 = scmp.lt.s32.totalorder %s3093_s12, %s3504_s0 }
  0x69   : > { %p2738_p6 = scmp.ne.s32.totalorder %s3093_s12, %s2737_s4  ;;  %p2744_p4 = scmp.lt.s32.totalorder %s2742_s30, %s2737_s4 }
  0x6b   : > { %p2740_p13 = pnand %p2739_p12, %p2738_p6  ;;  %p2745_p8 = por %p2744_p4, %p2743_p2 }
  0x6d   : > { %p2741_p0 = pneg %p2740_p13 }
  0x6f   : > { %p2746_p9 = pnand %p2745_p8, %p2741_p0 }
  0x71   : > { %2749 = shalt.err (!%p2746_p9)
}
  0x72   : > { %s2750_s2 = scalar_lea.vmem %s3099_s28, 256  ;;  %s2884_s22 = smov [#allocation2]  }
  0x73   : > { %p2751_p1 = scmp.ne.s32.totalorder %s3099_s28, %s2750_s2  ;;  %s2755_s27 = sshll.u32 %s2884_s22, 4  ;;  %s2756_s27 = int_to_ptr.vmem [resolvable:$false] %s2755_s27 }
  0x74   : > { %s2757_s5 = scalar_lea.vmem %s2756_s27, 512  ;;  %p2758_p10 = scmp.lt.s32.totalorder %s3099_s28, %s2756_s27 }
  0x75   : > { %p2753_p6 = pnand %p2751_p1, %p2739_p12  ;;  %p2759_p5 = scmp.lt.s32.totalorder %s2757_s5, %s2750_s2 }
  0x77   : > { %p2754_p13 = pneg %p2753_p6  ;;  %p2760_p7 = por %p2759_p5, %p2758_p10 }
  0x79   : > { %p2761_p2 = pnand %p2760_p7, %p2754_p13 }
  0x7b   : > { %2764 = shalt.err (!%p2761_p2)
}
  0x7c   : > { %s2885_s4 = smov 128   ;;  %s2886_s30 = smov 8  }
  0x7d   : > { %s3506_s11 = scalar_lea.sflag [#allocation3], %s3082_s18  ;;  %s390_s23 = sand.u32 1, %s2873_s16  }
  0x7e   : > { %2398 = dma.hbm_to_vmem [thread:$0]  (!%p3095_p11), %s3093_s12, 256, %s3099_s28, %s3506_s11, %s2885_s4, %s2885_s4, %s2886_s30  }
  0x7f   : > { %s1996_s22 = sshll.u32 %s3082_s18, 3  ;;  %s2104_s27 = sshll.u32 %s2873_s16, 7 }
  0x80   : > { %s394_s2 = scalar_lea.vmem [#allocation5], %s1996_s22  ;;  %s3134_s9 = scalar_lea.hbm %s3469_s1, %s2104_s27 }
  0x81   : > { %s401_s5 = sshll.u32 %s394_s2, 4  ;;  %s391_s17 = scalar_lea.sflag [#allocation6], %s390_s23  ;;  %s3136_s5 = int_to_ptr.vmem [resolvable:$true] %s401_s5 }
  0x82   : > { %s2765_s15 = scalar_lea.hbm %s3134_s9, 128  ;;  %s2770_s12 = scalar_lea.hbm %s3469_s1, 512 }
  0x83   : > { %p2766_p1 = scmp.ne.s32.totalorder %s3134_s9, %s2765_s15  ;;  %p2771_p10 = scmp.lt.s32.totalorder %s3134_s9, %s3469_s1 }
  0x84   : > { %p2772_p0 = scmp.lt.s32.totalorder %s2770_s12, %s2765_s15 }
  0x85   : > { %p2768_p7 = pnand %p2766_p1, %p2739_p12 }
  0x86   : > { %p2773_p4 = por %p2772_p0, %p2771_p10 }
  0x87   : > { %p2769_p5 = pneg %p2768_p7 }
  0x89   : > { %p2774_p8 = pnand %p2773_p4, %p2769_p5 }
  0x8b   : > { %2777 = shalt.err (!%p2774_p8)
}
  0x8c   : > { %s2778_s7 = scalar_lea.vmem %s3136_s5, 128  ;;  %s2887_s30 = smov [#allocation5]  }
  0x8d   : > { %p2779_p9 = scmp.ne.s32.totalorder %s3136_s5, %s2778_s7  ;;  %s2783_s11 = sshll.u32 %s2887_s30, 4  ;;  %s2784_s11 = int_to_ptr.vmem [resolvable:$false] %s2783_s11 }
  0x8e   : > { %s2785_s23 = scalar_lea.vmem %s2784_s11, 256  ;;  %p2786_p2 = scmp.lt.s32.totalorder %s3136_s5, %s2784_s11 }
  0x8f   : > { %p2781_p6 = pnand %p2779_p9, %p2739_p12  ;;  %p2787_p1 = scmp.lt.s32.totalorder %s2785_s23, %s2778_s7 }
  0x91   : > { %p2782_p13 = pneg %p2781_p6  ;;  %p2788_p7 = por %p2787_p1, %p2786_p2 }
  0x93   : > { %p2789_p10 = pnand %p2788_p7, %p2782_p13 }
  0x95   : > { %2792 = shalt.err (!%p2789_p10)
}
  0x96   : > { %s3507_s15 = smov 4   ;;  %s3508_s22 = smov 64  }
  0x97   : > { %2401 = dma.hbm_to_vmem [thread:$0]  (!%p3095_p11), %s3134_s9, 128, %s3136_s5, %s391_s17, %s3508_s22, %s3508_s22, %s3507_s15  }
  0x98   : > { %413 = sbr.rel (%p2975_p3) target bundleno = 1351 (0x547), region = 60  ;;  %s3166_s27 = sand.u32 (!%p2975_p3), 1, %s2865_s14  }
  0x99   : > { %s2000_s2 = sshll.u32 (!%p2975_p3), %s3166_s27, 4  ;;  %s416_s28 = scalar_lea.sflag (!%p2975_p3), [#allocation3], %s3166_s27 }
  0x9a   : > { %s3172_s29 = scalar_lea.vmem (!%p2975_p3), [#allocation2], %s2000_s2  ;;  %p3509_p12 = scmp.ne.s32.totalorder (!%p2975_p3), %s3501_s21, 0 }
  0x9d   : > { %2836 = dma.done.wait (%p3509_p12), %s416_s28, 256  }
  0x9e   : > { %2838 = vsyncadd (%p3509_p12), %s416_s28, 4294967040  ;;  %s424_s9 = sand.u32 1, %s2970_s19   ;;  %s2001_s20 = sshll.u32 %s3166_s27, 3 }
  0x9f   : > { %s425_s17 = scalar_lea.sflag [#allocation6], %s424_s9  ;;  %s3180_s5 = scalar_lea.vmem [#allocation5], %s2001_s20 }
  0xa0   : > { %2840 = dma.done.wait (%p3509_p12), %s425_s17, 128  }
  0xa1   : > { %2842 = vsyncadd (%p3509_p12), %s425_s17, 4294967168  ;;  %p3510_p3 = scmp.eq.s32.totalorder %s2970_s19, 0 }
  0xa3   : > { %2844 = dma.done.wait (%p3510_p3), [#allocation6], 1024   ;;  %p3511_p11 = pmov %p3510_p3 }
  0xa4   : > { %p3512_p5 = pmov %p3510_p3 }
  0xa5   : > { %2846 = vsyncadd (%p3511_p11), [#allocation6], 4294966272 }
  0xa6   : > { %2848 = dma.done.wait (%p3512_p5), [#allocation9], 5120   ;;  %p3513_p0 = pmov %p3510_p3 }
  0xa8   : > { %2850 = vsyncadd (%p3513_p0), [#allocation9], 4294962176  ;;  %p3514_p4 = pmov %p3513_p0 }
  0xa9   : > { %p3515_p8 = pmov %p3513_p0 }
  0xaa   : > { %2852 = dma.done.wait (%p3514_p4), [#allocation12], 5120  }
  0xab   : > { %2854 = vsyncadd (%p3515_p8), [#allocation12], 4294962176  ;;  %v2888_v0 = vmov 0.0   ;;  %vm2889_vm0 = vmmov 0   ;;  %v2466_v1 = vld [vmem:[#allocation7 + $0x38] sm:$0xff]   ;;  %v2467_v2 = vld [vmem:[#allocation7 + $0x30] sm:$0xff]   ;;  %v612_v18 = vlaneseq }
  0xac   : > { %2213 = vmatprep.subr.bf16.mxu0 %v2888_v0  ;;  %2229 = vmatprep.mubr.msk.bf16.mxu0 %vm2889_vm0, %v2888_v0  ;;  %v2468_v3 = vld [vmem:[#allocation7 + $0x28] sm:$0xff]   ;;  %v2475_v4 = vld [vmem:[#allocation8 + $0x38] sm:$0xff]   ;;  %v2469_v5 = vld [vmem:[#allocation7 + $0x20] sm:$0xff]   ;;  %v2890_v60 = vmov 0   ;;  %s489_s30 = scalar_lea.vmem [#allocation14], %s2000_s2  ;;  %s2105_s23 = sshll.u32 %s2970_s19, 8 }
  0xad   : > { %2233 = vmatprep.subr.bf16.mxu1 %v2888_v0  ;;  %2249 = vmatprep.mubr.msk.bf16.mxu1 %vm2889_vm0, %v2888_v0  ;;  %v2476_v6 = vld [vmem:[#allocation8 + $0x30] sm:$0xff]   ;;  %v2470_v7 = vld [vmem:[#allocation7 + $0x18] sm:$0xff]   ;;  %v2477_v8 = vld [vmem:[#allocation8 + $0x28] sm:$0xff]   ;;  %v3229_v19 = vshrl.u32 %v612_v18, 7  ;;  %s1842_s11 = sshll.u32 %s489_s30, 4  ;;  %s3425_s28 = scalar_lea.hbm %s3478_s10, %s2105_s23  ;;  %s3420_s11 = int_to_ptr.vmem [resolvable:$true] %s1842_s11 }
  0xae   : > { %2214 = vmatpush3.bf16.msra.mxu0 %v2466_v1  ;;  %2234 = vmatpush3.bf16.msra.mxu1 %v2475_v4  ;;  %v2471_v9 = vld [vmem:[#allocation7 + $0x10] sm:$0xff]   ;;  %v2478_v10 = vld [vmem:[#allocation8 + $0x20] sm:$0xff]   ;;  %v2472_v11 = vld [vmem:[#allocation7 + $0x8] sm:$0xff]   ;;  %s1829_s2 = scalar_lea.sflag [#allocation4], %s3166_s27  ;;  %p3516_p6 = scmp.ne.s32.totalorder %s3502_s25, 0 }
  0xaf   : > { %2215 = vmatprep.subr.bf16.mxu0 %v2888_v0  ;;  %2235 = vmatprep.subr.bf16.mxu1 %v2888_v0  ;;  %v2479_v12 = vld [vmem:[#allocation8 + $0x18] sm:$0xff]   ;;  %v2473_v13 = vld [vmem:[#allocation7] sm:$0xff]   ;;  %v2480_v15 = vld [vmem:[#allocation8 + $0x10] sm:$0xff]   ;;  %v614_v20 = vsub.s32 0, %v3229_v19  ;;  %s2891_s19 = smov [#allocation14]  }
  0xb0   : > { %v2474_v14 = vld [vmem:[%s3180_s5] sm:$0xff]   ;;  %v2481_v16 = vld [vmem:[#allocation8 + $0x8] sm:$0xff]   ;;  %v2482_v17 = vld [vmem:[#allocation8] sm:$0xff]   ;;  %s2797_s9 = sshll.u32 %s2891_s19, 4  ;;  %s2798_s9 = int_to_ptr.vmem [resolvable:$false] %s2797_s9 }
  0xb1   : > { %v494_v21 = vld [vmem:[%s3172_s29] sm:$0xff]  ;;  %v495_v27 = vld [vmem:[%s3172_s29 + $0x8] sm:$0xff]  ;;  %s2793_s29 = scalar_lea.vmem %s3420_s11, 256  ;;  %s2799_s20 = scalar_lea.vmem %s2798_s9, 512 }
  0xb2   : > { %2216 = vmatpush3.bf16.msra.mxu0 %v2467_v2  ;;  %2236 = vmatpush3.bf16.msra.mxu1 %v2476_v6  ;;  %v3236_v22 = vld [vmem:[%s3471_s3] sm:$0xf]  ;;  %v2485_v37 = vld [vmem:[#allocation10 + $0xe4] ss:$16 sps:$4 sm:$0xff]   ;;  %v2488_v38 = vld [vmem:[#allocation10 + $0xec] ss:$16 sps:$4 sm:$0xff]   ;;  %p2794_p9 = scmp.ne.s32.totalorder %s3420_s11, %s2793_s29  ;;  %p2800_p1 = scmp.lt.s32.totalorder %s3420_s11, %s2798_s9 }
  0xb3   : > { %2217 = vmatprep.subr.bf16.mxu0 %v2888_v0  ;;  %2237 = vmatprep.subr.bf16.mxu1 %v2888_v0  ;;  %v615_v25 = vrot.slane %v3236_v22, %v614_v20  ;;  %v2483_v39 = vld [vmem:[#allocation10 + $0xe0] ss:$16 sps:$4 sm:$0xff]   ;;  %v2486_v40 = vld [vmem:[#allocation10 + $0xe8] ss:$16 sps:$4 sm:$0xff]   ;;  %v2491_v41 = vld [vmem:[#allocation10 + $0xc4] ss:$16 sps:$4 sm:$0xff]   ;;  %p2801_p7 = scmp.lt.s32.totalorder %s2799_s20, %s2793_s29 }
  0xb4   : > { %v2494_v42 = vld [vmem:[#allocation10 + $0xcc] ss:$16 sps:$4 sm:$0xff]   ;;  %v2489_v43 = vld [vmem:[#allocation10 + $0xc0] ss:$16 sps:$4 sm:$0xff]   ;;  %v2492_v44 = vld [vmem:[#allocation10 + $0xc8] ss:$16 sps:$4 sm:$0xff]   ;;  %p2795_p13 = pnand %p2794_p9, %p3516_p6 }
  0xb5   : > { %v2497_v45 = vld [vmem:[#allocation10 + $0xa4] ss:$16 sps:$4 sm:$0xff]   ;;  %v2500_v46 = vld [vmem:[#allocation10 + $0xac] ss:$16 sps:$4 sm:$0xff]   ;;  %v2495_v47 = vld [vmem:[#allocation10 + $0xa0] ss:$16 sps:$4 sm:$0xff]   ;;  %p2802_p10 = por %p2801_p7, %p2800_p1 }
  0xb6   : > { %2218 = vmatpush3.bf16.msra.mxu0 %v2468_v3  ;;  %2238 = vmatpush3.bf16.msra.mxu1 %v2477_v8  ;;  %v2498_v48 = vld [vmem:[#allocation10 + $0xa8] ss:$16 sps:$4 sm:$0xff]   ;;  %v2501_v49 = vld [vmem:[#allocation10 + $0x80] ss:$16 sps:$4 sm:$0xff]   ;;  %v2503_v50 = vld [vmem:[#allocation10 + $0x84] ss:$16 sps:$4 sm:$0xff]   ;;  %p2796_p2 = pneg %p2795_p13 }
  0xb7   : > { %2219 = vmatprep.subr.bf16.mxu0 %v2888_v0  ;;  %2239 = vmatprep.subr.bf16.mxu1 %v2888_v0  ;;  %v2504_v51 = vld [vmem:[#allocation10 + $0x88] ss:$16 sps:$4 sm:$0xff]   ;;  %v2506_v52 = vld [vmem:[#allocation10 + $0x8c] ss:$16 sps:$4 sm:$0xff]   ;;  %v2509_v53 = vld [vmem:[#allocation10 + $0x64] ss:$16 sps:$4 sm:$0xff]  }
  0xb8   : > { %v2512_v54 = vld [vmem:[#allocation10 + $0x6c] ss:$16 sps:$4 sm:$0xff]   ;;  %v2507_v55 = vld [vmem:[#allocation10 + $0x60] ss:$16 sps:$4 sm:$0xff]   ;;  %v2510_v56 = vld [vmem:[#allocation10 + $0x68] ss:$16 sps:$4 sm:$0xff]   ;;  %p2803_p12 = pnand %p2802_p10, %p2796_p2 }
  0xb9   : > { %v2515_v57 = vld [vmem:[#allocation10 + $0x44] ss:$16 sps:$4 sm:$0xff]   ;;  %v2518_v58 = vld [vmem:[#allocation10 + $0x4c] ss:$16 sps:$4 sm:$0xff]   ;;  %v2513_v59 = vld [vmem:[#allocation10 + $0x40] ss:$16 sps:$4 sm:$0xff]  }
  0xba   : > { %2220 = vmatpush3.bf16.msra.mxu0 %v2469_v5  ;;  %2240 = vmatpush3.bf16.msra.mxu1 %v2478_v10  ;;  %v2516_v61 = vld [vmem:[#allocation10 + $0x48] ss:$16 sps:$4 sm:$0xff]   ;;  %v2521_v62 = vld [vmem:[#allocation10 + $0x24] ss:$16 sps:$4 sm:$0xff]   ;;  %v2524_v63 = vld [vmem:[#allocation10 + $0x2c] ss:$16 sps:$4 sm:$0xff]  }
  0xbb   : > { %2221 = vmatprep.subr.bf16.mxu0 %v2888_v0  ;;  %2241 = vmatprep.subr.bf16.mxu1 %v2888_v0  ;;  %v2519_v1 = vld [vmem:[#allocation10 + $0x20] ss:$16 sps:$4 sm:$0xff]   ;;  %v2522_v2 = vld [vmem:[#allocation10 + $0x28] ss:$16 sps:$4 sm:$0xff]   ;;  %v2527_v3 = vld [vmem:[#allocation10 + $0x4] ss:$16 sps:$4 sm:$0xff]  }
  0xbc   : > { %v2525_v5 = vld [vmem:[#allocation10] ss:$16 sps:$4 sm:$0xff]  }
  0xbe   : > { %2222 = vmatpush3.bf16.msra.mxu0 %v2470_v7  ;;  %2242 = vmatpush3.bf16.msra.mxu1 %v2479_v12 }
  0xbf   : > { %2223 = vmatprep.subr.bf16.mxu0 %v2888_v0  ;;  %2243 = vmatprep.subr.bf16.mxu1 %v2888_v0 }
  0xc2   : > { %2224 = vmatpush3.bf16.msra.mxu0 %v2471_v9  ;;  %2244 = vmatpush3.bf16.msra.mxu1 %v2480_v15 }
  0xc3   : > { %2225 = vmatprep.subr.bf16.mxu0 %v2888_v0  ;;  %2245 = vmatprep.subr.bf16.mxu1 %v2888_v0 }
  0xc6   : > { %2226 = vmatpush3.bf16.msra.mxu0 %v2472_v11  ;;  %2246 = vmatpush3.bf16.msra.mxu1 %v2481_v16 }
  0xc7   : > { %2227 = vmatprep.subr.bf16.mxu0 %v2888_v0  ;;  %2247 = vmatprep.subr.bf16.mxu1 %v2888_v0 }
  0xca   : > { %2228 = vmatpush3.bf16.msra.mxu0 %v2473_v13  ;;  %2248 = vmatpush3.bf16.msra.mxu1 %v2482_v17 }
  0xcb   : > { %2253 = vmatprep.subr.bf16.mxu0 %v2888_v0  ;;  %1009 = vmatprep.subr.bf16.mxu1 %v2485_v37 }
  0xcd   : > { %2230 = vmatmul.mubr.bf16.vlgmr.msra.gmra.mxu0 %v2474_v14 }
  0xce   : > { %2254 = vmatpush3.bf16.msra.mxu0 %v2475_v4  ;;  %2269 = vmatprep.mubr.msk.bf16.mxu0 %vm2889_vm0, %v2888_v0  ;;  %v2530_v4 = vld [vmem:[#allocation10 + $0xc] ss:$16 sps:$4 sm:$0xff]  }
  0xcf   : > { %2255 = vmatprep.subr.bf16.mxu0 %v2888_v0 }
  0xd2   : > { %2256 = vmatpush3.bf16.msra.mxu0 %v2476_v6  ;;  %v2528_v6 = vld [vmem:[#allocation10 + $0x8] ss:$16 sps:$4 sm:$0xff]  }
  0xd3   : > { %2257 = vmatprep.subr.bf16.mxu0 %v2888_v0 }
  0xd6   : > { %2258 = vmatpush3.bf16.msra.mxu0 %v2477_v8 }
  0xd7   : > { %2259 = vmatprep.subr.bf16.mxu0 %v2888_v0 }
  0xda   : > { %2260 = vmatpush3.bf16.msra.mxu0 %v2478_v10 }
  0xdb   : > { %2261 = vmatprep.subr.bf16.mxu0 %v2888_v0 }
  0xde   : > { %2262 = vmatpush3.bf16.msra.mxu0 %v2479_v12 }
  0xdf   : > { %2263 = vmatprep.subr.bf16.mxu0 %v2888_v0 }
  0xe2   : > { %2264 = vmatpush3.bf16.msra.mxu0 %v2480_v15 }
  0xe3   : > { %2265 = vmatprep.subr.bf16.mxu0 %v2888_v0 }
  0xe6   : > { %2266 = vmatpush3.bf16.msra.mxu0 %v2481_v16 }
  0xe7   : > { %2267 = vmatprep.subr.bf16.mxu0 %v2888_v0 }
  0xea   : > { %2268 = vmatpush3.bf16.msra.mxu0 %v2482_v17 }
  0xeb   : > { %1052 = vmatprep.subr.bf16.mxu0 %v2488_v38 }
 0x18d   : > { %v603_v23 = vpop.f32.mrf.mxu0 }
 0x18e   : > { %v610_v24 = vadd.f32 %v603_v23, %v494_v21 }
 0x18f   : > { %v2231_v26 = vpop.f32.mrf.mxu0 }
 0x190   : > { %v3242_v29 = vadd.f32 %v615_v25, %v610_v24  ;;  %v784_v26 = vsub.s32 1, %v3229_v19 }
 0x191   : > { %v606_v28 = vpop.f32.mrf.mxu0 }
 0x192   : > { %v611_v30 = vadd.f32 %v606_v28, %v495_v27  ;;  %v724_v34 = vmul.f32 %v3242_v29, %v3242_v29 }
 0x193   : > { %v2232_v31 = vpop.f32.mrf.mxu0 }
 0x194   : > { %v3244_v32 = vadd.f32 %v615_v25, %v611_v30  ;;  %v785_v30 = vrot.slane %v3236_v22, %v784_v26 }
 0x196   : > { %v634_v33 = vpack.c.bf16 %v3244_v32, %v3242_v29  ;;  %v725_v35 = vmul.f32 %v3244_v32, %v3244_v32 }
 0x198   : > { %2250 = vmatmul.mubr.bf16.vlgmr.msra.gmra.mxu1 %v634_v33  ;;  %v726_v36 = vpack.c.bf16 %v725_v35, %v724_v34  ;;  %v790_v33 = vsub.s32 2, %v3229_v19 }
 0x199   : > { %1010 = vmatpush1.bf16.msra.mxu1 %v2483_v39  ;;  %1041 = vmatprep.mubr.bf16.mxu1 %v2890_v60 }
 0x19a   : > { %2270 = vmatmul.mubr.bf16.vlgmr.msra.gmra.mxu0 %v726_v36  ;;  %1011 = vmatprep.subr.bf16.mxu1 %v2491_v41  ;;  %v791_v38 = vrot.slane %v3236_v22, %v790_v33 }
 0x19b   : > { %1053 = vmatpush1.bf16.msra.mxu0 %v2486_v40  ;;  %1084 = vmatprep.mubr.bf16.mxu0 %v2890_v60 }
 0x19c   : > { %1054 = vmatprep.subr.bf16.mxu0 %v2494_v42 }
 0x19d   : > { %1012 = vmatpush1.bf16.msra.mxu1 %v2489_v43  ;;  %v3266_v43 = vld [vmem:[#allocation11 + $0x38] sm:$0xff]  }
 0x19e   : > { %1013 = vmatprep.subr.bf16.mxu1 %v2497_v45  ;;  %v3278_v45 = vld [vmem:[#allocation11 + $0x28] sm:$0xff]  }
 0x19f   : > { %1055 = vmatpush1.bf16.msra.mxu0 %v2492_v44  ;;  %v3272_v44 = vld [vmem:[#allocation11 + $0x30] sm:$0xff]  }
 0x1a0   : > { %1056 = vmatprep.subr.bf16.mxu0 %v2500_v46  ;;  %v3284_v46 = vld [vmem:[#allocation11 + $0x20] sm:$0xff]  }
 0x1a1   : > { %1014 = vmatpush1.bf16.msra.mxu1 %v2495_v47  ;;  %v3290_v47 = vld [vmem:[#allocation11 + $0x18] sm:$0xff]  }
 0x1a2   : > { %1015 = vmatprep.subr.bf16.mxu1 %v2503_v50  ;;  %v3308_v50 = vld [vmem:[#allocation11] sm:$0xff]  }
 0x1a3   : > { %1057 = vmatpush1.bf16.msra.mxu0 %v2498_v48  ;;  %v3296_v48 = vld [vmem:[#allocation11 + $0x10] sm:$0xff]  }
 0x1a4   : > { %1058 = vmatprep.subr.bf16.mxu0 %v2506_v52 }
 0x1a5   : > { %1016 = vmatpush1.bf16.msra.mxu1 %v2501_v49  ;;  %v3302_v49 = vld [vmem:[#allocation11 + $0x8] sm:$0xff]  }
 0x1a6   : > { %1017 = vmatprep.subr.bf16.mxu1 %v2509_v53 }
 0x1a7   : > { %1059 = vmatpush1.bf16.msra.mxu0 %v2504_v51  ;;  %v827_v51 = vld [vmem:[%s3474_s6] sm:$0xf] }
 0x1a8   : > { %1060 = vmatprep.subr.bf16.mxu0 %v2512_v54  ;;  %v832_v52 = vrot.slane %v827_v51, %v614_v20  ;;  %v836_v53 = vrot.slane %v827_v51, %v784_v26 }
 0x1a9   : > { %1018 = vmatpush1.bf16.msra.mxu1 %v2507_v55 }
 0x1aa   : > { %1019 = vmatprep.subr.bf16.mxu1 %v2515_v57 }
 0x1ab   : > { %1061 = vmatpush1.bf16.msra.mxu0 %v2510_v56 }
 0x1ac   : > { %1062 = vmatprep.subr.bf16.mxu0 %v2518_v58 }
 0x1ad   : > { %1020 = vmatpush1.bf16.msra.mxu1 %v2513_v59 }
 0x1ae   : > { %1021 = vmatprep.subr.bf16.mxu1 %v2521_v62 }
 0x1af   : > { %1063 = vmatpush1.bf16.msra.mxu0 %v2516_v61 }
 0x1b0   : > { %1064 = vmatprep.subr.bf16.mxu0 %v2524_v63 }
 0x1b1   : > { %1022 = vmatpush1.bf16.msra.mxu1 %v2519_v1 }
 0x1b2   : > { %1023 = vmatprep.subr.bf16.mxu1 %v2527_v3 }
 0x1b3   : > { %1065 = vmatpush1.bf16.msra.mxu0 %v2522_v2 }
 0x1b4   : > { %1066 = vmatprep.subr.bf16.mxu0 %v2530_v4 }
 0x1b5   : > { %1024 = vmatpush1.bf16.msra.mxu1 %v2525_v5 }
 0x1b6   : > { %2273 = vmatprep.subr.bf16.mxu1 %v2888_v0 }
 0x1b7   : > { %1067 = vmatpush1.bf16.msra.mxu0 %v2528_v6 }
 0x1b8   : > { %2293 = vmatprep.subr.bf16.mxu0 %v2888_v0 }
 0x258   : > { %v717_v7 = vpop.f32.mrf.mxu1 }
 0x259   : > { %v768_v8 = vmul.f32 %v717_v7, %v717_v7  ;;  %v774_v27 = vsub.f32 %v3242_v29, %v717_v7 }
 0x25a   : > { %v2251_v9 = vpop.f32.mrf.mxu1  ;;  %v761_v10 = vpop.f32.mrf.mxu0 }
 0x25b   : > { %v770_v11 = vsub.f32 %v761_v10, %v768_v8 }
 0x25c   : > { %v720_v12 = vpop.f32.mrf.mxu1  ;;  %v2271_v13 = vpop.f32.mrf.mxu0 }
 0x25d   : > { %v772_v14 = vmax.f32 %v770_v11, 0.0  ;;  %v769_v15 = vmul.f32 %v720_v12, %v720_v12  ;;  %v775_v34 = vsub.f32 %v3244_v32, %v720_v12 }
 0x25e   : > { %v2252_v16 = vpop.f32.mrf.mxu1  ;;  %v764_v17 = vpop.f32.mrf.mxu0 }
 0x25f   : > { %v776_v18 = vadd.f32 1e-05, %v772_v14  ;;  %v771_v21 = vsub.f32 %v764_v17, %v769_v15  ;;  %v843_v15 = vsub.s32 3, %v3229_v19 }
 0x260   : > { %v2272_v23 = vpop.f32.mrf.mxu0 }
 0x261   : > { %2571 = vrsqrt.f32 %v776_v18  ;;  %v773_v24 = vmax.f32 %v771_v21, 0.0  ;;  %v840_v21 = vrot.slane %v827_v51, %v790_v33 }
 0x263   : > { %v777_v25 = vadd.f32 1e-05, %v773_v24 }
 0x265   : > { %2573 = vrsqrt.f32 %v777_v25  ;;  %v844_v25 = vrot.slane %v827_v51, %v843_v15 }
 0x26e   : > { %v2572_v28 = vpop.eup %2571 }
 0x26f   : > { %v780_v31 = vmul.f32 %v2572_v28, %v774_v27 }
 0x271   : > { %v786_v37 = vmul.f32 %v785_v30, %v780_v31 }
 0x272   : > { %v2574_v35 = vpop.eup %2573 }
 0x273   : > { %v781_v36 = vmul.f32 %v2574_v35, %v775_v34  ;;  %v792_v40 = vadd.f32 %v791_v38, %v786_v37 }
 0x275   : > { %v787_v39 = vmul.f32 %v785_v30, %v781_v36 }
 0x277   : > { %v793_v41 = vadd.f32 %v791_v38, %v787_v39 }
 0x279   : > { %v794_v42 = vpack.c.bf16 %v793_v41, %v792_v40 }
 0x27b   : > { %1042 = vmatmul.mubr.bf16.vlgmr.msra.gmra.mxu1 %v794_v42  ;;  %1085 = vmatmul.mubr.bf16.vlgmr.msra.gmra.mxu0 %v794_v42 }
 0x27c   : > { %2289 = vmatprep.mubr.msk.bf16.mxu1 %vm2889_vm0, %v2888_v0  ;;  %2309 = vmatprep.mubr.msk.bf16.mxu0 %vm2889_vm0, %v2888_v0 }
 0x27d   : > { %2274 = vmatpush3.bf16.msra.mxu1 %v3266_v43  ;;  %2294 = vmatpush3.bf16.msra.mxu0 %v3266_v43 }
 0x27e   : > { %2275 = vmatprep.subr.bf16.mxu1 %v2888_v0  ;;  %2295 = vmatprep.subr.bf16.mxu0 %v2888_v0 }
 0x281   : > { %2276 = vmatpush3.bf16.msra.mxu1 %v3272_v44  ;;  %2296 = vmatpush3.bf16.msra.mxu0 %v3272_v44 }
 0x282   : > { %2277 = vmatprep.subr.bf16.mxu1 %v2888_v0  ;;  %2297 = vmatprep.subr.bf16.mxu0 %v2888_v0 }
 0x285   : > { %2278 = vmatpush3.bf16.msra.mxu1 %v3278_v45  ;;  %2298 = vmatpush3.bf16.msra.mxu0 %v3278_v45 }
 0x286   : > { %2279 = vmatprep.subr.bf16.mxu1 %v2888_v0  ;;  %2299 = vmatprep.subr.bf16.mxu0 %v2888_v0 }
 0x289   : > { %2280 = vmatpush3.bf16.msra.mxu1 %v3284_v46  ;;  %2300 = vmatpush3.bf16.msra.mxu0 %v3284_v46 }
 0x28a   : > { %2281 = vmatprep.subr.bf16.mxu1 %v2888_v0  ;;  %2301 = vmatprep.subr.bf16.mxu0 %v2888_v0 }
 0x28d   : > { %2282 = vmatpush3.bf16.msra.mxu1 %v3290_v47  ;;  %2302 = vmatpush3.bf16.msra.mxu0 %v3290_v47 }
 0x28e   : > { %2283 = vmatprep.subr.bf16.mxu1 %v2888_v0  ;;  %2303 = vmatprep.subr.bf16.mxu0 %v2888_v0 }
 0x291   : > { %2284 = vmatpush3.bf16.msra.mxu1 %v3296_v48  ;;  %2304 = vmatpush3.bf16.msra.mxu0 %v3296_v48 }
 0x292   : > { %2285 = vmatprep.subr.bf16.mxu1 %v2888_v0  ;;  %2305 = vmatprep.subr.bf16.mxu0 %v2888_v0 }
 0x295   : > { %2286 = vmatpush3.bf16.msra.mxu1 %v3302_v49  ;;  %2306 = vmatpush3.bf16.msra.mxu0 %v3302_v49 }
 0x296   : > { %2287 = vmatprep.subr.bf16.mxu1 %v2888_v0  ;;  %2307 = vmatprep.subr.bf16.mxu0 %v2888_v0 }
 0x299   : > { %2288 = vmatpush3.bf16.msra.mxu1 %v3308_v50  ;;  %2308 = vmatpush3.bf16.msra.mxu0 %v3308_v50 }
 0x29a   : > { %2313 = vmatprep.subr.bf16.mxu1 %v2888_v0  ;;  %2333 = vmatprep.subr.bf16.mxu0 %v2888_v0 }
 0x33b   : > { %v1043_v54 = vpop.f32.mrf.mxu1  ;;  %v1086_v61 = vpop.f32.mrf.mxu0 }
 0x33c   : > { %v3319_v55 = vadd.f32 %v1043_v54, %v832_v52  ;;  %v3338_v30 = vadd.f32 %v1086_v61, %v840_v21 }
 0x33d   : > { %v1045_v56 = vpop.f32.mrf.mxu1  ;;  %v1088_v7 = vpop.f32.mrf.mxu0 }
 0x33e   : > { %v1095_v57 = vmul.f32 %v3319_v55, %v3319_v55  ;;  %v3323_v58 = vadd.f32 %v1045_v56, %v836_v53  ;;  %v3342_v34 = vadd.f32 %v1088_v7, %v844_v25  ;;  %v1097_v35 = vmul.f32 %v3338_v30, %v3338_v30 }
 0x33f   : > { %v1047_v59 = vpop.f32.mrf.mxu1  ;;  %v1090_v16 = vpop.f32.mrf.mxu0 }
 0x340   : > { %v1103_v60 = vmul.f32 %v1095_v57, %v3319_v55  ;;  %v1096_v62 = vmul.f32 %v3323_v58, %v3323_v58  ;;  %v1048_v63 = vadd.f32 %v1047_v59, %v832_v52  ;;  %v3336_v27 = vadd.f32 %v1090_v16, %v840_v21 }
 0x341   : > { %v1049_v1 = vpop.f32.mrf.mxu1  ;;  %v1092_v26 = vpop.f32.mrf.mxu0  ;;  %v1098_v37 = vmul.f32 %v3342_v34, %v3342_v34  ;;  %v1105_v40 = vmul.f32 %v1097_v35, %v3338_v30 }
 0x342   : > { %v1111_v20 = vmul.f32 0.044715, %v1103_v60  ;;  %v1104_v2 = vmul.f32 %v1096_v62, %v3323_v58  ;;  %v1099_v3 = vmul.f32 %v1048_v63, %v1048_v63  ;;  %v1050_v4 = vadd.f32 %v1049_v1, %v836_v53 }
 0x343   : > { %v3340_v31 = vadd.f32 %v1092_v26, %v844_v25  ;;  %v1101_v33 = vmul.f32 %v3336_v27, %v3336_v27  ;;  %v1106_v52 = vmul.f32 %v1098_v37, %v3342_v34  ;;  %v1113_v57 = vmul.f32 0.044715, %v1105_v40  ;;  %v2548_v40 = vld [vmem:[#allocation13 + $0x18] sm:$0xff]  }
 0x344   : > { %v1119_v5 = vadd.f32 %v1111_v20, %v3319_v55  ;;  %v1112_v6 = vmul.f32 0.044715, %v1104_v2  ;;  %v1107_v8 = vmul.f32 %v1099_v3, %v1048_v63  ;;  %v1100_v9 = vmul.f32 %v1050_v4, %v1050_v4 }
 0x345   : > { %v1102_v36 = vmul.f32 %v3340_v31, %v3340_v31  ;;  %v1109_v39 = vmul.f32 %v1101_v33, %v3336_v27  ;;  %v1114_v1 = vmul.f32 0.044715, %v1106_v52  ;;  %v2552_v52 = vld [vmem:[#allocation13 + $0x8] sm:$0xff]  }
 0x346   : > { %v1127_v10 = vmul.f32 0.7978846, %v1119_v5  ;;  %v1120_v11 = vadd.f32 %v1112_v6, %v3323_v58  ;;  %v1115_v12 = vmul.f32 0.044715, %v1107_v8  ;;  %v1108_v13 = vmul.f32 %v1100_v9, %v1050_v4 }
 0x347   : > { %v1110_v51 = vmul.f32 %v1102_v36, %v3340_v31  ;;  %v1117_v54 = vmul.f32 0.044715, %v1109_v39  ;;  %v1121_v6 = vadd.f32 %v1113_v57, %v3338_v30  ;;  %v2545_v39 = vld [vmem:[#allocation13 + $0x60] sm:$0xff]   ;;  %v2556_v57 = vld [vmem:[#allocation13 + $0xb8] sm:$0xff]  }
 0x348   : > { %2575 = vtanh.f32 %v1127_v10  ;;  %v1128_v14 = vmul.f32 0.7978846, %v1120_v11  ;;  %v1123_v17 = vadd.f32 %v1115_v12, %v1048_v63  ;;  %v1116_v18 = vmul.f32 0.044715, %v1108_v13 }
 0x349   : > { %v1118_v61 = vmul.f32 0.044715, %v1110_v51  ;;  %v1125_v3 = vadd.f32 %v1117_v54, %v3336_v27  ;;  %v1122_v11 = vadd.f32 %v1114_v1, %v3342_v34  ;;  %v2551_v51 = vld [vmem:[#allocation13 + $0x48] sm:$0xff]   ;;  %v2554_v54 = vld [vmem:[#allocation13] sm:$0xff]  }
 0x34a   : > { %2577 = vtanh.f32 %v1128_v14  ;;  %v1131_v23 = vmul.f32 0.7978846, %v1123_v17  ;;  %v1124_v24 = vadd.f32 %v1116_v18, %v1050_v4  ;;  %v1129_v17 = vmul.f32 0.7978846, %v1121_v6  ;;  %v2561_v1 = vld [vmem:[#allocation13 + $0xe0] sm:$0xff]   ;;  %v2566_v6 = vld [vmem:[#allocation13 + $0x90] sm:$0xff]  }
 0x34b   : > { %v1126_v10 = vadd.f32 %v1118_v61, %v3340_v31  ;;  %v1133_v13 = vmul.f32 0.7978846, %v1125_v3  ;;  %v2559_v61 = vld [vmem:[#allocation13 + $0xe8] sm:$0xff]   ;;  %v2564_v3 = vld [vmem:[#allocation13 + $0x98] sm:$0xff]  }
 0x34c   : > { %2579 = vtanh.f32 %v1131_v23  ;;  %v1132_v28 = vmul.f32 0.7978846, %v1124_v24 }
 0x34d   : > { %v1134_v18 = vmul.f32 0.7978846, %v1126_v10  ;;  %v2570_v10 = vld [vmem:[#allocation13 + $0x80] sm:$0xff]  }
 0x34e   : > { %2581 = vtanh.f32 %v1132_v28 }
 0x34f   : > { %2583 = vtanh.f32 %v1133_v13 }
 0x350   : > { %2585 = vtanh.f32 %v1129_v17 }
 0x351   : > { %2587 = vtanh.f32 %v1134_v18 }
 0x355   : > { %v2576_v38 = vpop.eup %2575 }
 0x356   : > { %v1143_v42 = vadd.f32 1.0, %v2576_v38  ;;  %v2540_v38 = vld [vmem:[#allocation13 + $0x38] sm:$0xff]  }
 0x357   : > { %v2578_v41 = vpop.eup %2577 }
 0x358   : > { %v1144_v53 = vadd.f32 1.0, %v2578_v41  ;;  %v1151_v59 = vmul.f32 0.5, %v1143_v42  ;;  %v2549_v41 = vld [vmem:[#allocation13 + $0x50] sm:$0xff]  }
 0x359   : > { %v2580_v56 = vpop.eup %2579  ;;  %v2550_v42 = vld [vmem:[#allocation13 + $0x10] sm:$0xff]  }
 0x35a   : > { %v1147_v60 = vadd.f32 1.0, %v2580_v56  ;;  %v1152_v20 = vmul.f32 0.5, %v1144_v53  ;;  %v1159_v7 = vmul.f32 %v1151_v59, %v3319_v55  ;;  %v1130_v55 = vmul.f32 0.7978846, %v1122_v11  ;;  %v2553_v53 = vld [vmem:[#allocation13 + $0x40] sm:$0xff]   ;;  %v2555_v56 = vld [vmem:[#allocation13 + $0xf8] sm:$0xff]  }
 0x35b   : > { %v2582_v62 = vpop.eup %2581  ;;  %v2557_v59 = vld [vmem:[#allocation13 + $0xf0] sm:$0xff]  }
 0x35c   : > { %v1155_v2 = vmul.f32 0.5, %v1147_v60  ;;  %v1148_v5 = vadd.f32 1.0, %v2582_v62  ;;  %v1160_v12 = vmul.f32 %v1152_v20, %v3323_v58  ;;  %2589 = vtanh.f32 %v1130_v55  ;;  %v2558_v60 = vld [vmem:[#allocation13 + $0xb0] sm:$0xff]   ;;  %v2560_v62 = vld [vmem:[#allocation13 + $0xa8] sm:$0xff]   ;;  %v2562_v20 = vld [vmem:[#allocation13 + $0xa0] sm:$0xff]  }
 0x35d   : > { %v3403_v11 = vld [vmem:[%s3476_s8] ss:$0 sm:$0xff] }
 0x35e   : > { %v1163_v8 = vmul.f32 %v1155_v2, %v1048_v63  ;;  %v1156_v9 = vmul.f32 0.5, %v1148_v5  ;;  %v2563_v2 = vld [vmem:[#allocation13 + $0xd8] sm:$0xff]   ;;  %v2565_v5 = vld [vmem:[#allocation13 + $0xd0] sm:$0xff]  }
 0x360   : > { %v1164_v14 = vmul.f32 %v1156_v9, %v1050_v4  ;;  %v1168_v16 = vpack.c.bf16 %v1163_v8, %v1159_v7  ;;  %v2567_v7 = vld [vmem:[#allocation13 + $0xc8] sm:$0xff]   ;;  %v2569_v9 = vld [vmem:[#allocation13 + $0xc0] sm:$0xff]  }
 0x361   : > { %v2568_v8 = vld [vmem:[#allocation13 + $0x88] sm:$0xff]  }
 0x362   : > { %2290 = vmatmul.mubr.bf16.vlgmr.msra.gmra.mxu1 %v1168_v16  ;;  %v1298_v21 = vpack.c.bf16 %v1164_v14, %v1160_v12 }
 0x363   : > { %2314 = vmatpush3.bf16.msra.mxu1 %v3266_v43  ;;  %2329 = vmatprep.mubr.msk.bf16.mxu1 %vm2889_vm0, %v2888_v0 }
 0x364   : > { %2310 = vmatmul.mubr.bf16.vlgmr.msra.gmra.mxu0 %v1298_v21  ;;  %2315 = vmatprep.subr.bf16.mxu1 %v2888_v0 }
 0x365   : > { %2334 = vmatpush3.bf16.msra.mxu0 %v3266_v43  ;;  %2349 = vmatprep.mubr.msk.bf16.mxu0 %vm2889_vm0, %v2888_v0  ;;  %v2584_v43 = vpop.eup %2583 }
 0x366   : > { %2335 = vmatprep.subr.bf16.mxu0 %v2888_v0  ;;  %v2586_v58 = vpop.eup %2585  ;;  %v1149_v63 = vadd.f32 1.0, %v2584_v43 }
 0x367   : > { %2316 = vmatpush3.bf16.msra.mxu1 %v3272_v44 }
 0x368   : > { %2317 = vmatprep.subr.bf16.mxu1 %v2888_v0 }
 0x369   : > { %2336 = vmatpush3.bf16.msra.mxu0 %v3272_v44  ;;  %v2588_v44 = vpop.eup %2587 }
 0x36a   : > { %2337 = vmatprep.subr.bf16.mxu0 %v2888_v0  ;;  %v2590_v4 = vpop.eup %2589  ;;  %v1150_v23 = vadd.f32 1.0, %v2588_v44 }
 0x36b   : > { %2318 = vmatpush3.bf16.msra.mxu1 %v3278_v45  ;;  %v1146_v24 = vadd.f32 1.0, %v2590_v4 }
 0x36c   : > { %2319 = vmatprep.subr.bf16.mxu1 %v2888_v0  ;;  %v1158_v26 = vmul.f32 0.5, %v1150_v23 }
 0x36d   : > { %2338 = vmatpush3.bf16.msra.mxu0 %v3278_v45  ;;  %v1145_v45 = vadd.f32 1.0, %v2586_v58  ;;  %v1154_v28 = vmul.f32 0.5, %v1146_v24 }
 0x36e   : > { %2339 = vmatprep.subr.bf16.mxu0 %v2888_v0  ;;  %v1166_v35 = vmul.f32 %v1158_v26, %v3340_v31  ;;  %v2543_v31 = vld [vmem:[#allocation13 + $0x68] sm:$0xff]  }
 0x36f   : > { %2320 = vmatpush3.bf16.msra.mxu1 %v3284_v46  ;;  %v1153_v25 = vmul.f32 0.5, %v1145_v45 }
 0x370   : > { %2321 = vmatprep.subr.bf16.mxu1 %v2888_v0 }
 0x371   : > { %2340 = vmatpush3.bf16.msra.mxu0 %v3284_v46  ;;  %v1157_v46 = vmul.f32 0.5, %v1149_v63  ;;  %v1161_v33 = vmul.f32 %v1153_v25, %v3338_v30  ;;  %v2542_v30 = vld [vmem:[#allocation13 + $0x30] sm:$0xff]  }
 0x372   : > { %2341 = vmatprep.subr.bf16.mxu0 %v2888_v0 }
 0x373   : > { %2322 = vmatpush3.bf16.msra.mxu1 %v3290_v47 }
 0x374   : > { %2323 = vmatprep.subr.bf16.mxu1 %v2888_v0 }
 0x375   : > { %2342 = vmatpush3.bf16.msra.mxu0 %v3290_v47  ;;  %v1165_v47 = vmul.f32 %v1157_v46, %v3336_v27  ;;  %v2539_v27 = vld [vmem:[#allocation13 + $0x78] sm:$0xff]  }
 0x376   : > { %2343 = vmatprep.subr.bf16.mxu0 %v2888_v0 }
 0x377   : > { %2324 = vmatpush3.bf16.msra.mxu1 %v3296_v48  ;;  %v1358_v36 = vpack.c.bf16 %v1165_v47, %v1161_v33 }
 0x378   : > { %2325 = vmatprep.subr.bf16.mxu1 %v2888_v0 }
 0x379   : > { %2344 = vmatpush3.bf16.msra.mxu0 %v3296_v48  ;;  %v1162_v48 = vmul.f32 %v1154_v28, %v3342_v34  ;;  %v2546_v34 = vld [vmem:[#allocation13 + $0x20] sm:$0xff]  }
 0x37a   : > { %2345 = vmatprep.subr.bf16.mxu0 %v2888_v0 }
 0x37b   : > { %2326 = vmatpush3.bf16.msra.mxu1 %v3302_v49  ;;  %v1418_v37 = vpack.c.bf16 %v1166_v35, %v1162_v48 }
 0x37c   : > { %2327 = vmatprep.subr.bf16.mxu1 %v2888_v0 }
 0x37d   : > { %2346 = vmatpush3.bf16.msra.mxu0 %v3302_v49  ;;  %v2541_v49 = vld [vmem:[#allocation13 + $0x70] sm:$0xff]  }
 0x37e   : > { %2347 = vmatprep.subr.bf16.mxu0 %v2888_v0  ;;  %v2544_v0 = vld [vmem:[#allocation13 + $0x28] sm:$0xff]  }
 0x37f   : > { %2328 = vmatpush3.bf16.msra.mxu1 %v3308_v50 }
 0x380   : > { %2169 = vmatprep.subr.bf16.mxu1 %v2539_v27 }
 0x381   : > { %2348 = vmatpush3.bf16.msra.mxu0 %v3308_v50  ;;  %v2547_v50 = vld [vmem:[#allocation13 + $0x58] sm:$0xff]  }
 0x382   : > { %2330 = vmatmul.mubr.bf16.vlgmr.msra.gmra.mxu1 %v1358_v36  ;;  %2191 = vmatprep.subr.bf16.mxu0 %v2555_v56 }
 0x383   : > { %2170 = vmatpush3.bf16.msra.mxu1 %v2540_v38 }
 0x384   : > { %2350 = vmatmul.mubr.bf16.vlgmr.msra.gmra.mxu0 %v1418_v37  ;;  %2171 = vmatprep.subr.bf16.mxu1 %v2541_v49 }
 0x385   : > { %2192 = vmatpush3.bf16.msra.mxu0 %v2556_v57 }
 0x386   : > { %2193 = vmatprep.subr.bf16.mxu0 %v2557_v59 }
 0x387   : > { %2172 = vmatpush3.bf16.msra.mxu1 %v2542_v30 }
 0x388   : > { %2173 = vmatprep.subr.bf16.mxu1 %v2543_v31 }
 0x389   : > { %2194 = vmatpush3.bf16.msra.mxu0 %v2558_v60 }
 0x38a   : > { %2195 = vmatprep.subr.bf16.mxu0 %v2559_v61 }
 0x38b   : > { %2174 = vmatpush3.bf16.msra.mxu1 %v2544_v0 }
 0x38c   : > { %2175 = vmatprep.subr.bf16.mxu1 %v2545_v39 }
 0x38d   : > { %2196 = vmatpush3.bf16.msra.mxu0 %v2560_v62 }
 0x38e   : > { %2197 = vmatprep.subr.bf16.mxu0 %v2561_v1 }
 0x38f   : > { %2176 = vmatpush3.bf16.msra.mxu1 %v2546_v34 }
 0x390   : > { %2177 = vmatprep.subr.bf16.mxu1 %v2547_v50 }
 0x391   : > { %2198 = vmatpush3.bf16.msra.mxu0 %v2562_v20 }
 0x392   : > { %2199 = vmatprep.subr.bf16.mxu0 %v2563_v2 }
 0x393   : > { %2178 = vmatpush3.bf16.msra.mxu1 %v2548_v40 }
 0x394   : > { %2179 = vmatprep.subr.bf16.mxu1 %v2549_v41 }
 0x395   : > { %2200 = vmatpush3.bf16.msra.mxu0 %v2564_v3 }
 0x396   : > { %2201 = vmatprep.subr.bf16.mxu0 %v2565_v5 }
 0x397   : > { %2180 = vmatpush3.bf16.msra.mxu1 %v2550_v42 }
 0x398   : > { %2181 = vmatprep.subr.bf16.mxu1 %v2551_v51 }
 0x399   : > { %2202 = vmatpush3.bf16.msra.mxu0 %v2566_v6 }
 0x39a   : > { %2203 = vmatprep.subr.bf16.mxu0 %v2567_v7 }
 0x39b   : > { %2182 = vmatpush3.bf16.msra.mxu1 %v2552_v52 }
 0x39c   : > { %2183 = vmatprep.subr.bf16.mxu1 %v2553_v53 }
 0x39d   : > { %2204 = vmatpush3.bf16.msra.mxu0 %v2568_v8 }
 0x39e   : > { %2205 = vmatprep.subr.bf16.mxu0 %v2569_v9 }
 0x39f   : > { %2184 = vmatpush3.bf16.msra.mxu1 %v2554_v54 }
 0x3a1   : > { %2206 = vmatpush3.bf16.msra.mxu0 %v2570_v10 }
 0x422   : > { %v1273_v12 = vpop.f32.mrf.mxu1 }
 0x423   : > { %v1274_v13 = vadd.f32 %v3403_v11, %v1273_v12 }
 0x424   : > { %v2291_v14 = vpop.f32.mrf.mxu1  ;;  %v1333_v16 = vpop.f32.mrf.mxu0 }
 0x425   : > { %v1280_v17 = vmul.f32 %v1274_v13, %v1274_v13  ;;  %v1334_v18 = vadd.f32 %v3403_v11, %v1333_v16 }
 0x426   : > { %v1276_v21 = vpop.f32.mrf.mxu1  ;;  %v2311_v55 = vpop.f32.mrf.mxu0 }
 0x427   : > { %v1282_v43 = vmul.f32 %v1280_v17, %v1274_v13  ;;  %v1340_v58 = vmul.f32 %v1334_v18, %v1334_v18  ;;  %v1277_v44 = vadd.f32 %v3403_v11, %v1276_v21 }
 0x428   : > { %v2292_v63 = vpop.f32.mrf.mxu1  ;;  %v1336_v4 = vpop.f32.mrf.mxu0 }
 0x429   : > { %v1284_v45 = vmul.f32 0.044715, %v1282_v43  ;;  %v1342_v23 = vmul.f32 %v1340_v58, %v1334_v18  ;;  %v1281_v24 = vmul.f32 %v1277_v44, %v1277_v44  ;;  %v1337_v46 = vadd.f32 %v3403_v11, %v1336_v4 }
 0x42a   : > { %v2312_v25 = vpop.f32.mrf.mxu0 }
 0x42b   : > { %v1286_v26 = vadd.f32 %v1284_v45, %v1274_v13  ;;  %v1344_v28 = vmul.f32 0.044715, %v1342_v23  ;;  %v1283_v47 = vmul.f32 %v1281_v24, %v1277_v44  ;;  %v1341_v33 = vmul.f32 %v1337_v46, %v1337_v46 }
 0x42d   : > { %v1288_v35 = vmul.f32 0.7978846, %v1286_v26  ;;  %v1346_v48 = vadd.f32 %v1344_v28, %v1334_v18  ;;  %v1285_v36 = vmul.f32 0.044715, %v1283_v47  ;;  %v1343_v37 = vmul.f32 %v1341_v33, %v1337_v46 }
 0x42f   : > { %v1348_v27 = vmul.f32 0.7978846, %v1346_v48  ;;  %v1287_v38 = vadd.f32 %v1285_v36, %v1277_v44  ;;  %v1345_v49 = vmul.f32 0.044715, %v1343_v37  ;;  %2591 = vtanh.f32 %v1288_v35 }
 0x431   : > { %2593 = vtanh.f32 %v1348_v27  ;;  %v1289_v30 = vmul.f32 0.7978846, %v1287_v38  ;;  %v1347_v31 = vadd.f32 %v1345_v49, %v1337_v46 }
 0x433   : > { %2595 = vtanh.f32 %v1289_v30  ;;  %v1349_v0 = vmul.f32 0.7978846, %v1347_v31 }
 0x435   : > { %2597 = vtanh.f32 %v1349_v0 }
 0x43c   : > { %v2592_v39 = vpop.eup %2591 }
 0x43d   : > { %v1292_v40 = vadd.f32 1.0, %v2592_v39 }
 0x43e   : > { %v2594_v34 = vpop.eup %2593 }
 0x43f   : > { %v1352_v41 = vadd.f32 1.0, %v2594_v34  ;;  %v1294_v57 = vmul.f32 0.5, %v1292_v40 }
 0x440   : > { %v2596_v50 = vpop.eup %2595 }
 0x441   : > { %v1293_v42 = vadd.f32 1.0, %v2596_v50  ;;  %v1354_v61 = vmul.f32 0.5, %v1352_v41  ;;  %v1296_v10 = vmul.f32 %v1294_v57, %v1274_v13 }
 0x442   : > { %v2598_v51 = vpop.eup %2597  ;;  %v1393_v52 = vpop.f32.mrf.mxu1 }
 0x443   : > { %v1295_v53 = vmul.f32 0.5, %v1293_v42  ;;  %v1394_v54 = vadd.f32 %v3403_v11, %v1393_v52  ;;  %v1353_v56 = vadd.f32 1.0, %v2598_v51  ;;  %v1356_v16 = vmul.f32 %v1354_v61, %v1334_v18 }
 0x444   : > { %v2331_v59 = vpop.f32.mrf.mxu1  ;;  %v1453_v60 = vpop.f32.mrf.mxu0 }
 0x445   : > { %v1400_v62 = vmul.f32 %v1394_v54, %v1394_v54  ;;  %v1454_v1 = vadd.f32 %v3403_v11, %v1453_v60  ;;  %v1355_v20 = vmul.f32 0.5, %v1353_v56  ;;  %v1297_v2 = vmul.f32 %v1295_v53, %v1277_v44 }
 0x446   : > { %v1396_v3 = vpop.f32.mrf.mxu1  ;;  %v2351_v5 = vpop.f32.mrf.mxu0  ;;  %v1549_v60 = vrot.slane %v3236_v22, %v843_v15 }
 0x447   : > { %v1402_v6 = vmul.f32 %v1400_v62, %v1394_v54  ;;  %v1460_v7 = vmul.f32 %v1454_v1, %v1454_v1  ;;  %v1397_v8 = vadd.f32 %v3403_v11, %v1396_v3  ;;  %v1357_v9 = vmul.f32 %v1355_v20, %v1337_v46 }
 0x448   : > { %v2332_v12 = vpop.f32.mrf.mxu1  ;;  %v1456_v14 = vpop.f32.mrf.mxu0  ;;  %v1478_v4 = vpack.c.bf16 %v1297_v2, %v1296_v10 }
 0x449   : > { %v1404_v17 = vmul.f32 0.044715, %v1402_v6  ;;  %v1462_v21 = vmul.f32 %v1460_v7, %v1454_v1  ;;  %v1401_v55 = vmul.f32 %v1397_v8, %v1397_v8  ;;  %v1457_v43 = vadd.f32 %v3403_v11, %v1456_v14 }
 0x44a   : > { %v2352_v58 = vpop.f32.mrf.mxu0  ;;  %v1479_v63 = vpack.c.bf16 %v1357_v9, %v1356_v16 }
 0x44b   : > { %v1406_v44 = vadd.f32 %v1404_v17, %v1394_v54  ;;  %v1464_v45 = vmul.f32 0.044715, %v1462_v21  ;;  %v1403_v23 = vmul.f32 %v1401_v55, %v1397_v8  ;;  %v1461_v24 = vmul.f32 %v1457_v43, %v1457_v43 }
 0x44c   : > { %1774 = vmatprep.mubr.bf16.mxu1 %v1479_v63 }
 0x44d   : > { %v1408_v25 = vmul.f32 0.7978846, %v1406_v44  ;;  %v1466_v26 = vadd.f32 %v1464_v45, %v1454_v1  ;;  %v1405_v46 = vmul.f32 0.044715, %v1403_v23  ;;  %v1463_v13 = vmul.f32 %v1461_v24, %v1457_v43  ;;  %1775 = vmatmul.mubr.bf16.vlgmr.msra.gmra.mxu1 %v1478_v4 }
 0x44f   : > { %v1468_v28 = vmul.f32 0.7978846, %v1466_v26  ;;  %v1407_v18 = vadd.f32 %v1405_v46, %v1397_v8  ;;  %v1465_v47 = vmul.f32 0.044715, %v1463_v13  ;;  %2599 = vtanh.f32 %v1408_v25 }
 0x451   : > { %2601 = vtanh.f32 %v1468_v28  ;;  %v1409_v33 = vmul.f32 0.7978846, %v1407_v18  ;;  %v1467_v11 = vadd.f32 %v1465_v47, %v1457_v43 }
 0x453   : > { %2603 = vtanh.f32 %v1409_v33  ;;  %v1469_v35 = vmul.f32 0.7978846, %v1467_v11 }
 0x455   : > { %2605 = vtanh.f32 %v1469_v35 }
 0x45c   : > { %v2600_v48 = vpop.eup %2599 }
 0x45d   : > { %v1412_v38 = vadd.f32 1.0, %v2600_v48 }
 0x45e   : > { %v2602_v36 = vpop.eup %2601 }
 0x45f   : > { %v1472_v37 = vadd.f32 1.0, %v2602_v36  ;;  %v1414_v34 = vmul.f32 0.5, %v1412_v38 }
 0x460   : > { %v2604_v27 = vpop.eup %2603 }
 0x461   : > { %v1413_v49 = vadd.f32 1.0, %v2604_v27  ;;  %v1474_v39 = vmul.f32 0.5, %v1472_v37  ;;  %v1416_v51 = vmul.f32 %v1414_v34, %v1394_v54 }
 0x462   : > { %v2606_v30 = vpop.eup %2605 }
 0x463   : > { %v1415_v31 = vmul.f32 0.5, %v1413_v49  ;;  %v1473_v0 = vadd.f32 1.0, %v2606_v30  ;;  %v1476_v41 = vmul.f32 %v1474_v39, %v1454_v1 }
 0x465   : > { %v1475_v50 = vmul.f32 0.5, %v1473_v0  ;;  %v1417_v40 = vmul.f32 %v1415_v31, %v1397_v8 }
 0x467   : > { %v1477_v42 = vmul.f32 %v1475_v50, %v1457_v43  ;;  %v1480_v53 = vpack.c.bf16 %v1417_v40, %v1416_v51 }
 0x469   : > { %v1481_v52 = vpack.c.bf16 %v1477_v42, %v1476_v41 }
 0x46b   : > { %1815 = vmatprep.mubr.bf16.mxu0 %v1481_v52 }
 0x46c   : > { %1816 = vmatmul.mubr.bf16.vlgmr.msra.gmra.mxu0 %v1480_v53 }
 0x50d   : > { %v2185_v56 = vpop.f32.mrf.mxu1 }
 0x50f   : > { %v2186_v57 = vpop.f32.mrf.mxu1 }
 0x510   : > { %v2187_v61 = vadd.f32 %v2186_v57, %v2185_v56 }
 0x511   : > { %v2188_v59 = vpop.f32.mrf.mxu1 }
 0x512   : > { %v1777_v1 = vadd.f32 %v2187_v61, %v1549_v60 }
 0x513   : > { %v2189_v62 = vpop.f32.mrf.mxu1 }
 0x514   : > { %v2190_v3 = vadd.f32 %v2189_v62, %v2188_v59 }
 0x516   : > { %v1780_v8 = vadd.f32 %v2190_v3, %v1549_v60 }
 0x52c   : > { %v2207_v20 = vpop.f32.mrf.mxu0 }
 0x52e   : > { %v2208_v2 = vpop.f32.mrf.mxu0 }
 0x52f   : > { %v2209_v54 = vadd.f32 %v2208_v2, %v2207_v20 }
 0x530   : > { %v2210_v5 = vpop.f32.mrf.mxu0 }
 0x531   : > { %v1818_v6 = vadd.f32 %v2209_v54, %v1777_v1 }
 0x532   : > { %v2211_v7 = vpop.f32.mrf.mxu0 }
 0x533   : > { %v1824_v19 = vadd.f32 %v1818_v6, %v3242_v29  ;;  %v2212_v22 = vadd.f32 %v2211_v7, %v2210_v5 }
 0x535   : > { %1826 = vst [vmem:[%s489_s30] sm:$0xff] %v1824_v19  ;;  %v1821_v15 = vadd.f32 %v2212_v22, %v1780_v8 }
 0x537   : > { %v1825_v9 = vadd.f32 %v1821_v15, %v3244_v32 }
 0x539   : > { %1827 = vst [vmem:[%s489_s30 + $0x8] sm:$0xff] %v1825_v9 }
 0x53a   : > { %2806 = shalt.err (!%p2803_p12)
}
 0x53b   : > { %s2807_s17 = scalar_lea.hbm %s3425_s28, 256  ;;  %s2811_s18 = scalar_lea.hbm %s3478_s10, 1024 }
 0x53c   : > { %p2808_p3 = scmp.ne.s32.totalorder %s3425_s28, %s2807_s17  ;;  %p2812_p0 = scmp.lt.s32.totalorder %s3425_s28, %s3478_s10 }
 0x53d   : > { %p2813_p4 = scmp.lt.s32.totalorder %s2811_s18, %s2807_s17 }
 0x53e   : > { %p2809_p11 = pnand %p2808_p3, %p3516_p6 }
 0x53f   : > { %p2814_p8 = por %p2813_p4, %p2812_p0 }
 0x540   : > { %p2810_p5 = pneg %p2809_p11 }
 0x542   : > { %p2815_p9 = pnand %p2814_p8, %p2810_p5 }
 0x544   : > { %2818 = shalt.err (!%p2815_p9)
}
 0x545   : > { %s2892_s0 = smov 128   ;;  %s2893_s7 = smov 8  }
 0x546   : > { %2377 = dma.vmem_to_hbm [thread:$0]  (%p3516_p6), %s3420_s11, 256, %s3425_s28, %s1829_s2, %s2892_s0, %s2892_s0, %s2893_s7  }
 0x547 PF: > { %p2417_p13 = scmp.ge.s32.totalorder %s2873_s16, 2  ;;  %s1857_s30 = sand.u32 1, %s2861_s13  }
 0x548   : > { %p3517_p2 = scmp.ne.s32.totalorder %s3503_s24, 0  ;;  %s1858_s23 = scalar_lea.sflag [#allocation4], %s1857_s30 }
 0x54a   : > { %p2403_p1 = pnand %p2417_p13, %p3517_p2 }
 0x54c   : > { %p2404_p7 = pneg %p2403_p1 }
 0x54e   : > { %2856 = dma.done.wait (%p2404_p7), %s1858_s23, 256  }
 0x54f   : > { %2858 = vsyncadd (%p2404_p7), %s1858_s23, 4294967040  ;;  %s3518_s15 = sld [smem:[#allocation21_spill]]  ;;  %p28_p10 = scmp.ge.s32.totalorder %s3056_s26, 6  }
 0x550   : > { %s3519_s22 = sld [smem:[#allocation22_spill]]  ;;  %s3520_s13 = smov %s2865_s14 }
 0x551   : > { %s3523_s16 = smov %s3056_s26 }
 0x552   :  { %30 = sbr.rel (!%p28_p10) target bundleno = 16 (0x10), region = 138 }
 0x555   : > { %s3521_s14 = smov %s3518_s15 }
 0x556   : > { %s3522_s15 = smov %s3519_s22 }
 0x557   :  { %1863 = vsyncpa [#allocation3], 1 }
 0x558   :  { %1865 = vsyncpa [#allocation3 + $0x1], 1 }
 0x559   :  { %1866 = vsyncpa [#allocation6], 1 }
 0x55a   :  { %1868 = vsyncpa [#allocation6 + $0x1], 1 }
 0x55b   :  { %1869 = vsyncpa [#allocation9], 1 }
 0x55c   :  { %1870 = vsyncpa [#allocation12], 1 }
 0x55d   :  { %1871 = vsyncpa [#allocation4], 1 }
 0x55e   :  { %1873 = vsyncpa [#allocation4 + $0x1], 1 }

// kernel: tpu_custom_call.1
= control target key start
LH: loop header
LB: loop body
LE: loop exit
PB: predicated region body
PF: predicated region fallthrough
CT: control target
= control target key end

     0   :  { %s3468_s0 = inlined_call_operand.hbm [shape: f32[64,128], index: 0, kind: input, shape index: {}]   ;;  %s3469_s1 = inlined_call_operand.hbm [shape: bf16[64,128], index: 1, kind: input, shape index: {}]   ;;  %s3470_s2 = inlined_call_operand.hbm [shape: bf16[128,128], index: 2, kind: input, shape index: {}]   ;;  %s3471_s3 = inlined_call_operand.vmem [shape: f32[4,128], index: 3, kind: input, shape index: {}]   ;;  %s3472_s4 = inlined_call_operand.hbm [shape: bf16[128,128], index: 4, kind: input, shape index: {}]   ;;  %s3473_s5 = inlined_call_operand.hbm [shape: bf16[128,512], index: 5, kind: input, shape index: {}]   ;;  %s3474_s6 = inlined_call_operand.vmem [shape: f32[1,512], index: 6, kind: input, shape index: {}]   ;;  %s3475_s7 = inlined_call_operand.hbm [shape: bf16[1,128,128], index: 7, kind: input, shape index: {}]   ;;  %s3476_s8 = inlined_call_operand.vmem [shape: f32[1,128], index: 8, kind: input, shape index: {}]   ;;  %s3477_s9 = inlined_call_operand.hbm [shape: bf16[512,128], index: 9, kind: input, shape index: {}]   ;;  %s3478_s10 = inlined_call_operand.hbm [shape: f32[64,128], index: 10, kind: output, shape index: {}]  }
   0x1   :  { %3485 = sst [smem:[#allocation23_spill]] %s3468_s0 }
   0x2   :  { %3486 = sst [smem:[#allocation24_spill]] %s3470_s2 }
   0x3   :  { %3487 = sst [smem:[#allocation25_spill]] %s3472_s4 }
   0x4   :  { %3488 = sst [smem:[#allocation26_spill]] %s3473_s5 }
   0x5   :  { %3489 = sst [smem:[#allocation27_spill]] %s3475_s7 }
   0x6   :  { %3490 = sst [smem:[#allocation28_spill]] %s3477_s9 }
   0x7   :  { %15 = vsyncpa [#allocation3], 0 }
   0x8   :  { %17 = vsyncpa [#allocation3 + $0x1], 0 }
   0x9   :  { %18 = vsyncpa [#allocation6], 0 }
   0xa   :  { %20 = vsyncpa [#allocation6 + $0x1], 0 }
   0xb   :  { %21 = vsyncpa [#allocation9], 0 }
   0xc   :  { %22 = vsyncpa [#allocation12], 0 }
   0xd   :  { %23 = vsyncpa [#allocation4], 0 }
   0xe   :  { %25 = vsyncpa [#allocation4 + $0x1], 0  ;;  %s2949_s13 = smov 0   ;;  %s2951_s14 = smov 0  }
   0xf   :  { %s2953_s15 = smov 0   ;;  %s2955_s16 = smov 0  }
  0x10 LB: > { %3491 = sst [smem:[#allocation21_spill]] %s2869_s15  ;;  %s2875_s17 = smov [#allocation7]   ;;  %s2873_s16 = sphi %s2955_s16, %s3523_s16   ;;  %s2869_s15 = sphi %s2953_s15, %s3522_s15   ;;  %s2865_s14 = sphi %s2951_s14, %s3521_s14   ;;  %s2861_s13 = sphi %s2949_s13, %s3520_s13  }
  0x11   : > { %s294_s18 = sshll.u32 %s2875_s17, 4  ;;  %s2970_s19 = sadd.s32 4294967295, %s2873_s16   ;;  %s295_s18 = int_to_ptr.vmem [resolvable:$true] %s294_s18 }
  0x12   : > { %p1986_p0 = scmp.ge.s32.totalorder %s2873_s16, 1  ;;  %p3481_p1 = scmp.eq.s32.totalorder %s2970_s19, 0 }
  0x13   : > { %p282_p2 = scmp.lt.s32.totalorder %s2873_s16, 5  ;;  %s2876_s21 = smov [#allocation8]  }
  0x14   : > { %s310_s22 = sshll.u32 %s2876_s21, 4  ;;  %s2877_s24 = smov [#allocation11]   ;;  %s2987_s22 = int_to_ptr.vmem [resolvable:$true] %s310_s22 }
  0x15   : > { %p2975_p3 = pnand %p1986_p0, %p282_p2  ;;  %s339_s25 = sshll.u32 %s2877_s24, 4  ;;  %s2989_s25 = int_to_ptr.vmem [resolvable:$true] %s339_s25 }
  0x16   : > { %s2618_s27 = scalar_lea.vmem %s295_s18, 1024  ;;  %p2626_p10 = scmp.lt.s32.totalorder %s295_s18, %s295_s18 }
  0x17   : > { %p2379_p4 = pneg %p2975_p3  ;;  %p2619_p7 = scmp.ne.s32.totalorder %s295_s18, %s2618_s27 }
  0x18   : > { %p2627_p11 = scmp.lt.s32.totalorder %s2618_s27, %s2618_s27 }
  0x19   : > { %p2983_p5 = pnand %p2379_p4, %p3481_p1 }
  0x1a   : > { %p2628_p12 = por %p2627_p11, %p2626_p10 }
  0x1b   : > { %p2993_p6 = pneg %p2983_p5 }
  0x1d   : > { %p2621_p8 = pnand %p2619_p7, %p2993_p6 }
  0x1f   : > { %p2622_p9 = pneg %p2621_p8 }
  0x21   : > { %p2629_p13 = pnand %p2628_p12, %p2622_p9 }
  0x23   : > { %2632 = shalt.err (!%p2629_p13)
}
  0x24   : > { %s3479_s28 = smov 64   ;;  %s3480_s29 = smov 4  }
  0x25   : > { %s3495_s2 = sld [smem:[#allocation24_spill]]  ;;  %s2644_s12 = scalar_lea.vmem %s2987_s22, 1024 }
  0x26   : > { %p2645_p0 = scmp.ne.s32.totalorder %s2987_s22, %s2644_s12  ;;  %p2652_p7 = scmp.lt.s32.totalorder %s2987_s22, %s2987_s22 }
  0x27   : > { %p2653_p8 = scmp.lt.s32.totalorder %s2644_s12, %s2644_s12 }
  0x28   : > { %p2647_p2 = pnand %p2645_p0, %p2993_p6 }
  0x29   : > { %p2654_p9 = por %p2653_p8, %p2652_p7 }
  0x2a   : > { %p2648_p4 = pneg %p2647_p2 }
  0x2b   : > { %2382 = dma.hbm_to_vmem [thread:$0]  (!%p2983_p5), %s3495_s2, 1024, %s295_s18, [#allocation6], %s3479_s28, %s3479_s28, %s3480_s29  }
  0x2c   : > { %p2655_p10 = pnand %p2654_p9, %p2648_p4 }
  0x2e   : > { %2658 = shalt.err (!%p2655_p10)
}
  0x2f   : > { %s3496_s4 = sld [smem:[#allocation25_spill]]  ;;  %s2670_s18 = scalar_lea.vmem %s2989_s25, 1024 }
  0x30   : > { %p2671_p11 = scmp.ne.s32.totalorder %s2989_s25, %s2670_s18  ;;  %p2678_p0 = scmp.lt.s32.totalorder %s2989_s25, %s2989_s25 }
  0x31   : > { %p2679_p2 = scmp.lt.s32.totalorder %s2670_s18, %s2670_s18 }
  0x32   : > { %p2673_p12 = pnand %p2671_p11, %p2993_p6 }
  0x33   : > { %p2680_p4 = por %p2679_p2, %p2678_p0 }
  0x34   : > { %p2674_p13 = pneg %p2673_p12 }
  0x35   : > { %2385 = dma.hbm_to_vmem [thread:$0]  (!%p2983_p5), %s3496_s4, 1024, %s2987_s22, [#allocation9], %s3479_s28, %s3479_s28, %s3480_s29  }
  0x36   : > { %p2681_p7 = pnand %p2680_p4, %p2674_p13 }
  0x38   : > { %2684 = shalt.err (!%p2681_p7)
}
  0x39   : > { %s3497_s7 = sld [smem:[#allocation27_spill]]  ;;  %s2880_s22 = smov [#allocation10]  }
  0x3a   : > { %s323_s30 = sshll.u32 %s2880_s22, 4  ;;  %s324_s30 = int_to_ptr.vmem [resolvable:$true] %s323_s30 }
  0x3b   : > { %s2696_s11 = scalar_lea.vmem %s324_s30, 4096  ;;  %p2704_p11 = scmp.lt.s32.totalorder %s324_s30, %s324_s30 }
  0x3c   : > { %p2697_p8 = scmp.ne.s32.totalorder %s324_s30, %s2696_s11  ;;  %p2705_p12 = scmp.lt.s32.totalorder %s2696_s11, %s2696_s11 }
  0x3e   : > { %p2699_p9 = pnand %p2697_p8, %p2993_p6  ;;  %p2706_p13 = por %p2705_p12, %p2704_p11 }
  0x3f   : > { %2391 = dma.hbm_to_vmem [thread:$0]  (!%p2983_p5), %s3497_s7, 1024, %s2989_s25, [#allocation12], %s3479_s28, %s3479_s28, %s3480_s29  }
  0x40   : > { %p2700_p10 = pneg %p2699_p9 }
  0x42   : > { %p2707_p0 = pnand %p2706_p13, %p2700_p10 }
  0x44   : > { %2710 = shalt.err (!%p2707_p0)
}
  0x45   : > { %s2881_s12 = smov 256   ;;  %s2882_s17 = smov 16  }
  0x46   : > { %s3498_s5 = sld [smem:[#allocation26_spill]]  ;;  %s2883_s18 = smov [#allocation13]  }
  0x47   : > { %s355_s24 = sshll.u32 %s2883_s18, 4  ;;  %s356_s24 = int_to_ptr.vmem [resolvable:$true] %s355_s24 }
  0x48   : > { %s2722_s27 = scalar_lea.vmem %s356_s24, 4096  ;;  %p2730_p8 = scmp.lt.s32.totalorder %s356_s24, %s356_s24 }
  0x49   : > { %p2723_p2 = scmp.ne.s32.totalorder %s356_s24, %s2722_s27  ;;  %p2731_p9 = scmp.lt.s32.totalorder %s2722_s27, %s2722_s27 }
  0x4b   : > { %p2725_p4 = pnand %p2723_p2, %p2993_p6  ;;  %p2732_p10 = por %p2731_p9, %p2730_p8 }
  0x4c   : > { %2388 = dma.hbm_to_vmem [thread:$0]  (!%p2983_p5), %s3498_s5, 4096, %s324_s30, [#allocation9], %s2881_s12, %s2881_s12, %s2882_s17  }
  0x4d   : > { %p2726_p7 = pneg %p2725_p4 }
  0x4f   : > { %p2733_p11 = pnand %p2732_p10, %p2726_p7 }
  0x51   : > { %2736 = shalt.err (!%p2733_p11)
}
  0x52   : > { %s3499_s9 = sld [smem:[#allocation28_spill]]  ;;  %s1985_s23 = sadd.s32 4294967294, %s2873_s16  }
  0x53   : > { %s3056_s26 = sadd.s32 1, %s2873_s16   ;;  %s38_s11 = sadd.s32 1, %s2869_s15 }
  0x54   : > { %s35_s12 = ssub.s32 %s2873_s16, %s3056_s26  ;;  %p45_p6 = scmp.ne.s32.totalorder %s2869_s15, %s2865_s14 }
  0x55   : > { %p36_p12 = scmp.eq.s32.totalorder %s35_s12, 0  ;;  %p46_p13 = scmp.eq.s32.totalorder %s2873_s16, 0 }
  0x56   : > { %p51_p0 = scmp.ne.s32.totalorder %s2865_s14, %s2861_s13  ;;  %p269_p2 = scmp.eq.s32.totalorder %s2970_s19, 3 }
  0x57   : > { %s3068_s17 = scalar_select %p36_p12, %s2869_s15, %s38_s11  }
  0x58   : > { %2394 = dma.hbm_to_vmem [thread:$0]  (!%p2983_p5), %s3499_s9, 4096, %s356_s24, [#allocation12], %s3479_s28, %s3479_s28, %s3480_s29  }
  0x59   : > { %3500 = sst [smem:[#allocation22_spill]] %s3068_s17  ;;  %p47_p4 = por %p46_p13, %p45_p6 }
  0x5a   : > { %p3072_p7 = por %p3481_p1, %p51_p0  ;;  %p3076_p5 = por %p269_p2, %p45_p6 }
  0x5b   : > { %p275_p8 = scmp.eq.s32.totalorder %s1985_s23, 3  ;;  %p2411_p9 = scmp.lt.s32.totalorder %s2873_s16, 4 }
  0x5c   : > { %s3501_s21 = scalar_select %p3072_p7, 1, 0 }
  0x5d   : > { %s3502_s25 = scalar_select %p3076_p5, 1, 0 }
  0x5e   : > { %s3082_s18 = sand.u32 1, %s2869_s15   ;;  %p3084_p10 = por %p275_p8, %p51_p0 }
  0x5f   : > { %s1993_s27 = sshll.u32 %s3082_s18, 4  ;;  %s2103_s22 = sshll.u32 %s2873_s16, 8 }
  0x60   : > { %s3503_s24 = scalar_select %p3084_p10, 1, 0 }
  0x61   : > { %s3504_s0 = sld [smem:[#allocation23_spill]]  ;;  %s373_s23 = scalar_lea.vmem [#allocation2], %s1993_s27 }
  0x62   : > { %s380_s28 = sshll.u32 %s373_s23, 4  ;;  %p3095_p11 = pnand %p2411_p9, %p47_p4  ;;  %s3099_s28 = int_to_ptr.vmem [resolvable:$true] %s380_s28 }
  0x64   : > { %p2739_p12 = pneg %p3095_p11 }
  0x67   : > { %s3093_s12 = scalar_lea.hbm %s3504_s0, %s2103_s22  ;;  %s2742_s30 = scalar_lea.hbm %s3504_s0, 1024 }
  0x68   : > { %s2737_s4 = scalar_lea.hbm %s3093_s12, 256  ;;  %p2743_p2 = scmp.lt.s32.totalorder %s3093_s12, %s3504_s0 }
  0x69   : > { %p2738_p6 = scmp.ne.s32.totalorder %s3093_s12, %s2737_s4  ;;  %p2744_p4 = scmp.lt.s32.totalorder %s2742_s30, %s2737_s4 }
  0x6b   : > { %p2740_p13 = pnand %p2739_p12, %p2738_p6  ;;  %p2745_p8 = por %p2744_p4, %p2743_p2 }
  0x6d   : > { %p2741_p0 = pneg %p2740_p13 }
  0x6f   : > { %p2746_p9 = pnand %p2745_p8, %p2741_p0 }
  0x71   : > { %2749 = shalt.err (!%p2746_p9)
}
  0x72   : > { %s2750_s2 = scalar_lea.vmem %s3099_s28, 256  ;;  %s2884_s22 = smov [#allocation2]  }
  0x73   : > { %p2751_p1 = scmp.ne.s32.totalorder %s3099_s28, %s2750_s2  ;;  %s2755_s27 = sshll.u32 %s2884_s22, 4  ;;  %s2756_s27 = int_to_ptr.vmem [resolvable:$false] %s2755_s27 }
  0x74   : > { %s2757_s5 = scalar_lea.vmem %s2756_s27, 512  ;;  %p2758_p10 = scmp.lt.s32.totalorder %s3099_s28, %s2756_s27 }
  0x75   : > { %p2753_p6 = pnand %p2751_p1, %p2739_p12  ;;  %p2759_p5 = scmp.lt.s32.totalorder %s2757_s5, %s2750_s2 }
  0x77   : > { %p2754_p13 = pneg %p2753_p6  ;;  %p2760_p7 = por %p2759_p5, %p2758_p10 }
  0x79   : > { %p2761_p2 = pnand %p2760_p7, %p2754_p13 }
  0x7b   : > { %2764 = shalt.err (!%p2761_p2)
}
  0x7c   : > { %s2885_s4 = smov 128   ;;  %s2886_s30 = smov 8  }
  0x7d   : > { %s3506_s11 = scalar_lea.sflag [#allocation3], %s3082_s18  ;;  %s390_s23 = sand.u32 1, %s2873_s16  }
  0x7e   : > { %2398 = dma.hbm_to_vmem [thread:$0]  (!%p3095_p11), %s3093_s12, 256, %s3099_s28, %s3506_s11, %s2885_s4, %s2885_s4, %s2886_s30  }
  0x7f   : > { %s1996_s22 = sshll.u32 %s3082_s18, 3  ;;  %s2104_s27 = sshll.u32 %s2873_s16, 7 }
  0x80   : > { %s394_s2 = scalar_lea.vmem [#allocation5], %s1996_s22  ;;  %s3134_s9 = scalar_lea.hbm %s3469_s1, %s2104_s27 }
  0x81   : > { %s401_s5 = sshll.u32 %s394_s2, 4  ;;  %s391_s17 = scalar_lea.sflag [#allocation6], %s390_s23  ;;  %s3136_s5 = int_to_ptr.vmem [resolvable:$true] %s401_s5 }
  0x82   : > { %s2765_s15 = scalar_lea.hbm %s3134_s9, 128  ;;  %s2770_s12 = scalar_lea.hbm %s3469_s1, 512 }
  0x83   : > { %p2766_p1 = scmp.ne.s32.totalorder %s3134_s9, %s2765_s15  ;;  %p2771_p10 = scmp.lt.s32.totalorder %s3134_s9, %s3469_s1 }
  0x84   : > { %p2772_p0 = scmp.lt.s32.totalorder %s2770_s12, %s2765_s15 }
  0x85   : > { %p2768_p7 = pnand %p2766_p1, %p2739_p12 }
  0x86   : > { %p2773_p4 = por %p2772_p0, %p2771_p10 }
  0x87   : > { %p2769_p5 = pneg %p2768_p7 }
  0x89   : > { %p2774_p8 = pnand %p2773_p4, %p2769_p5 }
  0x8b   : > { %2777 = shalt.err (!%p2774_p8)
}
  0x8c   : > { %s2778_s7 = scalar_lea.vmem %s3136_s5, 128  ;;  %s2887_s30 = smov [#allocation5]  }
  0x8d   : > { %p2779_p9 = scmp.ne.s32.totalorder %s3136_s5, %s2778_s7  ;;  %s2783_s11 = sshll.u32 %s2887_s30, 4  ;;  %s2784_s11 = int_to_ptr.vmem [resolvable:$false] %s2783_s11 }
  0x8e   : > { %s2785_s23 = scalar_lea.vmem %s2784_s11, 256  ;;  %p2786_p2 = scmp.lt.s32.totalorder %s3136_s5, %s2784_s11 }
  0x8f   : > { %p2781_p6 = pnand %p2779_p9, %p2739_p12  ;;  %p2787_p1 = scmp.lt.s32.totalorder %s2785_s23, %s2778_s7 }
  0x91   : > { %p2782_p13 = pneg %p2781_p6  ;;  %p2788_p7 = por %p2787_p1, %p2786_p2 }
  0x93   : > { %p2789_p10 = pnand %p2788_p7, %p2782_p13 }
  0x95   : > { %2792 = shalt.err (!%p2789_p10)
}
  0x96   : > { %s3507_s15 = smov 4   ;;  %s3508_s22 = smov 64  }
  0x97   : > { %2401 = dma.hbm_to_vmem [thread:$0]  (!%p3095_p11), %s3134_s9, 128, %s3136_s5, %s391_s17, %s3508_s22, %s3508_s22, %s3507_s15  }
  0x98   : > { %413 = sbr.rel (%p2975_p3) target bundleno = 1351 (0x547), region = 60  ;;  %s3166_s27 = sand.u32 (!%p2975_p3), 1, %s2865_s14  }
  0x99   : > { %s2000_s2 = sshll.u32 (!%p2975_p3), %s3166_s27, 4  ;;  %s416_s28 = scalar_lea.sflag (!%p2975_p3), [#allocation3], %s3166_s27 }
  0x9a   : > { %s3172_s29 = scalar_lea.vmem (!%p2975_p3), [#allocation2], %s2000_s2  ;;  %p3509_p12 = scmp.ne.s32.totalorder (!%p2975_p3), %s3501_s21, 0 }
  0x9d   : > { %2836 = dma.done.wait (%p3509_p12), %s416_s28, 256  }
  0x9e   : > { %2838 = vsyncadd (%p3509_p12), %s416_s28, 4294967040  ;;  %s424_s9 = sand.u32 1, %s2970_s19   ;;  %s2001_s20 = sshll.u32 %s3166_s27, 3 }
  0x9f   : > { %s425_s17 = scalar_lea.sflag [#allocation6], %s424_s9  ;;  %s3180_s5 = scalar_lea.vmem [#allocation5], %s2001_s20 }
  0xa0   : > { %2840 = dma.done.wait (%p3509_p12), %s425_s17, 128  }
  0xa1   : > { %2842 = vsyncadd (%p3509_p12), %s425_s17, 4294967168  ;;  %p3510_p3 = scmp.eq.s32.totalorder %s2970_s19, 0 }
  0xa3   : > { %2844 = dma.done.wait (%p3510_p3), [#allocation6], 1024   ;;  %p3511_p11 = pmov %p3510_p3 }
  0xa4   : > { %p3512_p5 = pmov %p3510_p3 }
  0xa5   : > { %2846 = vsyncadd (%p3511_p11), [#allocation6], 4294966272 }
  0xa6   : > { %2848 = dma.done.wait (%p3512_p5), [#allocation9], 5120   ;;  %p3513_p0 = pmov %p3510_p3 }
  0xa8   : > { %2850 = vsyncadd (%p3513_p0), [#allocation9], 4294962176  ;;  %p3514_p4 = pmov %p3513_p0 }
  0xa9   : > { %p3515_p8 = pmov %p3513_p0 }
  0xaa   : > { %2852 = dma.done.wait (%p3514_p4), [#allocation12], 5120  }
  0xab   : > { %2854 = vsyncadd (%p3515_p8), [#allocation12], 4294962176  ;;  %v2888_v0 = vmov 0.0   ;;  %vm2889_vm0 = vmmov 0   ;;  %v2466_v1 = vld [vmem:[#allocation7 + $0x38] sm:$0xff]   ;;  %v2467_v2 = vld [vmem:[#allocation7 + $0x30] sm:$0xff]   ;;  %v612_v18 = vlaneseq }
  0xac   : > { %2213 = vmatprep.subr.bf16.mxu0 %v2888_v0  ;;  %2229 = vmatprep.mubr.msk.bf16.mxu0 %vm2889_vm0, %v2888_v0  ;;  %v2468_v3 = vld [vmem:[#allocation7 + $0x28] sm:$0xff]   ;;  %v2475_v4 = vld [vmem:[#allocation8 + $0x38] sm:$0xff]   ;;  %v2469_v5 = vld [vmem:[#allocation7 + $0x20] sm:$0xff]   ;;  %v2890_v60 = vmov 0   ;;  %s489_s30 = scalar_lea.vmem [#allocation14], %s2000_s2  ;;  %s2105_s23 = sshll.u32 %s2970_s19, 8 }
  0xad   : > { %2233 = vmatprep.subr.bf16.mxu1 %v2888_v0  ;;  %2249 = vmatprep.mubr.msk.bf16.mxu1 %vm2889_vm0, %v2888_v0  ;;  %v2476_v6 = vld [vmem:[#allocation8 + $0x30] sm:$0xff]   ;;  %v2470_v7 = vld [vmem:[#allocation7 + $0x18] sm:$0xff]   ;;  %v2477_v8 = vld [vmem:[#allocation8 + $0x28] sm:$0xff]   ;;  %v3229_v19 = vshrl.u32 %v612_v18, 7  ;;  %s1842_s11 = sshll.u32 %s489_s30, 4  ;;  %s3425_s28 = scalar_lea.hbm %s3478_s10, %s2105_s23  ;;  %s3420_s11 = int_to_ptr.vmem [resolvable:$true] %s1842_s11 }
  0xae   : > { %2214 = vmatpush3.bf16.msra.mxu0 %v2466_v1  ;;  %2234 = vmatpush3.bf16.msra.mxu1 %v2475_v4  ;;  %v2471_v9 = vld [vmem:[#allocation7 + $0x10] sm:$0xff]   ;;  %v2478_v10 = vld [vmem:[#allocation8 + $0x20] sm:$0xff]   ;;  %v2472_v11 = vld [vmem:[#allocation7 + $0x8] sm:$0xff]   ;;  %s1829_s2 = scalar_lea.sflag [#allocation4], %s3166_s27  ;;  %p3516_p6 = scmp.ne.s32.totalorder %s3502_s25, 0 }
  0xaf   : > { %2215 = vmatprep.subr.bf16.mxu0 %v2888_v0  ;;  %2235 = vmatprep.subr.bf16.mxu1 %v2888_v0  ;;  %v2479_v12 = vld [vmem:[#allocation8 + $0x18] sm:$0xff]   ;;  %v2473_v13 = vld [vmem:[#allocation7] sm:$0xff]   ;;  %v2480_v15 = vld [vmem:[#allocation8 + $0x10] sm:$0xff]   ;;  %v614_v20 = vsub.s32 0, %v3229_v19  ;;  %s2891_s19 = smov [#allocation14]  }
  0xb0   : > { %v2474_v14 = vld [vmem:[%s3180_s5] sm:$0xff]   ;;  %v2481_v16 = vld [vmem:[#allocation8 + $0x8] sm:$0xff]   ;;  %v2482_v17 = vld [vmem:[#allocation8] sm:$0xff]   ;;  %s2797_s9 = sshll.u32 %s2891_s19, 4  ;;  %s2798_s9 = int_to_ptr.vmem [resolvable:$false] %s2797_s9 }
  0xb1   : > { %v494_v21 = vld [vmem:[%s3172_s29] sm:$0xff]  ;;  %v495_v27 = vld [vmem:[%s3172_s29 + $0x8] sm:$0xff]  ;;  %s2793_s29 = scalar_lea.vmem %s3420_s11, 256  ;;  %s2799_s20 = scalar_lea.vmem %s2798_s9, 512 }
  0xb2   : > { %2216 = vmatpush3.bf16.msra.mxu0 %v2467_v2  ;;  %2236 = vmatpush3.bf16.msra.mxu1 %v2476_v6  ;;  %v3236_v22 = vld [vmem:[%s3471_s3] sm:$0xf]  ;;  %v2485_v37 = vld [vmem:[#allocation10 + $0xe4] ss:$16 sps:$4 sm:$0xff]   ;;  %v2488_v38 = vld [vmem:[#allocation10 + $0xec] ss:$16 sps:$4 sm:$0xff]   ;;  %p2794_p9 = scmp.ne.s32.totalorder %s3420_s11, %s2793_s29  ;;  %p2800_p1 = scmp.lt.s32.totalorder %s3420_s11, %s2798_s9 }
  0xb3   : > { %2217 = vmatprep.subr.bf16.mxu0 %v2888_v0  ;;  %2237 = vmatprep.subr.bf16.mxu1 %v2888_v0  ;;  %v615_v25 = vrot.slane %v3236_v22, %v614_v20  ;;  %v2483_v39 = vld [vmem:[#allocation10 + $0xe0] ss:$16 sps:$4 sm:$0xff]   ;;  %v2486_v40 = vld [vmem:[#allocation10 + $0xe8] ss:$16 sps:$4 sm:$0xff]   ;;  %v2491_v41 = vld [vmem:[#allocation10 + $0xc4] ss:$16 sps:$4 sm:$0xff]   ;;  %p2801_p7 = scmp.lt.s32.totalorder %s2799_s20, %s2793_s29 }
  0xb4   : > { %v2494_v42 = vld [vmem:[#allocation10 + $0xcc] ss:$16 sps:$4 sm:$0xff]   ;;  %v2489_v43 = vld [vmem:[#allocation10 + $0xc0] ss:$16 sps:$4 sm:$0xff]   ;;  %v2492_v44 = vld [vmem:[#allocation10 + $0xc8] ss:$16 sps:$4 sm:$0xff]   ;;  %p2795_p13 = pnand %p2794_p9, %p3516_p6 }
  0xb5   : > { %v2497_v45 = vld [vmem:[#allocation10 + $0xa4] ss:$16 sps:$4 sm:$0xff]   ;;  %v2500_v46 = vld [vmem:[#allocation10 + $0xac] ss:$16 sps:$4 sm:$0xff]   ;;  %v2495_v47 = vld [vmem:[#allocation10 + $0xa0] ss:$16 sps:$4 sm:$0xff]   ;;  %p2802_p10 = por %p2801_p7, %p2800_p1 }
  0xb6   : > { %2218 = vmatpush3.bf16.msra.mxu0 %v2468_v3  ;;  %2238 = vmatpush3.bf16.msra.mxu1 %v2477_v8  ;;  %v2498_v48 = vld [vmem:[#allocation10 + $0xa8] ss:$16 sps:$4 sm:$0xff]   ;;  %v2501_v49 = vld [vmem:[#allocation10 + $0x80] ss:$16 sps:$4 sm:$0xff]   ;;  %v2503_v50 = vld [vmem:[#allocation10 + $0x84] ss:$16 sps:$4 sm:$0xff]   ;;  %p2796_p2 = pneg %p2795_p13 }
  0xb7   : > { %2219 = vmatprep.subr.bf16.mxu0 %v2888_v0  ;;  %2239 = vmatprep.subr.bf16.mxu1 %v2888_v0  ;;  %v2504_v51 = vld [vmem:[#allocation10 + $0x88] ss:$16 sps:$4 sm:$0xff]   ;;  %v2506_v52 = vld [vmem:[#allocation10 + $0x8c] ss:$16 sps:$4 sm:$0xff]   ;;  %v2509_v53 = vld [vmem:[#allocation10 + $0x64] ss:$16 sps:$4 sm:$0xff]  }
  0xb8   : > { %v2512_v54 = vld [vmem:[#allocation10 + $0x6c] ss:$16 sps:$4 sm:$0xff]   ;;  %v2507_v55 = vld [vmem:[#allocation10 + $0x60] ss:$16 sps:$4 sm:$0xff]   ;;  %v2510_v56 = vld [vmem:[#allocation10 + $0x68] ss:$16 sps:$4 sm:$0xff]   ;;  %p2803_p12 = pnand %p2802_p10, %p2796_p2 }
  0xb9   : > { %v2515_v57 = vld [vmem:[#allocation10 + $0x44] ss:$16 sps:$4 sm:$0xff]   ;;  %v2518_v58 = vld [vmem:[#allocation10 + $0x4c] ss:$16 sps:$4 sm:$0xff]   ;;  %v2513_v59 = vld [vmem:[#allocation10 + $0x40] ss:$16 sps:$4 sm:$0xff]  }
  0xba   : > { %2220 = vmatpush3.bf16.msra.mxu0 %v2469_v5  ;;  %2240 = vmatpush3.bf16.msra.mxu1 %v2478_v10  ;;  %v2516_v61 = vld [vmem:[#allocation10 + $0x48] ss:$16 sps:$4 sm:$0xff]   ;;  %v2521_v62 = vld [vmem:[#allocation10 + $0x24] ss:$16 sps:$4 sm:$0xff]   ;;  %v2524_v63 = vld [vmem:[#allocation10 + $0x2c] ss:$16 sps:$4 sm:$0xff]  }
  0xbb   : > { %2221 = vmatprep.subr.bf16.mxu0 %v2888_v0  ;;  %2241 = vmatprep.subr.bf16.mxu1 %v2888_v0  ;;  %v2519_v1 = vld [vmem:[#allocation10 + $0x20] ss:$16 sps:$4 sm:$0xff]   ;;  %v2522_v2 = vld [vmem:[#allocation10 + $0x28] ss:$16 sps:$4 sm:$0xff]   ;;  %v2527_v3 = vld [vmem:[#allocation10 + $0x4] ss:$16 sps:$4 sm:$0xff]  }
  0xbc   : > { %v2525_v5 = vld [vmem:[#allocation10] ss:$16 sps:$4 sm:$0xff]  }
  0xbe   : > { %2222 = vmatpush3.bf16.msra.mxu0 %v2470_v7  ;;  %2242 = vmatpush3.bf16.msra.mxu1 %v2479_v12 }
  0xbf   : > { %2223 = vmatprep.subr.bf16.mxu0 %v2888_v0  ;;  %2243 = vmatprep.subr.bf16.mxu1 %v2888_v0 }
  0xc2   : > { %2224 = vmatpush3.bf16.msra.mxu0 %v2471_v9  ;;  %2244 = vmatpush3.bf16.msra.mxu1 %v2480_v15 }
  0xc3   : > { %2225 = vmatprep.subr.bf16.mxu0 %v2888_v0  ;;  %2245 = vmatprep.subr.bf16.mxu1 %v2888_v0 }
  0xc6   : > { %2226 = vmatpush3.bf16.msra.mxu0 %v2472_v11  ;;  %2246 = vmatpush3.bf16.msra.mxu1 %v2481_v16 }
  0xc7   : > { %2227 = vmatprep.subr.bf16.mxu0 %v2888_v0  ;;  %2247 = vmatprep.subr.bf16.mxu1 %v2888_v0 }
  0xca   : > { %2228 = vmatpush3.bf16.msra.mxu0 %v2473_v13  ;;  %2248 = vmatpush3.bf16.msra.mxu1 %v2482_v17 }
  0xcb   : > { %2253 = vmatprep.subr.bf16.mxu0 %v2888_v0  ;;  %1009 = vmatprep.subr.bf16.mxu1 %v2485_v37 }
  0xcd   : > { %2230 = vmatmul.mubr.bf16.vlgmr.msra.gmra.mxu0 %v2474_v14 }
  0xce   : > { %2254 = vmatpush3.bf16.msra.mxu0 %v2475_v4  ;;  %2269 = vmatprep.mubr.msk.bf16.mxu0 %vm2889_vm0, %v2888_v0  ;;  %v2530_v4 = vld [vmem:[#allocation10 + $0xc] ss:$16 sps:$4 sm:$0xff]  }
  0xcf   : > { %2255 = vmatprep.subr.bf16.mxu0 %v2888_v0 }
  0xd2   : > { %2256 = vmatpush3.bf16.msra.mxu0 %v2476_v6  ;;  %v2528_v6 = vld [vmem:[#allocation10 + $0x8] ss:$16 sps:$4 sm:$0xff]  }
  0xd3   : > { %2257 = vmatprep.subr.bf16.mxu0 %v2888_v0 }
  0xd6   : > { %2258 = vmatpush3.bf16.msra.mxu0 %v2477_v8 }
  0xd7   : > { %2259 = vmatprep.subr.bf16.mxu0 %v2888_v0 }
  0xda   : > { %2260 = vmatpush3.bf16.msra.mxu0 %v2478_v10 }
  0xdb   : > { %2261 = vmatprep.subr.bf16.mxu0 %v2888_v0 }
  0xde   : > { %2262 = vmatpush3.bf16.msra.mxu0 %v2479_v12 }
  0xdf   : > { %2263 = vmatprep.subr.bf16.mxu0 %v2888_v0 }
  0xe2   : > { %2264 = vmatpush3.bf16.msra.mxu0 %v2480_v15 }
  0xe3   : > { %2265 = vmatprep.subr.bf16.mxu0 %v2888_v0 }
  0xe6   : > { %2266 = vmatpush3.bf16.msra.mxu0 %v2481_v16 }
  0xe7   : > { %2267 = vmatprep.subr.bf16.mxu0 %v2888_v0 }
  0xea   : > { %2268 = vmatpush3.bf16.msra.mxu0 %v2482_v17 }
  0xeb   : > { %1052 = vmatprep.subr.bf16.mxu0 %v2488_v38 }
 0x18d   : > { %v603_v23 = vpop.f32.mrf.mxu0 }
 0x18e   : > { %v610_v24 = vadd.f32 %v603_v23, %v494_v21 }
 0x18f   : > { %v2231_v26 = vpop.f32.mrf.mxu0 }
 0x190   : > { %v3242_v29 = vadd.f32 %v615_v25, %v610_v24  ;;  %v784_v26 = vsub.s32 1, %v3229_v19 }
 0x191   : > { %v606_v28 = vpop.f32.mrf.mxu0 }
 0x192   : > { %v611_v30 = vadd.f32 %v606_v28, %v495_v27  ;;  %v724_v34 = vmul.f32 %v3242_v29, %v3242_v29 }
 0x193   : > { %v2232_v31 = vpop.f32.mrf.mxu0 }
 0x194   : > { %v3244_v32 = vadd.f32 %v615_v25, %v611_v30  ;;  %v785_v30 = vrot.slane %v3236_v22, %v784_v26 }
 0x196   : > { %v634_v33 = vpack.c.bf16 %v3244_v32, %v3242_v29  ;;  %v725_v35 = vmul.f32 %v3244_v32, %v3244_v32 }
 0x198   : > { %2250 = vmatmul.mubr.bf16.vlgmr.msra.gmra.mxu1 %v634_v33  ;;  %v726_v36 = vpack.c.bf16 %v725_v35, %v724_v34  ;;  %v790_v33 = vsub.s32 2, %v3229_v19 }
 0x199   : > { %1010 = vmatpush1.bf16.msra.mxu1 %v2483_v39  ;;  %1041 = vmatprep.mubr.bf16.mxu1 %v2890_v60 }
 0x19a   : > { %2270 = vmatmul.mubr.bf16.vlgmr.msra.gmra.mxu0 %v726_v36  ;;  %1011 = vmatprep.subr.bf16.mxu1 %v2491_v41  ;;  %v791_v38 = vrot.slane %v3236_v22, %v790_v33 }
 0x19b   : > { %1053 = vmatpush1.bf16.msra.mxu0 %v2486_v40  ;;  %1084 = vmatprep.mubr.bf16.mxu0 %v2890_v60 }
 0x19c   : > { %1054 = vmatprep.subr.bf16.mxu0 %v2494_v42 }
 0x19d   : > { %1012 = vmatpush1.bf16.msra.mxu1 %v2489_v43  ;;  %v3266_v43 = vld [vmem:[#allocation11 + $0x38] sm:$0xff]  }
 0x19e   : > { %1013 = vmatprep.subr.bf16.mxu1 %v2497_v45  ;;  %v3278_v45 = vld [vmem:[#allocation11 + $0x28] sm:$0xff]  }
 0x19f   : > { %1055 = vmatpush1.bf16.msra.mxu0 %v2492_v44  ;;  %v3272_v44 = vld [vmem:[#allocation11 + $0x30] sm:$0xff]  }
 0x1a0   : > { %1056 = vmatprep.subr.bf16.mxu0 %v2500_v46  ;;  %v3284_v46 = vld [vmem:[#allocation11 + $0x20] sm:$0xff]  }
 0x1a1   : > { %1014 = vmatpush1.bf16.msra.mxu1 %v2495_v47  ;;  %v3290_v47 = vld [vmem:[#allocation11 + $0x18] sm:$0xff]  }
 0x1a2   : > { %1015 = vmatprep.subr.bf16.mxu1 %v2503_v50  ;;  %v3308_v50 = vld [vmem:[#allocation11] sm:$0xff]  }
 0x1a3   : > { %1057 = vmatpush1.bf16.msra.mxu0 %v2498_v48  ;;  %v3296_v48 = vld [vmem:[#allocation11 + $0x10] sm:$0xff]  }
 0x1a4   : > { %1058 = vmatprep.subr.bf16.mxu0 %v2506_v52 }
 0x1a5   : > { %1016 = vmatpush1.bf16.msra.mxu1 %v2501_v49  ;;  %v3302_v49 = vld [vmem:[#allocation11 + $0x8] sm:$0xff]  }
 0x1a6   : > { %1017 = vmatprep.subr.bf16.mxu1 %v2509_v53 }
 0x1a7   : > { %1059 = vmatpush1.bf16.msra.mxu0 %v2504_v51  ;;  %v827_v51 = vld [vmem:[%s3474_s6] sm:$0xf] }
 0x1a8   : > { %1060 = vmatprep.subr.bf16.mxu0 %v2512_v54  ;;  %v832_v52 = vrot.slane %v827_v51, %v614_v20  ;;  %v836_v53 = vrot.slane %v827_v51, %v784_v26 }
 0x1a9   : > { %1018 = vmatpush1.bf16.msra.mxu1 %v2507_v55 }
 0x1aa   : > { %1019 = vmatprep.subr.bf16.mxu1 %v2515_v57 }
 0x1ab   : > { %1061 = vmatpush1.bf16.msra.mxu0 %v2510_v56 }
 0x1ac   : > { %1062 = vmatprep.subr.bf16.mxu0 %v2518_v58 }
 0x1ad   : > { %1020 = vmatpush1.bf16.msra.mxu1 %v2513_v59 }
 0x1ae   : > { %1021 = vmatprep.subr.bf16.mxu1 %v2521_v62 }
 0x1af   : > { %1063 = vmatpush1.bf16.msra.mxu0 %v2516_v61 }
 0x1b0   : > { %1064 = vmatprep.subr.bf16.mxu0 %v2524_v63 }
 0x1b1   : > { %1022 = vmatpush1.bf16.msra.mxu1 %v2519_v1 }
 0x1b2   : > { %1023 = vmatprep.subr.bf16.mxu1 %v2527_v3 }
 0x1b3   : > { %1065 = vmatpush1.bf16.msra.mxu0 %v2522_v2 }
 0x1b4   : > { %1066 = vmatprep.subr.bf16.mxu0 %v2530_v4 }
 0x1b5   : > { %1024 = vmatpush1.bf16.msra.mxu1 %v2525_v5 }
 0x1b6   : > { %2273 = vmatprep.subr.bf16.mxu1 %v2888_v0 }
 0x1b7   : > { %1067 = vmatpush1.bf16.msra.mxu0 %v2528_v6 }
 0x1b8   : > { %2293 = vmatprep.subr.bf16.mxu0 %v2888_v0 }
 0x258   : > { %v717_v7 = vpop.f32.mrf.mxu1 }
 0x259   : > { %v768_v8 = vmul.f32 %v717_v7, %v717_v7  ;;  %v774_v27 = vsub.f32 %v3242_v29, %v717_v7 }
 0x25a   : > { %v2251_v9 = vpop.f32.mrf.mxu1  ;;  %v761_v10 = vpop.f32.mrf.mxu0 }
 0x25b   : > { %v770_v11 = vsub.f32 %v761_v10, %v768_v8 }
 0x25c   : > { %v720_v12 = vpop.f32.mrf.mxu1  ;;  %v2271_v13 = vpop.f32.mrf.mxu0 }
 0x25d   : > { %v772_v14 = vmax.f32 %v770_v11, 0.0  ;;  %v769_v15 = vmul.f32 %v720_v12, %v720_v12  ;;  %v775_v34 = vsub.f32 %v3244_v32, %v720_v12 }
 0x25e   : > { %v2252_v16 = vpop.f32.mrf.mxu1  ;;  %v764_v17 = vpop.f32.mrf.mxu0 }
 0x25f   : > { %v776_v18 = vadd.f32 1e-05, %v772_v14  ;;  %v771_v21 = vsub.f32 %v764_v17, %v769_v15  ;;  %v843_v15 = vsub.s32 3, %v3229_v19 }
 0x260   : > { %v2272_v23 = vpop.f32.mrf.mxu0 }
 0x261   : > { %2571 = vrsqrt.f32 %v776_v18  ;;  %v773_v24 = vmax.f32 %v771_v21, 0.0  ;;  %v840_v21 = vrot.slane %v827_v51, %v790_v33 }
 0x263   : > { %v777_v25 = vadd.f32 1e-05, %v773_v24 }
 0x265   : > { %2573 = vrsqrt.f32 %v777_v25  ;;  %v844_v25 = vrot.slane %v827_v51, %v843_v15 }
 0x26e   : > { %v2572_v28 = vpop.eup %2571 }
 0x26f   : > { %v780_v31 = vmul.f32 %v2572_v28, %v774_v27 }
 0x271   : > { %v786_v37 = vmul.f32 %v785_v30, %v780_v31 }
 0x272   : > { %v2574_v35 = vpop.eup %2573 }
 0x273   : > { %v781_v36 = vmul.f32 %v2574_v35, %v775_v34  ;;  %v792_v40 = vadd.f32 %v791_v38, %v786_v37 }
 0x275   : > { %v787_v39 = vmul.f32 %v785_v30, %v781_v36 }
 0x277   : > { %v793_v41 = vadd.f32 %v791_v38, %v787_v39 }
 0x279   : > { %v794_v42 = vpack.c.bf16 %v793_v41, %v792_v40 }
 0x27b   : > { %1042 = vmatmul.mubr.bf16.vlgmr.msra.gmra.mxu1 %v794_v42  ;;  %1085 = vmatmul.mubr.bf16.vlgmr.msra.gmra.mxu0 %v794_v42 }
 0x27c   : > { %2289 = vmatprep.mubr.msk.bf16.mxu1 %vm2889_vm0, %v2888_v0  ;;  %2309 = vmatprep.mubr.msk.bf16.mxu0 %vm2889_vm0, %v2888_v0 }
 0x27d   : > { %2274 = vmatpush3.bf16.msra.mxu1 %v3266_v43  ;;  %2294 = vmatpush3.bf16.msra.mxu0 %v3266_v43 }
 0x27e   : > { %2275 = vmatprep.subr.bf16.mxu1 %v2888_v0  ;;  %2295 = vmatprep.subr.bf16.mxu0 %v2888_v0 }
 0x281   : > { %2276 = vmatpush3.bf16.msra.mxu1 %v3272_v44  ;;  %2296 = vmatpush3.bf16.msra.mxu0 %v3272_v44 }
 0x282   : > { %2277 = vmatprep.subr.bf16.mxu1 %v2888_v0  ;;  %2297 = vmatprep.subr.bf16.mxu0 %v2888_v0 }
 0x285   : > { %2278 = vmatpush3.bf16.msra.mxu1 %v3278_v45  ;;  %2298 = vmatpush3.bf16.msra.mxu0 %v3278_v45 }
 0x286   : > { %2279 = vmatprep.subr.bf16.mxu1 %v2888_v0  ;;  %2299 = vmatprep.subr.bf16.mxu0 %v2888_v0 }
 0x289   : > { %2280 = vmatpush3.bf16.msra.mxu1 %v3284_v46  ;;  %2300 = vmatpush3.bf16.msra.mxu0 %v3284_v46 }
 0x28a   : > { %2281 = vmatprep.subr.bf16.mxu1 %v2888_v0  ;;  %2301 = vmatprep.subr.bf16.mxu0 %v2888_v0 }
 0x28d   : > { %2282 = vmatpush3.bf16.msra.mxu1 %v3290_v47  ;;  %2302 = vmatpush3.bf16.msra.mxu0 %v3290_v47 }
 0x28e   : > { %2283 = vmatprep.subr.bf16.mxu1 %v2888_v0  ;;  %2303 = vmatprep.subr.bf16.mxu0 %v2888_v0 }
 0x291   : > { %2284 = vmatpush3.bf16.msra.mxu1 %v3296_v48  ;;  %2304 = vmatpush3.bf16.msra.mxu0 %v3296_v48 }
 0x292   : > { %2285 = vmatprep.subr.bf16.mxu1 %v2888_v0  ;;  %2305 = vmatprep.subr.bf16.mxu0 %v2888_v0 }
 0x295   : > { %2286 = vmatpush3.bf16.msra.mxu1 %v3302_v49  ;;  %2306 = vmatpush3.bf16.msra.mxu0 %v3302_v49 }
 0x296   : > { %2287 = vmatprep.subr.bf16.mxu1 %v2888_v0  ;;  %2307 = vmatprep.subr.bf16.mxu0 %v2888_v0 }
 0x299   : > { %2288 = vmatpush3.bf16.msra.mxu1 %v3308_v50  ;;  %2308 = vmatpush3.bf16.msra.mxu0 %v3308_v50 }
 0x29a   : > { %2313 = vmatprep.subr.bf16.mxu1 %v2888_v0  ;;  %2333 = vmatprep.subr.bf16.mxu0 %v2888_v0 }
 0x33b   : > { %v1043_v54 = vpop.f32.mrf.mxu1  ;;  %v1086_v61 = vpop.f32.mrf.mxu0 }
 0x33c   : > { %v3319_v55 = vadd.f32 %v1043_v54, %v832_v52  ;;  %v3338_v30 = vadd.f32 %v1086_v61, %v840_v21 }
 0x33d   : > { %v1045_v56 = vpop.f32.mrf.mxu1  ;;  %v1088_v7 = vpop.f32.mrf.mxu0 }
 0x33e   : > { %v1095_v57 = vmul.f32 %v3319_v55, %v3319_v55  ;;  %v3323_v58 = vadd.f32 %v1045_v56, %v836_v53  ;;  %v3342_v34 = vadd.f32 %v1088_v7, %v844_v25  ;;  %v1097_v35 = vmul.f32 %v3338_v30, %v3338_v30 }
 0x33f   : > { %v1047_v59 = vpop.f32.mrf.mxu1  ;;  %v1090_v16 = vpop.f32.mrf.mxu0 }
 0x340   : > { %v1103_v60 = vmul.f32 %v1095_v57, %v3319_v55  ;;  %v1096_v62 = vmul.f32 %v3323_v58, %v3323_v58  ;;  %v1048_v63 = vadd.f32 %v1047_v59, %v832_v52  ;;  %v3336_v27 = vadd.f32 %v1090_v16, %v840_v21 }
 0x341   : > { %v1049_v1 = vpop.f32.mrf.mxu1  ;;  %v1092_v26 = vpop.f32.mrf.mxu0  ;;  %v1098_v37 = vmul.f32 %v3342_v34, %v3342_v34  ;;  %v1105_v40 = vmul.f32 %v1097_v35, %v3338_v30 }
 0x342   : > { %v1111_v20 = vmul.f32 0.044715, %v1103_v60  ;;  %v1104_v2 = vmul.f32 %v1096_v62, %v3323_v58  ;;  %v1099_v3 = vmul.f32 %v1048_v63, %v1048_v63  ;;  %v1050_v4 = vadd.f32 %v1049_v1, %v836_v53 }
 0x343   : > { %v3340_v31 = vadd.f32 %v1092_v26, %v844_v25  ;;  %v1101_v33 = vmul.f32 %v3336_v27, %v3336_v27  ;;  %v1106_v52 = vmul.f32 %v1098_v37, %v3342_v34  ;;  %v1113_v57 = vmul.f32 0.044715, %v1105_v40  ;;  %v2548_v40 = vld [vmem:[#allocation13 + $0x18] sm:$0xff]  }
 0x344   : > { %v1119_v5 = vadd.f32 %v1111_v20, %v3319_v55  ;;  %v1112_v6 = vmul.f32 0.044715, %v1104_v2  ;;  %v1107_v8 = vmul.f32 %v1099_v3, %v1048_v63  ;;  %v1100_v9 = vmul.f32 %v1050_v4, %v1050_v4 }
 0x345   : > { %v1102_v36 = vmul.f32 %v3340_v31, %v3340_v31  ;;  %v1109_v39 = vmul.f32 %v1101_v33, %v3336_v27  ;;  %v1114_v1 = vmul.f32 0.044715, %v1106_v52  ;;  %v2552_v52 = vld [vmem:[#allocation13 + $0x8] sm:$0xff]  }
 0x346   : > { %v1127_v10 = vmul.f32 0.7978846, %v1119_v5  ;;  %v1120_v11 = vadd.f32 %v1112_v6, %v3323_v58  ;;  %v1115_v12 = vmul.f32 0.044715, %v1107_v8  ;;  %v1108_v13 = vmul.f32 %v1100_v9, %v1050_v4 }
 0x347   : > { %v1110_v51 = vmul.f32 %v1102_v36, %v3340_v31  ;;  %v1117_v54 = vmul.f32 0.044715, %v1109_v39  ;;  %v1121_v6 = vadd.f32 %v1113_v57, %v3338_v30  ;;  %v2545_v39 = vld [vmem:[#allocation13 + $0x60] sm:$0xff]   ;;  %v2556_v57 = vld [vmem:[#allocation13 + $0xb8] sm:$0xff]  }
 0x348   : > { %2575 = vtanh.f32 %v1127_v10  ;;  %v1128_v14 = vmul.f32 0.7978846, %v1120_v11  ;;  %v1123_v17 = vadd.f32 %v1115_v12, %v1048_v63  ;;  %v1116_v18 = vmul.f32 0.044715, %v1108_v13 }
 0x349   : > { %v1118_v61 = vmul.f32 0.044715, %v1110_v51  ;;  %v1125_v3 = vadd.f32 %v1117_v54, %v3336_v27  ;;  %v1122_v11 = vadd.f32 %v1114_v1, %v3342_v34  ;;  %v2551_v51 = vld [vmem:[#allocation13 + $0x48] sm:$0xff]   ;;  %v2554_v54 = vld [vmem:[#allocation13] sm:$0xff]  }
 0x34a   : > { %2577 = vtanh.f32 %v1128_v14  ;;  %v1131_v23 = vmul.f32 0.7978846, %v1123_v17  ;;  %v1124_v24 = vadd.f32 %v1116_v18, %v1050_v4  ;;  %v1129_v17 = vmul.f32 0.7978846, %v1121_v6  ;;  %v2561_v1 = vld [vmem:[#allocation13 + $0xe0] sm:$0xff]   ;;  %v2566_v6 = vld [vmem:[#allocation13 + $0x90] sm:$0xff]  }
 0x34b   : > { %v1126_v10 = vadd.f32 %v1118_v61, %v3340_v31  ;;  %v1133_v13 = vmul.f32 0.7978846, %v1125_v3  ;;  %v2559_v61 = vld [vmem:[#allocation13 + $0xe8] sm:$0xff]   ;;  %v2564_v3 = vld [vmem:[#allocation13 + $0x98] sm:$0xff]  }
 0x34c   : > { %2579 = vtanh.f32 %v1131_v23  ;;  %v1132_v28 = vmul.f32 0.7978846, %v1124_v24 }
 0x34d   : > { %v1134_v18 = vmul.f32 0.7978846, %v1126_v10  ;;  %v2570_v10 = vld [vmem:[#allocation13 + $0x80] sm:$0xff]  }
 0x34e   : > { %2581 = vtanh.f32 %v1132_v28 }
 0x34f   : > { %2583 = vtanh.f32 %v1133_v13 }
 0x350   : > { %2585 = vtanh.f32 %v1129_v17 }
 0x351   : > { %2587 = vtanh.f32 %v1134_v18 }
 0x355   : > { %v2576_v38 = vpop.eup %2575 }
 0x356   : > { %v1143_v42 = vadd.f32 1.0, %v2576_v38  ;;  %v2540_v38 = vld [vmem:[#allocation13 + $0x38] sm:$0xff]  }
 0x357   : > { %v2578_v41 = vpop.eup %2577 }
 0x358   : > { %v1144_v53 = vadd.f32 1.0, %v2578_v41  ;;  %v1151_v59 = vmul.f32 0.5, %v1143_v42  ;;  %v2549_v41 = vld [vmem:[#allocation13 + $0x50] sm:$0xff]  }
 0x359   : > { %v2580_v56 = vpop.eup %2579  ;;  %v2550_v42 = vld [vmem:[#allocation13 + $0x10] sm:$0xff]  }
 0x35a   : > { %v1147_v60 = vadd.f32 1.0, %v2580_v56  ;;  %v1152_v20 = vmul.f32 0.5, %v1144_v53  ;;  %v1159_v7 = vmul.f32 %v1151_v59, %v3319_v55  ;;  %v1130_v55 = vmul.f32 0.7978846, %v1122_v11  ;;  %v2553_v53 = vld [vmem:[#allocation13 + $0x40] sm:$0xff]   ;;  %v2555_v56 = vld [vmem:[#allocation13 + $0xf8] sm:$0xff]  }
 0x35b   : > { %v2582_v62 = vpop.eup %2581  ;;  %v2557_v59 = vld [vmem:[#allocation13 + $0xf0] sm:$0xff]  }
 0x35c   : > { %v1155_v2 = vmul.f32 0.5, %v1147_v60  ;;  %v1148_v5 = vadd.f32 1.0, %v2582_v62  ;;  %v1160_v12 = vmul.f32 %v1152_v20, %v3323_v58  ;;  %2589 = vtanh.f32 %v1130_v55  ;;  %v2558_v60 = vld [vmem:[#allocation13 + $0xb0] sm:$0xff]   ;;  %v2560_v62 = vld [vmem:[#allocation13 + $0xa8] sm:$0xff]   ;;  %v2562_v20 = vld [vmem:[#allocation13 + $0xa0] sm:$0xff]  }
 0x35d   : > { %v3403_v11 = vld [vmem:[%s3476_s8] ss:$0 sm:$0xff] }
 0x35e   : > { %v1163_v8 = vmul.f32 %v1155_v2, %v1048_v63  ;;  %v1156_v9 = vmul.f32 0.5, %v1148_v5  ;;  %v2563_v2 = vld [vmem:[#allocation13 + $0xd8] sm:$0xff]   ;;  %v2565_v5 = vld [vmem:[#allocation13 + $0xd0] sm:$0xff]  }
 0x360   : > { %v1164_v14 = vmul.f32 %v1156_v9, %v1050_v4  ;;  %v1168_v16 = vpack.c.bf16 %v1163_v8, %v1159_v7  ;;  %v2567_v7 = vld [vmem:[#allocation13 + $0xc8] sm:$0xff]   ;;  %v2569_v9 = vld [vmem:[#allocation13 + $0xc0] sm:$0xff]  }
 0x361   : > { %v2568_v8 = vld [vmem:[#allocation13 + $0x88] sm:$0xff]  }
 0x362   : > { %2290 = vmatmul.mubr.bf16.vlgmr.msra.gmra.mxu1 %v1168_v16  ;;  %v1298_v21 = vpack.c.bf16 %v1164_v14, %v1160_v12 }
 0x363   : > { %2314 = vmatpush3.bf16.msra.mxu1 %v3266_v43  ;;  %2329 = vmatprep.mubr.msk.bf16.mxu1 %vm2889_vm0, %v2888_v0 }
 0x364   : > { %2310 = vmatmul.mubr.bf16.vlgmr.msra.gmra.mxu0 %v1298_v21  ;;  %2315 = vmatprep.subr.bf16.mxu1 %v2888_v0 }
 0x365   : > { %2334 = vmatpush3.bf16.msra.mxu0 %v3266_v43  ;;  %2349 = vmatprep.mubr.msk.bf16.mxu0 %vm2889_vm0, %v2888_v0  ;;  %v2584_v43 = vpop.eup %2583 }
 0x366   : > { %2335 = vmatprep.subr.bf16.mxu0 %v2888_v0  ;;  %v2586_v58 = vpop.eup %2585  ;;  %v1149_v63 = vadd.f32 1.0, %v2584_v43 }
 0x367   : > { %2316 = vmatpush3.bf16.msra.mxu1 %v3272_v44 }
 0x368   : > { %2317 = vmatprep.subr.bf16.mxu1 %v2888_v0 }
 0x369   : > { %2336 = vmatpush3.bf16.msra.mxu0 %v3272_v44  ;;  %v2588_v44 = vpop.eup %2587 }
 0x36a   : > { %2337 = vmatprep.subr.bf16.mxu0 %v2888_v0  ;;  %v2590_v4 = vpop.eup %2589  ;;  %v1150_v23 = vadd.f32 1.0, %v2588_v44 }
 0x36b   : > { %2318 = vmatpush3.bf16.msra.mxu1 %v3278_v45  ;;  %v1146_v24 = vadd.f32 1.0, %v2590_v4 }
 0x36c   : > { %2319 = vmatprep.subr.bf16.mxu1 %v2888_v0  ;;  %v1158_v26 = vmul.f32 0.5, %v1150_v23 }
 0x36d   : > { %2338 = vmatpush3.bf16.msra.mxu0 %v3278_v45  ;;  %v1145_v45 = vadd.f32 1.0, %v2586_v58  ;;  %v1154_v28 = vmul.f32 0.5, %v1146_v24 }
 0x36e   : > { %2339 = vmatprep.subr.bf16.mxu0 %v2888_v0  ;;  %v1166_v35 = vmul.f32 %v1158_v26, %v3340_v31  ;;  %v2543_v31 = vld [vmem:[#allocation13 + $0x68] sm:$0xff]  }
 0x36f   : > { %2320 = vmatpush3.bf16.msra.mxu1 %v3284_v46  ;;  %v1153_v25 = vmul.f32 0.5, %v1145_v45 }
 0x370   : > { %2321 = vmatprep.subr.bf16.mxu1 %v2888_v0 }
 0x371   : > { %2340 = vmatpush3.bf16.msra.mxu0 %v3284_v46  ;;  %v1157_v46 = vmul.f32 0.5, %v1149_v63  ;;  %v1161_v33 = vmul.f32 %v1153_v25, %v3338_v30  ;;  %v2542_v30 = vld [vmem:[#allocation13 + $0x30] sm:$0xff]  }
 0x372   : > { %2341 = vmatprep.subr.bf16.mxu0 %v2888_v0 }
 0x373   : > { %2322 = vmatpush3.bf16.msra.mxu1 %v3290_v47 }
 0x374   : > { %2323 = vmatprep.subr.bf16.mxu1 %v2888_v0 }
 0x375   : > { %2342 = vmatpush3.bf16.msra.mxu0 %v3290_v47  ;;  %v1165_v47 = vmul.f32 %v1157_v46, %v3336_v27  ;;  %v2539_v27 = vld [vmem:[#allocation13 + $0x78] sm:$0xff]  }
 0x376   : > { %2343 = vmatprep.subr.bf16.mxu0 %v2888_v0 }
 0x377   : > { %2324 = vmatpush3.bf16.msra.mxu1 %v3296_v48  ;;  %v1358_v36 = vpack.c.bf16 %v1165_v47, %v1161_v33 }
 0x378   : > { %2325 = vmatprep.subr.bf16.mxu1 %v2888_v0 }
 0x379   : > { %2344 = vmatpush3.bf16.msra.mxu0 %v3296_v48  ;;  %v1162_v48 = vmul.f32 %v1154_v28, %v3342_v34  ;;  %v2546_v34 = vld [vmem:[#allocation13 + $0x20] sm:$0xff]  }
 0x37a   : > { %2345 = vmatprep.subr.bf16.mxu0 %v2888_v0 }
 0x37b   : > { %2326 = vmatpush3.bf16.msra.mxu1 %v3302_v49  ;;  %v1418_v37 = vpack.c.bf16 %v1166_v35, %v1162_v48 }
 0x37c   : > { %2327 = vmatprep.subr.bf16.mxu1 %v2888_v0 }
 0x37d   : > { %2346 = vmatpush3.bf16.msra.mxu0 %v3302_v49  ;;  %v2541_v49 = vld [vmem:[#allocation13 + $0x70] sm:$0xff]  }
 0x37e   : > { %2347 = vmatprep.subr.bf16.mxu0 %v2888_v0  ;;  %v2544_v0 = vld [vmem:[#allocation13 + $0x28] sm:$0xff]  }
 0x37f   : > { %2328 = vmatpush3.bf16.msra.mxu1 %v3308_v50 }
 0x380   : > { %2169 = vmatprep.subr.bf16.mxu1 %v2539_v27 }
 0x381   : > { %2348 = vmatpush3.bf16.msra.mxu0 %v3308_v50  ;;  %v2547_v50 = vld [vmem:[#allocation13 + $0x58] sm:$0xff]  }
 0x382   : > { %2330 = vmatmul.mubr.bf16.vlgmr.msra.gmra.mxu1 %v1358_v36  ;;  %2191 = vmatprep.subr.bf16.mxu0 %v2555_v56 }
 0x383   : > { %2170 = vmatpush3.bf16.msra.mxu1 %v2540_v38 }
 0x384   : > { %2350 = vmatmul.mubr.bf16.vlgmr.msra.gmra.mxu0 %v1418_v37  ;;  %2171 = vmatprep.subr.bf16.mxu1 %v2541_v49 }
 0x385   : > { %2192 = vmatpush3.bf16.msra.mxu0 %v2556_v57 }
 0x386   : > { %2193 = vmatprep.subr.bf16.mxu0 %v2557_v59 }
 0x387   : > { %2172 = vmatpush3.bf16.msra.mxu1 %v2542_v30 }
 0x388   : > { %2173 = vmatprep.subr.bf16.mxu1 %v2543_v31 }
 0x389   : > { %2194 = vmatpush3.bf16.msra.mxu0 %v2558_v60 }
 0x38a   : > { %2195 = vmatprep.subr.bf16.mxu0 %v2559_v61 }
 0x38b   : > { %2174 = vmatpush3.bf16.msra.mxu1 %v2544_v0 }
 0x38c   : > { %2175 = vmatprep.subr.bf16.mxu1 %v2545_v39 }
 0x38d   : > { %2196 = vmatpush3.bf16.msra.mxu0 %v2560_v62 }
 0x38e   : > { %2197 = vmatprep.subr.bf16.mxu0 %v2561_v1 }
 0x38f   : > { %2176 = vmatpush3.bf16.msra.mxu1 %v2546_v34 }
 0x390   : > { %2177 = vmatprep.subr.bf16.mxu1 %v2547_v50 }
 0x391   : > { %2198 = vmatpush3.bf16.msra.mxu0 %v2562_v20 }
 0x392   : > { %2199 = vmatprep.subr.bf16.mxu0 %v2563_v2 }
 0x393   : > { %2178 = vmatpush3.bf16.msra.mxu1 %v2548_v40 }
 0x394   : > { %2179 = vmatprep.subr.bf16.mxu1 %v2549_v41 }
 0x395   : > { %2200 = vmatpush3.bf16.msra.mxu0 %v2564_v3 }
 0x396   : > { %2201 = vmatprep.subr.bf16.mxu0 %v2565_v5 }
 0x397   : > { %2180 = vmatpush3.bf16.msra.mxu1 %v2550_v42 }
 0x398   : > { %2181 = vmatprep.subr.bf16.mxu1 %v2551_v51 }
 0x399   : > { %2202 = vmatpush3.bf16.msra.mxu0 %v2566_v6 }
 0x39a   : > { %2203 = vmatprep.subr.bf16.mxu0 %v2567_v7 }
 0x39b   : > { %2182 = vmatpush3.bf16.msra.mxu1 %v2552_v52 }
 0x39c   : > { %2183 = vmatprep.subr.bf16.mxu1 %v2553_v53 }
 0x39d   : > { %2204 = vmatpush3.bf16.msra.mxu0 %v2568_v8 }
 0x39e   : > { %2205 = vmatprep.subr.bf16.mxu0 %v2569_v9 }
 0x39f   : > { %2184 = vmatpush3.bf16.msra.mxu1 %v2554_v54 }
 0x3a1   : > { %2206 = vmatpush3.bf16.msra.mxu0 %v2570_v10 }
 0x422   : > { %v1273_v12 = vpop.f32.mrf.mxu1 }
 0x423   : > { %v1274_v13 = vadd.f32 %v3403_v11, %v1273_v12 }
 0x424   : > { %v2291_v14 = vpop.f32.mrf.mxu1  ;;  %v1333_v16 = vpop.f32.mrf.mxu0 }
 0x425   : > { %v1280_v17 = vmul.f32 %v1274_v13, %v1274_v13  ;;  %v1334_v18 = vadd.f32 %v3403_v11, %v1333_v16 }
 0x426   : > { %v1276_v21 = vpop.f32.mrf.mxu1  ;;  %v2311_v55 = vpop.f32.mrf.mxu0 }
 0x427   : > { %v1282_v43 = vmul.f32 %v1280_v17, %v1274_v13  ;;  %v1340_v58 = vmul.f32 %v1334_v18, %v1334_v18  ;;  %v1277_v44 = vadd.f32 %v3403_v11, %v1276_v21 }
 0x428   : > { %v2292_v63 = vpop.f32.mrf.mxu1  ;;  %v1336_v4 = vpop.f32.mrf.mxu0 }
 0x429   : > { %v1284_v45 = vmul.f32 0.044715, %v1282_v43  ;;  %v1342_v23 = vmul.f32 %v1340_v58, %v1334_v18  ;;  %v1281_v24 = vmul.f32 %v1277_v44, %v1277_v44  ;;  %v1337_v46 = vadd.f32 %v3403_v11, %v1336_v4 }
 0x42a   : > { %v2312_v25 = vpop.f32.mrf.mxu0 }
 0x42b   : > { %v1286_v26 = vadd.f32 %v1284_v45, %v1274_v13  ;;  %v1344_v28 = vmul.f32 0.044715, %v1342_v23  ;;  %v1283_v47 = vmul.f32 %v1281_v24, %v1277_v44  ;;  %v1341_v33 = vmul.f32 %v1337_v46, %v1337_v46 }
 0x42d   : > { %v1288_v35 = vmul.f32 0.7978846, %v1286_v26  ;;  %v1346_v48 = vadd.f32 %v1344_v28, %v1334_v18  ;;  %v1285_v36 = vmul.f32 0.044715, %v1283_v47  ;;  %v1343_v37 = vmul.f32 %v1341_v33, %v1337_v46 }
 0x42f   : > { %v1348_v27 = vmul.f32 0.7978846, %v1346_v48  ;;  %v1287_v38 = vadd.f32 %v1285_v36, %v1277_v44  ;;  %v1345_v49 = vmul.f32 0.044715, %v1343_v37  ;;  %2591 = vtanh.f32 %v1288_v35 }
 0x431   : > { %2593 = vtanh.f32 %v1348_v27  ;;  %v1289_v30 = vmul.f32 0.7978846, %v1287_v38  ;;  %v1347_v31 = vadd.f32 %v1345_v49, %v1337_v46 }
 0x433   : > { %2595 = vtanh.f32 %v1289_v30  ;;  %v1349_v0 = vmul.f32 0.7978846, %v1347_v31 }
 0x435   : > { %2597 = vtanh.f32 %v1349_v0 }
 0x43c   : > { %v2592_v39 = vpop.eup %2591 }
 0x43d   : > { %v1292_v40 = vadd.f32 1.0, %v2592_v39 }
 0x43e   : > { %v2594_v34 = vpop.eup %2593 }
 0x43f   : > { %v1352_v41 = vadd.f32 1.0, %v2594_v34  ;;  %v1294_v57 = vmul.f32 0.5, %v1292_v40 }
 0x440   : > { %v2596_v50 = vpop.eup %2595 }
 0x441   : > { %v1293_v42 = vadd.f32 1.0, %v2596_v50  ;;  %v1354_v61 = vmul.f32 0.5, %v1352_v41  ;;  %v1296_v10 = vmul.f32 %v1294_v57, %v1274_v13 }
 0x442   : > { %v2598_v51 = vpop.eup %2597  ;;  %v1393_v52 = vpop.f32.mrf.mxu1 }
 0x443   : > { %v1295_v53 = vmul.f32 0.5, %v1293_v42  ;;  %v1394_v54 = vadd.f32 %v3403_v11, %v1393_v52  ;;  %v1353_v56 = vadd.f32 1.0, %v2598_v51  ;;  %v1356_v16 = vmul.f32 %v1354_v61, %v1334_v18 }
 0x444   : > { %v2331_v59 = vpop.f32.mrf.mxu1  ;;  %v1453_v60 = vpop.f32.mrf.mxu0 }
 0x445   : > { %v1400_v62 = vmul.f32 %v1394_v54, %v1394_v54  ;;  %v1454_v1 = vadd.f32 %v3403_v11, %v1453_v60  ;;  %v1355_v20 = vmul.f32 0.5, %v1353_v56  ;;  %v1297_v2 = vmul.f32 %v1295_v53, %v1277_v44 }
 0x446   : > { %v1396_v3 = vpop.f32.mrf.mxu1  ;;  %v2351_v5 = vpop.f32.mrf.mxu0  ;;  %v1549_v60 = vrot.slane %v3236_v22, %v843_v15 }
 0x447   : > { %v1402_v6 = vmul.f32 %v1400_v62, %v1394_v54  ;;  %v1460_v7 = vmul.f32 %v1454_v1, %v1454_v1  ;;  %v1397_v8 = vadd.f32 %v3403_v11, %v1396_v3  ;;  %v1357_v9 = vmul.f32 %v1355_v20, %v1337_v46 }
 0x448   : > { %v2332_v12 = vpop.f32.mrf.mxu1  ;;  %v1456_v14 = vpop.f32.mrf.mxu0  ;;  %v1478_v4 = vpack.c.bf16 %v1297_v2, %v1296_v10 }
 0x449   : > { %v1404_v17 = vmul.f32 0.044715, %v1402_v6  ;;  %v1462_v21 = vmul.f32 %v1460_v7, %v1454_v1  ;;  %v1401_v55 = vmul.f32 %v1397_v8, %v1397_v8  ;;  %v1457_v43 = vadd.f32 %v3403_v11, %v1456_v14 }
 0x44a   : > { %v2352_v58 = vpop.f32.mrf.mxu0  ;;  %v1479_v63 = vpack.c.bf16 %v1357_v9, %v1356_v16 }
 0x44b   : > { %v1406_v44 = vadd.f32 %v1404_v17, %v1394_v54  ;;  %v1464_v45 = vmul.f32 0.044715, %v1462_v21  ;;  %v1403_v23 = vmul.f32 %v1401_v55, %v1397_v8  ;;  %v1461_v24 = vmul.f32 %v1457_v43, %v1457_v43 }
 0x44c   : > { %1774 = vmatprep.mubr.bf16.mxu1 %v1479_v63 }
 0x44d   : > { %v1408_v25 = vmul.f32 0.7978846, %v1406_v44  ;;  %v1466_v26 = vadd.f32 %v1464_v45, %v1454_v1  ;;  %v1405_v46 = vmul.f32 0.044715, %v1403_v23  ;;  %v1463_v13 = vmul.f32 %v1461_v24, %v1457_v43  ;;  %1775 = vmatmul.mubr.bf16.vlgmr.msra.gmra.mxu1 %v1478_v4 }
 0x44f   : > { %v1468_v28 = vmul.f32 0.7978846, %v1466_v26  ;;  %v1407_v18 = vadd.f32 %v1405_v46, %v1397_v8  ;;  %v1465_v47 = vmul.f32 0.044715, %v1463_v13  ;;  %2599 = vtanh.f32 %v1408_v25 }
 0x451   : > { %2601 = vtanh.f32 %v1468_v28  ;;  %v1409_v33 = vmul.f32 0.7978846, %v1407_v18  ;;  %v1467_v11 = vadd.f32 %v1465_v47, %v1457_v43 }
 0x453   : > { %2603 = vtanh.f32 %v1409_v33  ;;  %v1469_v35 = vmul.f32 0.7978846, %v1467_v11 }
 0x455   : > { %2605 = vtanh.f32 %v1469_v35 }
 0x45c   : > { %v2600_v48 = vpop.eup %2599 }
 0x45d   : > { %v1412_v38 = vadd.f32 1.0, %v2600_v48 }
 0x45e   : > { %v2602_v36 = vpop.eup %2601 }
 0x45f   : > { %v1472_v37 = vadd.f32 1.0, %v2602_v36  ;;  %v1414_v34 = vmul.f32 0.5, %v1412_v38 }
 0x460   : > { %v2604_v27 = vpop.eup %2603 }
 0x461   : > { %v1413_v49 = vadd.f32 1.0, %v2604_v27  ;;  %v1474_v39 = vmul.f32 0.5, %v1472_v37  ;;  %v1416_v51 = vmul.f32 %v1414_v34, %v1394_v54 }
 0x462   : > { %v2606_v30 = vpop.eup %2605 }
 0x463   : > { %v1415_v31 = vmul.f32 0.5, %v1413_v49  ;;  %v1473_v0 = vadd.f32 1.0, %v2606_v30  ;;  %v1476_v41 = vmul.f32 %v1474_v39, %v1454_v1 }
 0x465   : > { %v1475_v50 = vmul.f32 0.5, %v1473_v0  ;;  %v1417_v40 = vmul.f32 %v1415_v31, %v1397_v8 }
 0x467   : > { %v1477_v42 = vmul.f32 %v1475_v50, %v1457_v43  ;;  %v1480_v53 = vpack.c.bf16 %v1417_v40, %v1416_v51 }
 0x469   : > { %v1481_v52 = vpack.c.bf16 %v1477_v42, %v1476_v41 }
 0x46b   : > { %1815 = vmatprep.mubr.bf16.mxu0 %v1481_v52 }
 0x46c   : > { %1816 = vmatmul.mubr.bf16.vlgmr.msra.gmra.mxu0 %v1480_v53 }
 0x50d   : > { %v2185_v56 = vpop.f32.mrf.mxu1 }
 0x50f   : > { %v2186_v57 = vpop.f32.mrf.mxu1 }
 0x510   : > { %v2187_v61 = vadd.f32 %v2186_v57, %v2185_v56 }
 0x511   : > { %v2188_v59 = vpop.f32.mrf.mxu1 }
 0x512   : > { %v1777_v1 = vadd.f32 %v2187_v61, %v1549_v60 }
 0x513   : > { %v2189_v62 = vpop.f32.mrf.mxu1 }
 0x514   : > { %v2190_v3 = vadd.f32 %v2189_v62, %v2188_v59 }
 0x516   : > { %v1780_v8 = vadd.f32 %v2190_v3, %v1549_v60 }
 0x52c   : > { %v2207_v20 = vpop.f32.mrf.mxu0 }
 0x52e   : > { %v2208_v2 = vpop.f32.mrf.mxu0 }
 0x52f   : > { %v2209_v54 = vadd.f32 %v2208_v2, %v2207_v20 }
 0x530   : > { %v2210_v5 = vpop.f32.mrf.mxu0 }
 0x531   : > { %v1818_v6 = vadd.f32 %v2209_v54, %v1777_v1 }
 0x532   : > { %v2211_v7 = vpop.f32.mrf.mxu0 }
 0x533   : > { %v1824_v19 = vadd.f32 %v1818_v6, %v3242_v29  ;;  %v2212_v22 = vadd.f32 %v2211_v7, %v2210_v5 }
 0x535   : > { %1826 = vst [vmem:[%s489_s30] sm:$0xff] %v1824_v19  ;;  %v1821_v15 = vadd.f32 %v2212_v22, %v1780_v8 }
 0x537   : > { %v1825_v9 = vadd.f32 %v1821_v15, %v3244_v32 }
 0x539   : > { %1827 = vst [vmem:[%s489_s30 + $0x8] sm:$0xff] %v1825_v9 }
 0x53a   : > { %2806 = shalt.err (!%p2803_p12)
}
 0x53b   : > { %s2807_s17 = scalar_lea.hbm %s3425_s28, 256  ;;  %s2811_s18 = scalar_lea.hbm %s3478_s10, 1024 }
 0x53c   : > { %p2808_p3 = scmp.ne.s32.totalorder %s3425_s28, %s2807_s17  ;;  %p2812_p0 = scmp.lt.s32.totalorder %s3425_s28, %s3478_s10 }
 0x53d   : > { %p2813_p4 = scmp.lt.s32.totalorder %s2811_s18, %s2807_s17 }
 0x53e   : > { %p2809_p11 = pnand %p2808_p3, %p3516_p6 }
 0x53f   : > { %p2814_p8 = por %p2813_p4, %p2812_p0 }
 0x540   : > { %p2810_p5 = pneg %p2809_p11 }
 0x542   : > { %p2815_p9 = pnand %p2814_p8, %p2810_p5 }
 0x544   : > { %2818 = shalt.err (!%p2815_p9)
}
 0x545   : > { %s2892_s0 = smov 128   ;;  %s2893_s7 = smov 8  }
 0x546   : > { %2377 = dma.vmem_to_hbm [thread:$0]  (%p3516_p6), %s3420_s11, 256, %s3425_s28, %s1829_s2, %s2892_s0, %s2892_s0, %s2893_s7  }
 0x547 PF: > { %p2417_p13 = scmp.ge.s32.totalorder %s2873_s16, 2  ;;  %s1857_s30 = sand.u32 1, %s2861_s13  }
 0x548   : > { %p3517_p2 = scmp.ne.s32.totalorder %s3503_s24, 0  ;;  %s1858_s23 = scalar_lea.sflag [#allocation4], %s1857_s30 }
 0x54a   : > { %p2403_p1 = pnand %p2417_p13, %p3517_p2 }
 0x54c   : > { %p2404_p7 = pneg %p2403_p1 }
 0x54e   : > { %2856 = dma.done.wait (%p2404_p7), %s1858_s23, 256  }
 0x54f   : > { %2858 = vsyncadd (%p2404_p7), %s1858_s23, 4294967040  ;;  %s3518_s15 = sld [smem:[#allocation21_spill]]  ;;  %p28_p10 = scmp.ge.s32.totalorder %s3056_s26, 6  }
 0x550   : > { %s3519_s22 = sld [smem:[#allocation22_spill]]  ;;  %s3520_s13 = smov %s2865_s14 }
 0x551   : > { %s3523_s16 = smov %s3056_s26 }
 0x552   :  { %30 = sbr.rel (!%p28_p10) target bundleno = 16 (0x10), region = 138 }
 0x555   : > { %s3521_s14 = smov %s3518_s15 }
 0x556   : > { %s3522_s15 = smov %s3519_s22 }
 0x557   :  { %1863 = vsyncpa [#allocation3], 1 }
 0x558   :  { %1865 = vsyncpa [#allocation3 + $0x1], 1 }
 0x559   :  { %1866 = vsyncpa [#allocation6], 1 }
 0x55a   :  { %1868 = vsyncpa [#allocation6 + $0x1], 1 }
 0x55b   :  { %1869 = vsyncpa [#allocation9], 1 }
 0x55c   :  { %1870 = vsyncpa [#allocation12], 1 }
 0x55d   :  { %1871 = vsyncpa [#allocation4], 1 }
 0x55e   :  { %1873 = vsyncpa [#allocation4 + $0x1], 1 }

</bundles_post_ra>
